<compile_context>
chip_gen: v5e
topology: v5e:2x2
jax: 0.10.0
libtpu: 0.0.40
codegen_flags: <defaults>
</compile_context>

<pallas_src>
import jax
import jax.numpy as jnp
from jax.experimental import pallas as pl
from jax.experimental.pallas import tpu as pltpu

BN_EPS = 1e-5


def _lane_group_allreduce(v, w_out, c_out):
    """All-reduce over the w groups of a (1, w_out*c_out) row whose lanes are packed
    w-major / c-minor.  Every lane ends up holding the sum over all w positions of its
    channel, i.e. the per-channel result is already broadcast back to the packed layout."""
    if w_out == 1:
        return v
    if (w_out & (w_out - 1)) == 0:                      # power of two -> tree reduce
        for j in range(w_out.bit_length() - 1):
            v = v + pltpu.roll(v, shift=c_out << j, axis=1)
        return v
    acc = v                                             # general (small) fallback
    for t in range(1, w_out):
        acc = acc + pltpu.roll(v, shift=t * c_out, axis=1)
    return acc


def _make_fused_kernel(num_layers, m, h, w_outs, c_outs):
    """Kernel ref order:
       [x, G_layer1,  G_hbm_layer2..L,  gamma_1..L, beta_1..L,  out,
        G_vmem_layer2..L (scratch), dma_sem (scratch, if L > 1)]"""
    L = num_layers

    def kernel(*refs):
        x_ref = refs[0]
        g_first = refs[1]
        g_hbm = refs[2:1 + L]
        gamma_refs = refs[1 + L:1 + 2 * L]
        beta_refs = refs[1 + 2 * L:1 + 3 * L]
        o_ref = refs[1 + 3 * L]
        g_vmem = refs[2 + 3 * L:2 + 3 * L + (L - 1)]
        sem = refs[2 + 3 * L + (L - 1)] if L > 1 else None

        # Kick off the layer-2..L weight DMAs immediately so they overlap with layer-1
        # (and later) compute instead of sitting serially in the pallas_call prologue.
        copies = []
        for j in range(L - 1):
            cp = pltpu.make_async_copy(g_hbm[j], g_vmem[j], sem.at[j])
            cp.start()
            copies.append(cp)

        # Row masks implementing the H zero padding for the kh=0 / kh=2 row shifts (they
        # also zero the cross-batch wrap-around rows introduced by the cyclic sublane roll).
        row = jax.lax.broadcasted_iota(jnp.int32, (m, 1), 0)
        h_idx = row % h
        mask_lo = (h_idx != 0).astype(jnp.float32)        # 0.0 where h == 0
        mask_hi = (h_idx != (h - 1)).astype(jnp.float32)  # 0.0 where h == H-1

        x = x_ref[...]
        for li in range(L):
            if li == 0:
                g_ref = g_first
            else:
                copies[li - 1].wait()
                g_ref = g_vmem[li - 1]

            # --- Conv 3x3, stride (1,2), pad 1: one bf16 MXU matmul per kh row.  The G
            # slabs fold the stride-2 W-im2col and the channel mixing; the kh row shift is
            # a cheap XLU sublane roll + H-edge mask.  Conv bias is zero-init and exactly
            # cancelled by train-mode BN mean subtraction, so it is dropped.
            xc = x.astype(jnp.bfloat16)                                               # row h
            xu = (pltpu.roll(x, shift=1, axis=0) * mask_lo).astype(jnp.bfloat16)      # row h-1
            xd = (pltpu.roll(x, shift=m - 1, axis=0) * mask_hi).astype(jnp.bfloat16)  # row h+1
            y = jnp.dot(xu, g_ref[0], preferred_element_type=jnp.float32)
            y = y + jnp.dot(xc, g_ref[1], preferred_element_type=jnp.float32)
            y = y + jnp.dot(xd, g_ref[2], preferred_element_type=jnp.float32)

            # --- BatchNorm2d (training mode, biased variance) + ReLU, folded to one FMA.
            # Stats: reduce over rows first (cheap), then a lane tree-reduce over the w
            # groups of the packed (w-major, c-minor) lane axis; the result is already
            # broadcast in the packed layout, so no re-expansion is needed.
            w_out = w_outs[li]
            c_out = c_outs[li]
            s1 = jnp.sum(y, axis=0, keepdims=True)
            s2 = jnp.sum(y * y, axis=0, keepdims=True)
            s1 = _lane_group_allreduce(s1, w_out, c_out)
            s2 = _lane_group_allreduce(s2, w_out, c_out)
            inv_cnt = 1.0 / float(m * w_out)                     # 1 / (N*H*W_out)
            mean_t = s1 * inv_cnt
            var_t = jnp.maximum(s2 * inv_cnt - mean_t * mean_t, 0.0)
            scale = gamma_refs[li][...] * jax.lax.rsqrt(var_t + BN_EPS)
            shift = beta_refs[li][...] - mean_t * scale
            x = jnp.maximum(y * scale + shift, 0.0)

        o_ref[...] = x

    return kernel


def _conv_as_matmul_slabs(wgt, w_in):
    """wgt: (c_out, c_in, 3, 3) f32.  Returns G of shape (3, w_in*c_in, w_out*c_out) bf16
    (one slab per kh row, stride-2 W-im2col folded into the weights) and w_out."""
    c_out, c_in, _, _ = wgt.shape
    w_out = (w_in - 1) // 2 + 1                      # kernel 3, pad 1, stride 2 along W
    wi = jnp.arange(w_in)
    wo = jnp.arange(w_out)
    kw = jnp.arange(3)
    # sel[kw, wi, wo] = 1 iff input column wi feeds output column wo at kernel offset kw.
    sel = (wi[None, :, None] == (2 * wo[None, None, :] + kw[:, None, None] - 1))
    sel = sel.astype(jnp.float32)                    # (3, w_in, w_out)
    wk = jnp.transpose(wgt.astype(jnp.float32), (2, 3, 1, 0))   # (kh, kw, c_in, c_out)
    g = jnp.einsum("kwo,hkcd->hwcod", sel, wk)       # (kh, w_in, c_in, w_out, c_out)
    g = g.reshape(3, w_in * c_in, w_out * c_out)
    return g.astype(jnp.bfloat16), w_out


def make_cnn4_forward(params, input_shape):
    """One-time weight preprocessing + kernel construction (hoisted out of the hot path).
    Returns a callable: x (NCHW f32) -> output (NCHW f32)."""
    n, c0, h, w = input_shape
    m = n * h
    L = len(params)

    g_slabs, gammas_t, betas_t = [], [], []
    w_outs, c_outs = [], []
    w_cur = w
    for li, (wgt, gamma, beta) in enumerate(params):
        c_out = wgt.shape[0]
        g, w_out = _conv_as_matmul_slabs(wgt, w_cur)
        k_out = w_out * c_out
        # Lane-dense final store: pad the last layer's output lanes up to 128 with zero
        # columns / zero gamma / zero beta (sliced off in the wrapper).
        k_pad = 128 if (li == L - 1 and w_out == 1 and k_out < 128) else k_out
        if k_pad != k_out:
            g = jnp.pad(g, ((0, 0), (0, 0), (0, k_pad - k_out)))
        gt = jnp.tile(gamma.astype(jnp.float32), (w_out,)).reshape(1, k_out)
        bt = jnp.tile(beta.astype(jnp.float32), (w_out,)).reshape(1, k_out)
        if k_pad != k_out:
            gt = jnp.pad(gt, ((0, 0), (0, k_pad - k_out)))
            bt = jnp.pad(bt, ((0, 0), (0, k_pad - k_out)))
        g_slabs.append(g)
        gammas_t.append(gt)
        betas_t.append(bt)
        w_outs.append(w_out)
        c_outs.append(c_out)
        w_cur = w_out

    w_final, c_final = w_outs[-1], c_outs[-1]
    k_final = w_final * c_final
    k_pad_final = g_slabs[-1].shape[-1]

    kernel = _make_fused_kernel(L, m, h, tuple(w_outs), tuple(c_outs))

    def _full_spec(shape):
        nd = len(shape)
        return pl.BlockSpec(shape, lambda *_, nd=nd: (0,) * nd)

    in_specs = [_full_spec((m, w * c0)), _full_spec(g_slabs[0].shape)]
    in_specs += [pl.BlockSpec(memory_space=pl.ANY) for _ in range(L - 1)]   # layer-2..L G in HBM
    in_specs += [_full_spec(gt.shape) for gt in gammas_t]
    in_specs += [_full_spec(bt.shape) for bt in betas_t]

    scratch_shapes = [pltpu.VMEM(g_slabs[j].shape, jnp.bfloat16) for j in range(1, L)]
    if L > 1:
        scratch_shapes.append(pltpu.SemaphoreType.DMA((L - 1,)))

    pallas_fn = pl.pallas_call(
        kernel,
        out_shape=jax.ShapeDtypeStruct((m, k_pad_final), jnp.float32),
        grid=(1,),
        in_specs=in_specs,
        out_specs=_full_spec((m, k_pad_final)),
        scratch_shapes=scratch_shapes,
        compiler_params=pltpu.CompilerParams(dimension_semantics=("arbitrary",)),
    )

    const_args = tuple([g_slabs[0]] + g_slabs[1:] + gammas_t + betas_t)

    def forward(x, consts):
        # NCHW -> rows (n, h), lanes packed w-major / c-minor.  This layout is kept across
        # all layers; a single transpose back to NCHW happens at the network output.
        x0 = jnp.transpose(x, (0, 2, 3, 1)).reshape(m, w * c0)
        out = pallas_fn(x0, *consts)
        out = out[:, :k_final]                       # drop the lane-padding columns
        y = out.reshape(n, h, w_final, c_final)
        return jnp.transpose(y, (0, 3, 1, 2))

    jitted = jax.jit(forward)
    return lambda x: jitted(x, const_args)


def init_params(key, layers=4, hidden=64, channels=1):
    """Matches the PyTorch module: conv weight xavier_uniform(gain=1), conv bias 0 (dropped:
    zero and exactly cancelled by train-mode BN), BN gamma ~ U(0,1), BN beta 0."""
    params = []
    c_in = channels
    for _ in range(layers):
        key, k_w, k_g = jax.random.split(key, 3)
        fan_in = c_in * 9
        fan_out = hidden * 9
        bound = (6.0 / (fan_in + fan_out)) ** 0.5
        wgt = jax.random.uniform(k_w, (hidden, c_in, 3, 3), jnp.float32, -bound, bound)
        gamma = jax.random.uniform(k_g, (hidden,), jnp.float32, 0.0, 1.0)
        beta = jnp.zeros((hidden,), jnp.float32)
        params.append((wgt, gamma, beta))
        c_in = hidden
    return params


if __name__ == "__main__":
    key = jax.random.PRNGKey(0)
    key, xkey = jax.random.split(key)

    # The module hardcodes channels=1; batch=2, spatial 16x16, hidden=64, 4 layers.
    x = jax.random.normal(xkey, (2, 1, 16, 16), jnp.float32)
    params = init_params(key, layers=4, hidden=64, channels=1)

    fwd = make_cnn4_forward(params, x.shape)   # one-time constant prep + kernel build
    out = fwd(x)
    jax.block_until_ready(out)

    # stride_w = 2 per layer: width 16 -> 8 -> 4 -> 2 -> 1; height preserved.
    assert out.shape == (2, 64, 16, 1), out.shape
    assert out.dtype == jnp.float32
    assert bool(jnp.all(jnp.isfinite(out)))
    print("KERNEL_OK")
</pallas_src>

<mosaic_0001>
module attributes {stable_mosaic.version = 11 : i64} {
  func.func @kernel(%arg0: i32, %arg1: memref<32x16xf32, #tpu.memory_space<vmem>>, %arg2: memref<3x16x512xbf16, #tpu.memory_space<vmem>>, %arg3: memref<3x512x256xbf16, #tpu.memory_space<any>>, %arg4: memref<3x256x128xbf16, #tpu.memory_space<any>>, %arg5: memref<3x128x128xbf16, #tpu.memory_space<any>>, %arg6: memref<1x512xf32, #tpu.memory_space<vmem>>, %arg7: memref<1x256xf32, #tpu.memory_space<vmem>>, %arg8: memref<1x128xf32, #tpu.memory_space<vmem>>, %arg9: memref<1x128xf32, #tpu.memory_space<vmem>>, %arg10: memref<1x512xf32, #tpu.memory_space<vmem>>, %arg11: memref<1x256xf32, #tpu.memory_space<vmem>>, %arg12: memref<1x128xf32, #tpu.memory_space<vmem>>, %arg13: memref<1x128xf32, #tpu.memory_space<vmem>>, %arg14: memref<32x128xf32, #tpu.memory_space<vmem>>, %arg15: memref<3x512x256xbf16, #tpu.memory_space<vmem>>, %arg16: memref<3x256x128xbf16, #tpu.memory_space<vmem>>, %arg17: memref<3x128x128xbf16, #tpu.memory_space<vmem>>, %arg18: memref<3x!tpu.dma_semaphore, #tpu.memory_space<semaphore_mem>>) attributes {dimension_semantics = [#tpu.dimension_semantics<arbitrary>], iteration_bounds = array<i64: 1>, scalar_prefetch = 0 : i64, scratch_operands = 4 : i64, tpu.core_type = #tpu.core_type<tc>, window_params = [{pipeline_mode = #tpu.pipeline_mode<synchronous>, transform_indices = @transform_0, window_bounds = array<i64: 32, 16>}, {pipeline_mode = #tpu.pipeline_mode<synchronous>, transform_indices = @transform_1, window_bounds = array<i64: 3, 16, 512>}, {}, {}, {}, {pipeline_mode = #tpu.pipeline_mode<synchronous>, transform_indices = @transform_5, window_bounds = array<i64: 1, 512>}, {pipeline_mode = #tpu.pipeline_mode<synchronous>, transform_indices = @transform_6, window_bounds = array<i64: 1, 256>}, {pipeline_mode = #tpu.pipeline_mode<synchronous>, transform_indices = @transform_7, window_bounds = array<i64: 1, 128>}, {pipeline_mode = #tpu.pipeline_mode<synchronous>, transform_indices = @transform_8, window_bounds = array<i64: 1, 128>}, {pipeline_mode = #tpu.pipeline_mode<synchronous>, transform_indices = @transform_9, window_bounds = array<i64: 1, 512>}, {pipeline_mode = #tpu.pipeline_mode<synchronous>, transform_indices = @transform_10, window_bounds = array<i64: 1, 256>}, {pipeline_mode = #tpu.pipeline_mode<synchronous>, transform_indices = @transform_11, window_bounds = array<i64: 1, 128>}, {pipeline_mode = #tpu.pipeline_mode<synchronous>, transform_indices = @transform_12, window_bounds = array<i64: 1, 128>}, {pipeline_mode = #tpu.pipeline_mode<synchronous>, transform_indices = @transform_13, window_bounds = array<i64: 32, 128>}]} {
    %c0_i32 = arith.constant 0 : i32
    %0 = tpu.memref_slice %arg18[%c0_i32] : memref<3x!tpu.dma_semaphore, #tpu.memory_space<semaphore_mem>> -> memref<1x!tpu.dma_semaphore, #tpu.memory_space<semaphore_mem>>
    %1 = tpu.memref_squeeze %0 : memref<1x!tpu.dma_semaphore, #tpu.memory_space<semaphore_mem>> -> memref<!tpu.dma_semaphore, #tpu.memory_space<semaphore_mem>>
    tpu.enqueue_dma source(%arg3 : memref<3x512x256xbf16, #tpu.memory_space<any>>) target(%arg15 : memref<3x512x256xbf16, #tpu.memory_space<vmem>>) target_semaphore(%1 : memref<!tpu.dma_semaphore, #tpu.memory_space<semaphore_mem>>)
    %c1_i32 = arith.constant 1 : i32
    %2 = tpu.memref_slice %arg18[%c1_i32] : memref<3x!tpu.dma_semaphore, #tpu.memory_space<semaphore_mem>> -> memref<1x!tpu.dma_semaphore, #tpu.memory_space<semaphore_mem>>
    %3 = tpu.memref_squeeze %2 : memref<1x!tpu.dma_semaphore, #tpu.memory_space<semaphore_mem>> -> memref<!tpu.dma_semaphore, #tpu.memory_space<semaphore_mem>>
    tpu.enqueue_dma source(%arg4 : memref<3x256x128xbf16, #tpu.memory_space<any>>) target(%arg16 : memref<3x256x128xbf16, #tpu.memory_space<vmem>>) target_semaphore(%3 : memref<!tpu.dma_semaphore, #tpu.memory_space<semaphore_mem>>)
    %c2_i32 = arith.constant 2 : i32
    %4 = tpu.memref_slice %arg18[%c2_i32] : memref<3x!tpu.dma_semaphore, #tpu.memory_space<semaphore_mem>> -> memref<1x!tpu.dma_semaphore, #tpu.memory_space<semaphore_mem>>
    %5 = tpu.memref_squeeze %4 : memref<1x!tpu.dma_semaphore, #tpu.memory_space<semaphore_mem>> -> memref<!tpu.dma_semaphore, #tpu.memory_space<semaphore_mem>>
    tpu.enqueue_dma source(%arg5 : memref<3x128x128xbf16, #tpu.memory_space<any>>) target(%arg17 : memref<3x128x128xbf16, #tpu.memory_space<vmem>>) target_semaphore(%5 : memref<!tpu.dma_semaphore, #tpu.memory_space<semaphore_mem>>)
    %6 = tpu.iota {dimensions = array<i32: 0>} : vector<32x1xi32>
    %c16_i32 = arith.constant 16 : i32
    %c0_i32_0 = arith.constant 0 : i32
    %7 = arith.cmpi eq, %c16_i32, %c0_i32_0 : i32
    %c1_i32_1 = arith.constant 1 : i32
    %8 = arith.select %7, %c1_i32_1, %c16_i32 : i32
    %9 = vector.broadcast %8 : i32 to vector<32x1xi32>
    %10 = arith.remsi %6, %9 : vector<32x1xi32>
    %c0_i32_2 = arith.constant 0 : i32
    %11 = vector.broadcast %c0_i32_2 : i32 to vector<32x1xi32>
    %12 = arith.cmpi ne, %10, %11 : vector<32x1xi32>
    %c0_i32_3 = arith.constant 0 : i32
    %13 = vector.broadcast %c0_i32_3 : i32 to vector<32x1xi32>
    %14 = arith.cmpi slt, %10, %13 : vector<32x1xi32>
    %c0_i32_4 = arith.constant 0 : i32
    %15 = arith.cmpi slt, %8, %c0_i32_4 : i32
    %16 = vector.broadcast %15 : i1 to vector<32x1xi1>
    %17 = vector.broadcast %16 : vector<32x1xi1> to vector<32x1xi1>
    %18 = arith.xori %14, %17 : vector<32x1xi1>
    %19 = arith.andi %18, %12 : vector<32x1xi1>
    %20 = vector.broadcast %8 : i32 to vector<32x1xi32>
    %21 = arith.addi %10, %20 : vector<32x1xi32>
    %22 = arith.select %19, %21, %10 : vector<32x1xi1>, vector<32x1xi32>
    %c0_i32_5 = arith.constant 0 : i32
    %23 = vector.broadcast %c0_i32_5 : i32 to vector<32x1xi32>
    %24 = arith.cmpi ne, %22, %23 : vector<32x1xi32>
    %25 = arith.extui %24 : vector<32x1xi1> to vector<32x1xi32>
    %26 = arith.sitofp %25 : vector<32x1xi32> to vector<32x1xf32>
    %c15_i32 = arith.constant 15 : i32
    %27 = vector.broadcast %c15_i32 : i32 to vector<32x1xi32>
    %28 = arith.cmpi ne, %22, %27 : vector<32x1xi32>
    %29 = arith.extui %28 : vector<32x1xi1> to vector<32x1xi32>
    %30 = arith.sitofp %29 : vector<32x1xi32> to vector<32x1xf32>
    %c0 = arith.constant 0 : index
    %c0_6 = arith.constant 0 : index
    %31 = vector.load %arg1[%c0, %c0_6] : memref<32x16xf32, #tpu.memory_space<vmem>>, vector<32x16xf32>
    %32 = arith.truncf %31 : vector<32x16xf32> to vector<32x16xbf16>
    %c1_i32_7 = arith.constant 1 : i32
    %33 = tpu.dynamic_rotate %31 by %c1_i32_7 dim 0 : vector<32x16xf32>, i32 -> vector<32x16xf32>
    %34 = vector.broadcast %26 : vector<32x1xf32> to vector<32x16xf32>
    %35 = arith.mulf %33, %34 : vector<32x16xf32>
    %36 = arith.truncf %35 : vector<32x16xf32> to vector<32x16xbf16>
    %c31_i32 = arith.constant 31 : i32
    %37 = tpu.dynamic_rotate %31 by %c31_i32 dim 0 : vector<32x16xf32>, i32 -> vector<32x16xf32>
    %38 = vector.broadcast %30 : vector<32x1xf32> to vector<32x16xf32>
    %39 = arith.mulf %37, %38 : vector<32x16xf32>
    %40 = arith.truncf %39 : vector<32x16xf32> to vector<32x16xbf16>
    %c0_8 = arith.constant 0 : index
    %c0_9 = arith.constant 0 : index
    %c0_10 = arith.constant 0 : index
    %41 = vector.load %arg2[%c0_8, %c0_9, %c0_10] : memref<3x16x512xbf16, #tpu.memory_space<vmem>>, vector<1x16x512xbf16>
    %42 = vector.shape_cast %41 : vector<1x16x512xbf16> to vector<16x512xbf16>
    %cst = arith.constant dense<0.000000e+00> : vector<32x512xf32>
    %43 = tpu.matmul %36, %42, %cst {dimension_numbers = #tpu.dot_dimension_numbers<[1], [0], [0], [1], [0, 0, 1, 1], [], []>} : vector<32x16xbf16>, vector<16x512xbf16>, vector<32x512xf32> -> vector<32x512xf32>
    %c1 = arith.constant 1 : index
    %c0_11 = arith.constant 0 : index
    %c0_12 = arith.constant 0 : index
    %44 = vector.load %arg2[%c1, %c0_11, %c0_12] : memref<3x16x512xbf16, #tpu.memory_space<vmem>>, vector<1x16x512xbf16>
    %45 = vector.shape_cast %44 : vector<1x16x512xbf16> to vector<16x512xbf16>
    %cst_13 = arith.constant dense<0.000000e+00> : vector<32x512xf32>
    %46 = tpu.matmul %32, %45, %cst_13 {dimension_numbers = #tpu.dot_dimension_numbers<[1], [0], [0], [1], [0, 0, 1, 1], [], []>} : vector<32x16xbf16>, vector<16x512xbf16>, vector<32x512xf32> -> vector<32x512xf32>
    %47 = arith.addf %43, %46 : vector<32x512xf32>
    %c2 = arith.constant 2 : index
    %c0_14 = arith.constant 0 : index
    %c0_15 = arith.constant 0 : index
    %48 = vector.load %arg2[%c2, %c0_14, %c0_15] : memref<3x16x512xbf16, #tpu.memory_space<vmem>>, vector<1x16x512xbf16>
    %49 = vector.shape_cast %48 : vector<1x16x512xbf16> to vector<16x512xbf16>
    %cst_16 = arith.constant dense<0.000000e+00> : vector<32x512xf32>
    %50 = tpu.matmul %40, %49, %cst_16 {dimension_numbers = #tpu.dot_dimension_numbers<[1], [0], [0], [1], [0, 0, 1, 1], [], []>} : vector<32x16xbf16>, vector<16x512xbf16>, vector<32x512xf32> -> vector<32x512xf32>
    %51 = arith.addf %47, %50 : vector<32x512xf32>
    %cst_17 = arith.constant dense<0.000000e+00> : vector<512xf32>
    %52 = vector.multi_reduction <add>, %51, %cst_17 [0] : vector<32x512xf32> to vector<512xf32>
    %53 = vector.shape_cast %52 : vector<512xf32> to vector<1x512xf32>
    %54 = arith.mulf %51, %51 : vector<32x512xf32>
    %cst_18 = arith.constant dense<0.000000e+00> : vector<512xf32>
    %55 = vector.multi_reduction <add>, %54, %cst_18 [0] : vector<32x512xf32> to vector<512xf32>
    %56 = vector.shape_cast %55 : vector<512xf32> to vector<1x512xf32>
    %c64_i32 = arith.constant 64 : i32
    %57 = tpu.dynamic_rotate %53 by %c64_i32 dim 1 : vector<1x512xf32>, i32 -> vector<1x512xf32>
    %58 = arith.addf %53, %57 : vector<1x512xf32>
    %c128_i32 = arith.constant 128 : i32
    %59 = tpu.dynamic_rotate %58 by %c128_i32 dim 1 : vector<1x512xf32>, i32 -> vector<1x512xf32>
    %60 = arith.addf %58, %59 : vector<1x512xf32>
    %c256_i32 = arith.constant 256 : i32
    %61 = tpu.dynamic_rotate %60 by %c256_i32 dim 1 : vector<1x512xf32>, i32 -> vector<1x512xf32>
    %62 = arith.addf %60, %61 : vector<1x512xf32>
    %c64_i32_19 = arith.constant 64 : i32
    %63 = tpu.dynamic_rotate %56 by %c64_i32_19 dim 1 : vector<1x512xf32>, i32 -> vector<1x512xf32>
    %64 = arith.addf %56, %63 : vector<1x512xf32>
    %c128_i32_20 = arith.constant 128 : i32
    %65 = tpu.dynamic_rotate %64 by %c128_i32_20 dim 1 : vector<1x512xf32>, i32 -> vector<1x512xf32>
    %66 = arith.addf %64, %65 : vector<1x512xf32>
    %c256_i32_21 = arith.constant 256 : i32
    %67 = tpu.dynamic_rotate %66 by %c256_i32_21 dim 1 : vector<1x512xf32>, i32 -> vector<1x512xf32>
    %68 = arith.addf %66, %67 : vector<1x512xf32>
    %cst_22 = arith.constant 3.906250e-03 : f32
    %69 = vector.broadcast %cst_22 : f32 to vector<1x512xf32>
    %70 = arith.mulf %62, %69 : vector<1x512xf32>
    %cst_23 = arith.constant 3.906250e-03 : f32
    %71 = vector.broadcast %cst_23 : f32 to vector<1x512xf32>
    %72 = arith.mulf %68, %71 : vector<1x512xf32>
    %73 = arith.mulf %70, %70 : vector<1x512xf32>
    %74 = arith.subf %72, %73 : vector<1x512xf32>
    %cst_24 = arith.constant 0.000000e+00 : f32
    %75 = vector.broadcast %cst_24 : f32 to vector<1x512xf32>
    %76 = arith.maximumf %74, %75 : vector<1x512xf32>
    %c0_25 = arith.constant 0 : index
    %c0_26 = arith.constant 0 : index
    %77 = vector.load %arg6[%c0_25, %c0_26] : memref<1x512xf32, #tpu.memory_space<vmem>>, vector<1x512xf32>
    %cst_27 = arith.constant 9.99999974E-6 : f32
    %78 = vector.broadcast %cst_27 : f32 to vector<1x512xf32>
    %79 = arith.addf %76, %78 : vector<1x512xf32>
    %80 = math.rsqrt %79 : vector<1x512xf32>
    %81 = arith.mulf %77, %80 : vector<1x512xf32>
    %c0_28 = arith.constant 0 : index
    %c0_29 = arith.constant 0 : index
    %82 = vector.load %arg10[%c0_28, %c0_29] : memref<1x512xf32, #tpu.memory_space<vmem>>, vector<1x512xf32>
    %83 = arith.mulf %70, %81 : vector<1x512xf32>
    %84 = arith.subf %82, %83 : vector<1x512xf32>
    %85 = vector.broadcast %81 : vector<1x512xf32> to vector<32x512xf32>
    %86 = arith.mulf %51, %85 : vector<32x512xf32>
    %87 = vector.broadcast %84 : vector<1x512xf32> to vector<32x512xf32>
    %88 = arith.addf %86, %87 : vector<32x512xf32>
    %cst_30 = arith.constant 0.000000e+00 : f32
    %89 = vector.broadcast %cst_30 : f32 to vector<32x512xf32>
    %90 = arith.maximumf %88, %89 : vector<32x512xf32>
    %c0_i32_31 = arith.constant 0 : i32
    %91 = tpu.memref_slice %arg18[%c0_i32_31] : memref<3x!tpu.dma_semaphore, #tpu.memory_space<semaphore_mem>> -> memref<1x!tpu.dma_semaphore, #tpu.memory_space<semaphore_mem>>
    %92 = tpu.memref_squeeze %91 : memref<1x!tpu.dma_semaphore, #tpu.memory_space<semaphore_mem>> -> memref<!tpu.dma_semaphore, #tpu.memory_space<semaphore_mem>>
    tpu.wait_dma2 semaphore(%92 : memref<!tpu.dma_semaphore, #tpu.memory_space<semaphore_mem>>) src(%arg3 : memref<3x512x256xbf16, #tpu.memory_space<any>>) dst(%arg15 : memref<3x512x256xbf16, #tpu.memory_space<vmem>>)
    %93 = arith.truncf %90 : vector<32x512xf32> to vector<32x512xbf16>
    %c1_i32_32 = arith.constant 1 : i32
    %94 = tpu.dynamic_rotate %90 by %c1_i32_32 dim 0 : vector<32x512xf32>, i32 -> vector<32x512xf32>
    %95 = vector.broadcast %26 : vector<32x1xf32> to vector<32x512xf32>
    %96 = arith.mulf %94, %95 : vector<32x512xf32>
    %97 = arith.truncf %96 : vector<32x512xf32> to vector<32x512xbf16>
    %c31_i32_33 = arith.constant 31 : i32
    %98 = tpu.dynamic_rotate %90 by %c31_i32_33 dim 0 : vector<32x512xf32>, i32 -> vector<32x512xf32>
    %99 = vector.broadcast %30 : vector<32x1xf32> to vector<32x512xf32>
    %100 = arith.mulf %98, %99 : vector<32x512xf32>
    %101 = arith.truncf %100 : vector<32x512xf32> to vector<32x512xbf16>
    %c0_34 = arith.constant 0 : index
    %c0_35 = arith.constant 0 : index
    %c0_36 = arith.constant 0 : index
    %102 = vector.load %arg15[%c0_34, %c0_35, %c0_36] : memref<3x512x256xbf16, #tpu.memory_space<vmem>>, vector<1x512x256xbf16>
    %103 = vector.shape_cast %102 : vector<1x512x256xbf16> to vector<512x256xbf16>
    %cst_37 = arith.constant dense<0.000000e+00> : vector<32x256xf32>
    %104 = tpu.matmul %97, %103, %cst_37 {dimension_numbers = #tpu.dot_dimension_numbers<[1], [0], [0], [1], [0, 0, 1, 1], [], []>} : vector<32x512xbf16>, vector<512x256xbf16>, vector<32x256xf32> -> vector<32x256xf32>
    %c1_38 = arith.constant 1 : index
    %c0_39 = arith.constant 0 : index
    %c0_40 = arith.constant 0 : index
    %105 = vector.load %arg15[%c1_38, %c0_39, %c0_40] : memref<3x512x256xbf16, #tpu.memory_space<vmem>>, vector<1x512x256xbf16>
    %106 = vector.shape_cast %105 : vector<1x512x256xbf16> to vector<512x256xbf16>
    %cst_41 = arith.constant dense<0.000000e+00> : vector<32x256xf32>
    %107 = tpu.matmul %93, %106, %cst_41 {dimension_numbers = #tpu.dot_dimension_numbers<[1], [0], [0], [1], [0, 0, 1, 1], [], []>} : vector<32x512xbf16>, vector<512x256xbf16>, vector<32x256xf32> -> vector<32x256xf32>
    %108 = arith.addf %104, %107 : vector<32x256xf32>
    %c2_42 = arith.constant 2 : index
    %c0_43 = arith.constant 0 : index
    %c0_44 = arith.constant 0 : index
    %109 = vector.load %arg15[%c2_42, %c0_43, %c0_44] : memref<3x512x256xbf16, #tpu.memory_space<vmem>>, vector<1x512x256xbf16>
    %110 = vector.shape_cast %109 : vector<1x512x256xbf16> to vector<512x256xbf16>
    %cst_45 = arith.constant dense<0.000000e+00> : vector<32x256xf32>
    %111 = tpu.matmul %101, %110, %cst_45 {dimension_numbers = #tpu.dot_dimension_numbers<[1], [0], [0], [1], [0, 0, 1, 1], [], []>} : vector<32x512xbf16>, vector<512x256xbf16>, vector<32x256xf32> -> vector<32x256xf32>
    %112 = arith.addf %108, %111 : vector<32x256xf32>
    %cst_46 = arith.constant dense<0.000000e+00> : vector<256xf32>
    %113 = vector.multi_reduction <add>, %112, %cst_46 [0] : vector<32x256xf32> to vector<256xf32>
    %114 = vector.shape_cast %113 : vector<256xf32> to vector<1x256xf32>
    %115 = arith.mulf %112, %112 : vector<32x256xf32>
    %cst_47 = arith.constant dense<0.000000e+00> : vector<256xf32>
    %116 = vector.multi_reduction <add>, %115, %cst_47 [0] : vector<32x256xf32> to vector<256xf32>
    %117 = vector.shape_cast %116 : vector<256xf32> to vector<1x256xf32>
    %c64_i32_48 = arith.constant 64 : i32
    %118 = tpu.dynamic_rotate %114 by %c64_i32_48 dim 1 : vector<1x256xf32>, i32 -> vector<1x256xf32>
    %119 = arith.addf %114, %118 : vector<1x256xf32>
    %c128_i32_49 = arith.constant 128 : i32
    %120 = tpu.dynamic_rotate %119 by %c128_i32_49 dim 1 : vector<1x256xf32>, i32 -> vector<1x256xf32>
    %121 = arith.addf %119, %120 : vector<1x256xf32>
    %c64_i32_50 = arith.constant 64 : i32
    %122 = tpu.dynamic_rotate %117 by %c64_i32_50 dim 1 : vector<1x256xf32>, i32 -> vector<1x256xf32>
    %123 = arith.addf %117, %122 : vector<1x256xf32>
    %c128_i32_51 = arith.constant 128 : i32
    %124 = tpu.dynamic_rotate %123 by %c128_i32_51 dim 1 : vector<1x256xf32>, i32 -> vector<1x256xf32>
    %125 = arith.addf %123, %124 : vector<1x256xf32>
    %cst_52 = arith.constant 7.812500e-03 : f32
    %126 = vector.broadcast %cst_52 : f32 to vector<1x256xf32>
    %127 = arith.mulf %121, %126 : vector<1x256xf32>
    %cst_53 = arith.constant 7.812500e-03 : f32
    %128 = vector.broadcast %cst_53 : f32 to vector<1x256xf32>
    %129 = arith.mulf %125, %128 : vector<1x256xf32>
    %130 = arith.mulf %127, %127 : vector<1x256xf32>
    %131 = arith.subf %129, %130 : vector<1x256xf32>
    %cst_54 = arith.constant 0.000000e+00 : f32
    %132 = vector.broadcast %cst_54 : f32 to vector<1x256xf32>
    %133 = arith.maximumf %131, %132 : vector<1x256xf32>
    %c0_55 = arith.constant 0 : index
    %c0_56 = arith.constant 0 : index
    %134 = vector.load %arg7[%c0_55, %c0_56] : memref<1x256xf32, #tpu.memory_space<vmem>>, vector<1x256xf32>
    %cst_57 = arith.constant 9.99999974E-6 : f32
    %135 = vector.broadcast %cst_57 : f32 to vector<1x256xf32>
    %136 = arith.addf %133, %135 : vector<1x256xf32>
    %137 = math.rsqrt %136 : vector<1x256xf32>
    %138 = arith.mulf %134, %137 : vector<1x256xf32>
    %c0_58 = arith.constant 0 : index
    %c0_59 = arith.constant 0 : index
    %139 = vector.load %arg11[%c0_58, %c0_59] : memref<1x256xf32, #tpu.memory_space<vmem>>, vector<1x256xf32>
    %140 = arith.mulf %127, %138 : vector<1x256xf32>
    %141 = arith.subf %139, %140 : vector<1x256xf32>
    %142 = vector.broadcast %138 : vector<1x256xf32> to vector<32x256xf32>
    %143 = arith.mulf %112, %142 : vector<32x256xf32>
    %144 = vector.broadcast %141 : vector<1x256xf32> to vector<32x256xf32>
    %145 = arith.addf %143, %144 : vector<32x256xf32>
    %cst_60 = arith.constant 0.000000e+00 : f32
    %146 = vector.broadcast %cst_60 : f32 to vector<32x256xf32>
    %147 = arith.maximumf %145, %146 : vector<32x256xf32>
    %c1_i32_61 = arith.constant 1 : i32
    %148 = tpu.memref_slice %arg18[%c1_i32_61] : memref<3x!tpu.dma_semaphore, #tpu.memory_space<semaphore_mem>> -> memref<1x!tpu.dma_semaphore, #tpu.memory_space<semaphore_mem>>
    %149 = tpu.memref_squeeze %148 : memref<1x!tpu.dma_semaphore, #tpu.memory_space<semaphore_mem>> -> memref<!tpu.dma_semaphore, #tpu.memory_space<semaphore_mem>>
    tpu.wait_dma2 semaphore(%149 : memref<!tpu.dma_semaphore, #tpu.memory_space<semaphore_mem>>) src(%arg4 : memref<3x256x128xbf16, #tpu.memory_space<any>>) dst(%arg16 : memref<3x256x128xbf16, #tpu.memory_space<vmem>>)
    %150 = arith.truncf %147 : vector<32x256xf32> to vector<32x256xbf16>
    %c1_i32_62 = arith.constant 1 : i32
    %151 = tpu.dynamic_rotate %147 by %c1_i32_62 dim 0 : vector<32x256xf32>, i32 -> vector<32x256xf32>
    %152 = vector.broadcast %26 : vector<32x1xf32> to vector<32x256xf32>
    %153 = arith.mulf %151, %152 : vector<32x256xf32>
    %154 = arith.truncf %153 : vector<32x256xf32> to vector<32x256xbf16>
    %c31_i32_63 = arith.constant 31 : i32
    %155 = tpu.dynamic_rotate %147 by %c31_i32_63 dim 0 : vector<32x256xf32>, i32 -> vector<32x256xf32>
    %156 = vector.broadcast %30 : vector<32x1xf32> to vector<32x256xf32>
    %157 = arith.mulf %155, %156 : vector<32x256xf32>
    %158 = arith.truncf %157 : vector<32x256xf32> to vector<32x256xbf16>
    %c0_64 = arith.constant 0 : index
    %c0_65 = arith.constant 0 : index
    %c0_66 = arith.constant 0 : index
    %159 = vector.load %arg16[%c0_64, %c0_65, %c0_66] : memref<3x256x128xbf16, #tpu.memory_space<vmem>>, vector<1x256x128xbf16>
    %160 = vector.shape_cast %159 : vector<1x256x128xbf16> to vector<256x128xbf16>
    %cst_67 = arith.constant dense<0.000000e+00> : vector<32x128xf32>
    %161 = tpu.matmul %154, %160, %cst_67 {dimension_numbers = #tpu.dot_dimension_numbers<[1], [0], [0], [1], [0, 0, 1, 1], [], []>} : vector<32x256xbf16>, vector<256x128xbf16>, vector<32x128xf32> -> vector<32x128xf32>
    %c1_68 = arith.constant 1 : index
    %c0_69 = arith.constant 0 : index
    %c0_70 = arith.constant 0 : index
    %162 = vector.load %arg16[%c1_68, %c0_69, %c0_70] : memref<3x256x128xbf16, #tpu.memory_space<vmem>>, vector<1x256x128xbf16>
    %163 = vector.shape_cast %162 : vector<1x256x128xbf16> to vector<256x128xbf16>
    %cst_71 = arith.constant dense<0.000000e+00> : vector<32x128xf32>
    %164 = tpu.matmul %150, %163, %cst_71 {dimension_numbers = #tpu.dot_dimension_numbers<[1], [0], [0], [1], [0, 0, 1, 1], [], []>} : vector<32x256xbf16>, vector<256x128xbf16>, vector<32x128xf32> -> vector<32x128xf32>
    %165 = arith.addf %161, %164 : vector<32x128xf32>
    %c2_72 = arith.constant 2 : index
    %c0_73 = arith.constant 0 : index
    %c0_74 = arith.constant 0 : index
    %166 = vector.load %arg16[%c2_72, %c0_73, %c0_74] : memref<3x256x128xbf16, #tpu.memory_space<vmem>>, vector<1x256x128xbf16>
    %167 = vector.shape_cast %166 : vector<1x256x128xbf16> to vector<256x128xbf16>
    %cst_75 = arith.constant dense<0.000000e+00> : vector<32x128xf32>
    %168 = tpu.matmul %158, %167, %cst_75 {dimension_numbers = #tpu.dot_dimension_numbers<[1], [0], [0], [1], [0, 0, 1, 1], [], []>} : vector<32x256xbf16>, vector<256x128xbf16>, vector<32x128xf32> -> vector<32x128xf32>
    %169 = arith.addf %165, %168 : vector<32x128xf32>
    %cst_76 = arith.constant dense<0.000000e+00> : vector<128xf32>
    %170 = vector.multi_reduction <add>, %169, %cst_76 [0] : vector<32x128xf32> to vector<128xf32>
    %171 = vector.shape_cast %170 : vector<128xf32> to vector<1x128xf32>
    %172 = arith.mulf %169, %169 : vector<32x128xf32>
    %cst_77 = arith.constant dense<0.000000e+00> : vector<128xf32>
    %173 = vector.multi_reduction <add>, %172, %cst_77 [0] : vector<32x128xf32> to vector<128xf32>
    %174 = vector.shape_cast %173 : vector<128xf32> to vector<1x128xf32>
    %c64_i32_78 = arith.constant 64 : i32
    %175 = tpu.dynamic_rotate %171 by %c64_i32_78 dim 1 : vector<1x128xf32>, i32 -> vector<1x128xf32>
    %176 = arith.addf %171, %175 : vector<1x128xf32>
    %c64_i32_79 = arith.constant 64 : i32
    %177 = tpu.dynamic_rotate %174 by %c64_i32_79 dim 1 : vector<1x128xf32>, i32 -> vector<1x128xf32>
    %178 = arith.addf %174, %177 : vector<1x128xf32>
    %cst_80 = arith.constant 1.562500e-02 : f32
    %179 = vector.broadcast %cst_80 : f32 to vector<1x128xf32>
    %180 = arith.mulf %176, %179 : vector<1x128xf32>
    %cst_81 = arith.constant 1.562500e-02 : f32
    %181 = vector.broadcast %cst_81 : f32 to vector<1x128xf32>
    %182 = arith.mulf %178, %181 : vector<1x128xf32>
    %183 = arith.mulf %180, %180 : vector<1x128xf32>
    %184 = arith.subf %182, %183 : vector<1x128xf32>
    %cst_82 = arith.constant 0.000000e+00 : f32
    %185 = vector.broadcast %cst_82 : f32 to vector<1x128xf32>
    %186 = arith.maximumf %184, %185 : vector<1x128xf32>
    %c0_83 = arith.constant 0 : index
    %c0_84 = arith.constant 0 : index
    %187 = vector.load %arg8[%c0_83, %c0_84] : memref<1x128xf32, #tpu.memory_space<vmem>>, vector<1x128xf32>
    %cst_85 = arith.constant 9.99999974E-6 : f32
    %188 = vector.broadcast %cst_85 : f32 to vector<1x128xf32>
    %189 = arith.addf %186, %188 : vector<1x128xf32>
    %190 = math.rsqrt %189 : vector<1x128xf32>
    %191 = arith.mulf %187, %190 : vector<1x128xf32>
    %c0_86 = arith.constant 0 : index
    %c0_87 = arith.constant 0 : index
    %192 = vector.load %arg12[%c0_86, %c0_87] : memref<1x128xf32, #tpu.memory_space<vmem>>, vector<1x128xf32>
    %193 = arith.mulf %180, %191 : vector<1x128xf32>
    %194 = arith.subf %192, %193 : vector<1x128xf32>
    %195 = vector.broadcast %191 : vector<1x128xf32> to vector<32x128xf32>
    %196 = arith.mulf %169, %195 : vector<32x128xf32>
    %197 = vector.broadcast %194 : vector<1x128xf32> to vector<32x128xf32>
    %198 = arith.addf %196, %197 : vector<32x128xf32>
    %cst_88 = arith.constant 0.000000e+00 : f32
    %199 = vector.broadcast %cst_88 : f32 to vector<32x128xf32>
    %200 = arith.maximumf %198, %199 : vector<32x128xf32>
    %c2_i32_89 = arith.constant 2 : i32
    %201 = tpu.memref_slice %arg18[%c2_i32_89] : memref<3x!tpu.dma_semaphore, #tpu.memory_space<semaphore_mem>> -> memref<1x!tpu.dma_semaphore, #tpu.memory_space<semaphore_mem>>
    %202 = tpu.memref_squeeze %201 : memref<1x!tpu.dma_semaphore, #tpu.memory_space<semaphore_mem>> -> memref<!tpu.dma_semaphore, #tpu.memory_space<semaphore_mem>>
    tpu.wait_dma2 semaphore(%202 : memref<!tpu.dma_semaphore, #tpu.memory_space<semaphore_mem>>) src(%arg5 : memref<3x128x128xbf16, #tpu.memory_space<any>>) dst(%arg17 : memref<3x128x128xbf16, #tpu.memory_space<vmem>>)
    %203 = arith.truncf %200 : vector<32x128xf32> to vector<32x128xbf16>
    %c1_i32_90 = arith.constant 1 : i32
    %204 = tpu.dynamic_rotate %200 by %c1_i32_90 dim 0 : vector<32x128xf32>, i32 -> vector<32x128xf32>
    %205 = vector.broadcast %26 : vector<32x1xf32> to vector<32x128xf32>
    %206 = arith.mulf %204, %205 : vector<32x128xf32>
    %207 = arith.truncf %206 : vector<32x128xf32> to vector<32x128xbf16>
    %c31_i32_91 = arith.constant 31 : i32
    %208 = tpu.dynamic_rotate %200 by %c31_i32_91 dim 0 : vector<32x128xf32>, i32 -> vector<32x128xf32>
    %209 = vector.broadcast %30 : vector<32x1xf32> to vector<32x128xf32>
    %210 = arith.mulf %208, %209 : vector<32x128xf32>
    %211 = arith.truncf %210 : vector<32x128xf32> to vector<32x128xbf16>
    %c0_92 = arith.constant 0 : index
    %c0_93 = arith.constant 0 : index
    %c0_94 = arith.constant 0 : index
    %212 = vector.load %arg17[%c0_92, %c0_93, %c0_94] : memref<3x128x128xbf16, #tpu.memory_space<vmem>>, vector<1x128x128xbf16>
    %213 = vector.shape_cast %212 : vector<1x128x128xbf16> to vector<128x128xbf16>
    %cst_95 = arith.constant dense<0.000000e+00> : vector<32x128xf32>
    %214 = tpu.matmul %207, %213, %cst_95 {dimension_numbers = #tpu.dot_dimension_numbers<[1], [0], [0], [1], [0, 0, 1, 1], [], []>} : vector<32x128xbf16>, vector<128x128xbf16>, vector<32x128xf32> -> vector<32x128xf32>
    %c1_96 = arith.constant 1 : index
    %c0_97 = arith.constant 0 : index
    %c0_98 = arith.constant 0 : index
    %215 = vector.load %arg17[%c1_96, %c0_97, %c0_98] : memref<3x128x128xbf16, #tpu.memory_space<vmem>>, vector<1x128x128xbf16>
    %216 = vector.shape_cast %215 : vector<1x128x128xbf16> to vector<128x128xbf16>
    %cst_99 = arith.constant dense<0.000000e+00> : vector<32x128xf32>
    %217 = tpu.matmul %203, %216, %cst_99 {dimension_numbers = #tpu.dot_dimension_numbers<[1], [0], [0], [1], [0, 0, 1, 1], [], []>} : vector<32x128xbf16>, vector<128x128xbf16>, vector<32x128xf32> -> vector<32x128xf32>
    %218 = arith.addf %214, %217 : vector<32x128xf32>
    %c2_100 = arith.constant 2 : index
    %c0_101 = arith.constant 0 : index
    %c0_102 = arith.constant 0 : index
    %219 = vector.load %arg17[%c2_100, %c0_101, %c0_102] : memref<3x128x128xbf16, #tpu.memory_space<vmem>>, vector<1x128x128xbf16>
    %220 = vector.shape_cast %219 : vector<1x128x128xbf16> to vector<128x128xbf16>
    %cst_103 = arith.constant dense<0.000000e+00> : vector<32x128xf32>
    %221 = tpu.matmul %211, %220, %cst_103 {dimension_numbers = #tpu.dot_dimension_numbers<[1], [0], [0], [1], [0, 0, 1, 1], [], []>} : vector<32x128xbf16>, vector<128x128xbf16>, vector<32x128xf32> -> vector<32x128xf32>
    %222 = arith.addf %218, %221 : vector<32x128xf32>
    %cst_104 = arith.constant dense<0.000000e+00> : vector<128xf32>
    %223 = vector.multi_reduction <add>, %222, %cst_104 [0] : vector<32x128xf32> to vector<128xf32>
    %224 = vector.shape_cast %223 : vector<128xf32> to vector<1x128xf32>
    %225 = arith.mulf %222, %222 : vector<32x128xf32>
    %cst_105 = arith.constant dense<0.000000e+00> : vector<128xf32>
    %226 = vector.multi_reduction <add>, %225, %cst_105 [0] : vector<32x128xf32> to vector<128xf32>
    %227 = vector.shape_cast %226 : vector<128xf32> to vector<1x128xf32>
    %cst_106 = arith.constant 3.125000e-02 : f32
    %228 = vector.broadcast %cst_106 : f32 to vector<1x128xf32>
    %229 = arith.mulf %224, %228 : vector<1x128xf32>
    %cst_107 = arith.constant 3.125000e-02 : f32
    %230 = vector.broadcast %cst_107 : f32 to vector<1x128xf32>
    %231 = arith.mulf %227, %230 : vector<1x128xf32>
    %232 = arith.mulf %229, %229 : vector<1x128xf32>
    %233 = arith.subf %231, %232 : vector<1x128xf32>
    %cst_108 = arith.constant 0.000000e+00 : f32
    %234 = vector.broadcast %cst_108 : f32 to vector<1x128xf32>
    %235 = arith.maximumf %233, %234 : vector<1x128xf32>
    %c0_109 = arith.constant 0 : index
    %c0_110 = arith.constant 0 : index
    %236 = vector.load %arg9[%c0_109, %c0_110] : memref<1x128xf32, #tpu.memory_space<vmem>>, vector<1x128xf32>
    %cst_111 = arith.constant 9.99999974E-6 : f32
    %237 = vector.broadcast %cst_111 : f32 to vector<1x128xf32>
    %238 = arith.addf %235, %237 : vector<1x128xf32>
    %239 = math.rsqrt %238 : vector<1x128xf32>
    %240 = arith.mulf %236, %239 : vector<1x128xf32>
    %c0_112 = arith.constant 0 : index
    %c0_113 = arith.constant 0 : index
    %241 = vector.load %arg13[%c0_112, %c0_113] : memref<1x128xf32, #tpu.memory_space<vmem>>, vector<1x128xf32>
    %242 = arith.mulf %229, %240 : vector<1x128xf32>
    %243 = arith.subf %241, %242 : vector<1x128xf32>
    %244 = vector.broadcast %240 : vector<1x128xf32> to vector<32x128xf32>
    %245 = arith.mulf %222, %244 : vector<32x128xf32>
    %246 = vector.broadcast %243 : vector<1x128xf32> to vector<32x128xf32>
    %247 = arith.addf %245, %246 : vector<32x128xf32>
    %cst_114 = arith.constant 0.000000e+00 : f32
    %248 = vector.broadcast %cst_114 : f32 to vector<32x128xf32>
    %249 = arith.maximumf %247, %248 : vector<32x128xf32>
    %c0_115 = arith.constant 0 : index
    %c0_116 = arith.constant 0 : index
    %250 = vector.load %arg14[%c0_115, %c0_116] : memref<32x128xf32, #tpu.memory_space<vmem>>, vector<32x128xf32>
    tpu.vector_store %arg14[%c0_115, %c0_116], %249 {strides = array<i32>} : memref<32x128xf32, #tpu.memory_space<vmem>>, vector<32x128xf32>,
    return
  }
  func.func @transform_0(%arg0: i32) -> (i32, i32) {
    %c0_i32 = arith.constant 0 : i32
    %c0_i32_0 = arith.constant 0 : i32
    %c0_i32_1 = arith.constant 0 : i32
    return %c0_i32, %c0_i32_0 : i32, i32
  }
  func.func @transform_1(%arg0: i32) -> (i32, i32, i32) {
    %c0_i32 = arith.constant 0 : i32
    %c0_i32_0 = arith.constant 0 : i32
    %c0_i32_1 = arith.constant 0 : i32
    %c0_i32_2 = arith.constant 0 : i32
    return %c0_i32, %c0_i32_0, %c0_i32_1 : i32, i32, i32
  }
  func.func @transform_5(%arg0: i32) -> (i32, i32) {
    %c0_i32 = arith.constant 0 : i32
    %c0_i32_0 = arith.constant 0 : i32
    %c0_i32_1 = arith.constant 0 : i32
    return %c0_i32, %c0_i32_0 : i32, i32
  }
  func.func @transform_6(%arg0: i32) -> (i32, i32) {
    %c0_i32 = arith.constant 0 : i32
    %c0_i32_0 = arith.constant 0 : i32
    %c0_i32_1 = arith.constant 0 : i32
    return %c0_i32, %c0_i32_0 : i32, i32
  }
  func.func @transform_7(%arg0: i32) -> (i32, i32) {
    %c0_i32 = arith.constant 0 : i32
    %c0_i32_0 = arith.constant 0 : i32
    %c0_i32_1 = arith.constant 0 : i32
    return %c0_i32, %c0_i32_0 : i32, i32
  }
  func.func @transform_8(%arg0: i32) -> (i32, i32) {
    %c0_i32 = arith.constant 0 : i32
    %c0_i32_0 = arith.constant 0 : i32
    %c0_i32_1 = arith.constant 0 : i32
    return %c0_i32, %c0_i32_0 : i32, i32
  }
  func.func @transform_9(%arg0: i32) -> (i32, i32) {
    %c0_i32 = arith.constant 0 : i32
    %c0_i32_0 = arith.constant 0 : i32
    %c0_i32_1 = arith.constant 0 : i32
    return %c0_i32, %c0_i32_0 : i32, i32
  }
  func.func @transform_10(%arg0: i32) -> (i32, i32) {
    %c0_i32 = arith.constant 0 : i32
    %c0_i32_0 = arith.constant 0 : i32
    %c0_i32_1 = arith.constant 0 : i32
    return %c0_i32, %c0_i32_0 : i32, i32
  }
  func.func @transform_11(%arg0: i32) -> (i32, i32) {
    %c0_i32 = arith.constant 0 : i32
    %c0_i32_0 = arith.constant 0 : i32
    %c0_i32_1 = arith.constant 0 : i32
    return %c0_i32, %c0_i32_0 : i32, i32
  }
  func.func @transform_12(%arg0: i32) -> (i32, i32) {
    %c0_i32 = arith.constant 0 : i32
    %c0_i32_0 = arith.constant 0 : i32
    %c0_i32_1 = arith.constant 0 : i32
    return %c0_i32, %c0_i32_0 : i32, i32
  }
  func.func @transform_13(%arg0: i32) -> (i32, i32) {
    %c0_i32 = arith.constant 0 : i32
    %c0_i32_0 = arith.constant 0 : i32
    %c0_i32_1 = arith.constant 0 : i32
    return %c0_i32, %c0_i32_0 : i32, i32
  }
}

</mosaic_0001>

<bundles_post_ra>
// kernel: forward.1
= control target key start
LH: loop header
LB: loop body
LE: loop exit
PB: predicated region body
PF: predicated region fallthrough
CT: control target
= control target key end

     0   :  { %18 = vsyncpa [#allocation7], 0  ;;  %s6401_s0 = inlined_call_operand.hbm [shape: f32[32,16], index: 0, kind: input, shape index: {}]   ;;  %s6402_s1 = inlined_call_operand.hbm [shape: bf16[3,16,512], index: 1, kind: input, shape index: {}]   ;;  %s6403_s2 = inlined_call_operand.hbm [shape: bf16[3,512,256], index: 2, kind: input, shape index: {}]   ;;  %s6404_s3 = inlined_call_operand.hbm [shape: bf16[3,256,128], index: 3, kind: input, shape index: {}]   ;;  %s6405_s4 = inlined_call_operand.hbm [shape: bf16[3,128,128], index: 4, kind: input, shape index: {}]   ;;  %s6406_s5 = inlined_call_operand.vmem [shape: f32[1,512], index: 5, kind: input, shape index: {}]   ;;  %s6407_s6 = inlined_call_operand.hbm [shape: f32[1,256], index: 6, kind: input, shape index: {}]   ;;  %s6408_s7 = inlined_call_operand.hbm [shape: f32[1,128], index: 7, kind: input, shape index: {}]   ;;  %s6409_s8 = inlined_call_operand.hbm [shape: f32[1,128], index: 8, kind: input, shape index: {}]   ;;  %s6410_s9 = inlined_call_operand.vmem [shape: f32[1,512], index: 9, kind: input, shape index: {}]   ;;  %s6411_s10 = inlined_call_operand.vmem [shape: f32[1,256], index: 10, kind: input, shape index: {}]   ;;  %s6412_s11 = inlined_call_operand.vmem [shape: f32[1,128], index: 11, kind: input, shape index: {}]   ;;  %s6413_s12 = inlined_call_operand.vmem [shape: f32[1,128], index: 12, kind: input, shape index: {}]   ;;  %s6414_s13 = inlined_call_operand.hbm [shape: f32[32,128], index: 13, kind: output, shape index: {}]  }
   0x1   :  { %19 = vsyncpa [#allocation10], 0 }
   0x2   :  { %20 = vsyncpa [#allocation13], 0  ;;  %s39_s27 = sshll.u32 %s6402_s1, 4  ;;  %s40_s27 = int_to_ptr.hbm [resolvable:$true] %s39_s27 }
   0x3   :  { %21 = vsyncpa [#allocation8], 0  ;;  %s5434_s28 = smov [#allocation9]   ;;  %s66_s15 = sshll.u32 %s6408_s7, 4  ;;  %s67_s15 = int_to_ptr.hbm [resolvable:$true] %s66_s15 }
   0x4   :  { %s41_s29 = sshll.u32 %s5434_s28, 4  ;;  %s5435_s16 = smov 256   ;;  %s42_s29 = int_to_ptr.vmem [resolvable:$true] %s41_s29 }
   0x5   :  { %s5436_s17 = smov 16   ;;  %s5437_s18 = smov [#allocation12]  }
   0x6   :  { %47 = dma.hbm_to_vmem [thread:$0]  %s40_s27, 1536, %s42_s29, [#allocation10], %s5435_s16, %s5435_s16, %s5436_s17  }
   0x7   :  { %s68_s19 = sshll.u32 %s5437_s18, 4  ;;  %s26_s22 = sshll.u32 %s6401_s0, 4  ;;  %s69_s19 = int_to_ptr.vmem [resolvable:$true] %s68_s19  ;;  %s27_s22 = int_to_ptr.hbm [resolvable:$true] %s26_s22 }
   0x8   :  { %71 = dma.hbm_to_vmem [thread:$0]  %s67_s15, 16, %s69_s19, [#allocation13]  }
   0x9   :  { %s5438_s1 = smov [#allocation6]   ;;  %s55_s7 = sshll.u32 %s6407_s6, 4  ;;  %s56_s7 = int_to_ptr.hbm [resolvable:$true] %s55_s7 }
   0xa   :  { %s28_s23 = sshll.u32 %s5438_s1, 4  ;;  %s5439_s26 = smov 128   ;;  %s29_s23 = int_to_ptr.vmem [resolvable:$true] %s28_s23 }
   0xb   :  { %s5440_s28 = smov 8   ;;  %s5441_s27 = smov [#allocation11]  }
   0xc   :  { %34 = dma.hbm_to_vmem [thread:$0]  %s27_s22, 512, %s29_s23, [#allocation7], %s5439_s26, %s5439_s26, %s5440_s28  }
   0xd   :  { %s57_s29 = sshll.u32 %s5441_s27, 4  ;;  %s77_s14 = sshll.u32 %s6409_s8, 4  ;;  %s58_s29 = int_to_ptr.vmem [resolvable:$true] %s57_s29  ;;  %s78_s14 = int_to_ptr.hbm [resolvable:$true] %s77_s14 }
   0xe   :  { %60 = dma.hbm_to_vmem [thread:$0]  %s56_s7, 32, %s58_s29, [#allocation10]  }
   0xf   :  { %s5442_s15 = smov [#allocation14]  }
  0x10   :  { %s79_s16 = sshll.u32 %s5442_s15, 4  ;;  %s80_s16 = int_to_ptr.vmem [resolvable:$true] %s79_s16 }
  0x11   :  { %82 = dma.hbm_to_vmem [thread:$0]  %s78_s14, 16, %s80_s16, [#allocation13]  }
  0x12   :  { %5420 = dma.done.wait [#allocation7], 512  }
  0x13   :  { %5421 = vsyncadd [#allocation7], 4294966784 }
  0x14   :  { %5422 = dma.done.wait [#allocation10], 1568  }
  0x15   :  { %5423 = vsyncadd [#allocation10], 4294965728 }
  0x16   :  { %5424 = dma.done.wait [#allocation13], 32  }
  0x17   :  { %5425 = vsyncadd [#allocation13], 4294967264  ;;  %v153_v0 = vlaneseq  ;;  %v3773_v2 = vld [vmem:[#allocation9 + $0x20] sm:$0xf]  ;;  %v4908_v3 = vld [vmem:[#allocation9 + $0x2c] sm:$0xf0] }
  0x18   :  { %v3781_v4 = vld [vmem:[#allocation9 + $0x28] sm:$0xf]  ;;  %v3774_v5 = vor.u32 %v4908_v3, %v3773_v2  ;;  %v4909_v6 = vld [vmem:[#allocation9 + $0x34] sm:$0xf0]  ;;  %v4907_v7 = vld [vmem:[#allocation9 + $0x2c] sm:$0xf] }
  0x19   :  { %v5538_v1 = vshrl.u32 %v153_v0, 7  ;;  %v3783_v8 = vld [vmem:[#allocation9 + $0x38] sm:$0xf0]  ;;  %v3782_v9 = vor.u32 %v4909_v6, %v3781_v4  ;;  %v5540_v11 = vld [vmem:[#allocation6] sm:$0xff]  ;;  %v5542_v12 = vld [vmem:[#allocation6 + $0x8] sm:$0xff]  ;;  %vm295_vm0 = vcmask 130048  }
  0x1a   :  { %v3786_v10 = vor.u32 %v4907_v7, %v3783_v8  ;;  %v5544_v13 = vld [vmem:[#allocation6 + $0x10] sm:$0xff]  ;;  %309 = vmatpush.bf16.msra.mxu0 %v3774_v5  ;;  %5178 = vmatpush.bf16.msra.mxu1 %v3774_v5  ;;  %v234_v14 = vpack.c.bf16 %v5542_v12, %v5540_v11  ;;  %v5548_v15 = vld [vmem:[#allocation6 + $0x18] sm:$0xff]  ;;  %v4906_v16 = vld [vmem:[#allocation9 + $0x24] sm:$0xf]  ;;  %v236_v20 = vrot.slane %v5540_v11, 7  ;;  %v237_v44 = vrot.slane %v5542_v12, 7 }
  0x1b   :  { %347 = vmatpush.bf16.msra.mxu2 %v3782_v9  ;;  %v5552_v17 = vpack.c.bf16 %v5548_v15, %v5544_v13  ;;  %v3775_v18 = vld [vmem:[#allocation9 + $0x30] sm:$0xf0]  ;;  %v162_v19 = vand.u32 15, %v5538_v1  ;;  %v239_v21 = vrot.slane %v5548_v15, 7  ;;  %v3805_v23 = vld [vmem:[#allocation9 + $0x8] sm:$0xf] }
  0x1c   :  { %366 = vmatpush.bf16.msra.mxu3 %v3786_v10  ;;  %v3778_v22 = vor.u32 %v4906_v16, %v3775_v18  ;;  %v4905_v24 = vld [vmem:[#allocation9 + $0x14] sm:$0xf0]  ;;  %v4903_v26 = vld [vmem:[#allocation9 + $0xc] sm:$0xf]  ;;  %v3807_v27 = vld [vmem:[#allocation9 + $0x18] sm:$0xf0] }
  0x1d   :  { %3787 = vmatmul.msk.bf16.vlgmr.msra.gmra.mxu0 %vm295_vm0, %v234_v14  ;;  %3788 = vmatmul.msk.bf16.vlgmr.msra.gmra.mxu1 %vm295_vm0, %v5552_v17  ;;  %v3806_v25 = vor.u32 %v4905_v24, %v3805_v23  ;;  %v3797_v28 = vld [vmem:[#allocation9] sm:$0xf]  ;;  %v3810_v29 = vor.u32 %v4903_v26, %v3807_v27  ;;  %v4904_v30 = vld [vmem:[#allocation9 + $0xc] sm:$0xf0]  ;;  %v4902_v31 = vld [vmem:[#allocation9 + $0x4] sm:$0xf] }
  0x1e   :  { %328 = vmatpush.bf16.msrb.mxu1 %v3778_v22  ;;  %3791 = vmatmul.msk.bf16.vlgmr.msra.gmra.mxu2 %vm295_vm0, %v234_v14  ;;  %v3799_v32 = vld [vmem:[#allocation9 + $0x10] sm:$0xf0]  ;;  %v3798_v33 = vor.u32 %v4904_v30, %v3797_v28  ;;  %vm5562_vm1 = vcmp.ne.s32.totalorder %v162_v19, 0  ;;  %vm240_vm2 = vcmp.lt.s32.totalorder %v5538_v1, 1  ;;  %v3829_v36 = vld [vmem:[#allocation9 + $0x48] sm:$0xf] }
  0x1f   :  { %3793 = vmatmul.msk.bf16.vlgmr.msra.gmra.mxu3 %vm295_vm0, %v234_v14  ;;  %449 = vmatpush.bf16.msrb.mxu2 %v3806_v25  ;;  %v3802_v35 = vor.u32 %v4902_v31, %v3799_v32  ;;  %v4913_v37 = vld [vmem:[#allocation9 + $0x54] sm:$0xf0]  ;;  %v3821_v39 = vld [vmem:[#allocation9 + $0x40] sm:$0xf]  ;;  %v4912_v40 = vld [vmem:[#allocation9 + $0x4c] sm:$0xf0]  ;;  %v244_v47 = vsel %vm240_vm2, %v239_v21, %v236_v20  ;;  %v243_v50 = vsel %vm240_vm2, %v236_v20, %v237_v44 }
  0x20   :  { %468 = vmatpush.bf16.msrb.mxu3 %v3810_v29  ;;  %v3830_v38 = vor.u32 %v4913_v37, %v3829_v36  ;;  %411 = vmatpush.bf16.msrb.mxu0 %v3798_v33  ;;  %v3822_v41 = vor.u32 %v4912_v40, %v3821_v39  ;;  %v4911_v42 = vld [vmem:[#allocation9 + $0x4c] sm:$0xf]  ;;  %v3831_v43 = vld [vmem:[#allocation9 + $0x58] sm:$0xf0]  ;;  %v5443_v45 = vmov 0.0   ;;  %v156_v51 = vadd.s32 16, %v5538_v1 }
  0x21   :  { %v5570_v46 = vsel %vm5562_vm1, 1.0, %v5443_v45  ;;  %v3834_v48 = vor.u32 %v4911_v42, %v3831_v43  ;;  %v238_v54 = vrot.slane %v5544_v13, 7  ;;  %v4910_v55 = vld [vmem:[#allocation9 + $0x44] sm:$0xf]  ;;  %v3823_v56 = vld [vmem:[#allocation9 + $0x50] sm:$0xf0] }
  0x22   :  { %430 = vmatpush.bf16.msra.mxu1 %v3802_v35  ;;  %v245_v49 = vmul.f32 %v5570_v46, %v244_v47  ;;  %v176_v53 = vand.u32 15, %v156_v51  ;;  %v3826_v57 = vor.u32 %v4910_v55, %v3823_v56  ;;  %v155_v62 = vadd.s32 8, %v5538_v1  ;;  %s5444_s6 = smov 64   ;;  %s119_s18 = sshll.u32 %s6403_s2, 4  ;;  %s120_s18 = int_to_ptr.hbm [resolvable:$true] %s119_s18 }
  0x23   :  { %556 = vmatpush.bf16.msra.mxu2 %v3830_v38  ;;  %v242_v59 = vsel %vm240_vm2, %v237_v44, %v238_v54  ;;  %v241_v61 = vsel %vm240_vm2, %v238_v54, %v239_v21  ;;  %v252_v3 = vrot.slane %v5542_v12, 1  ;;  %v253_v4 = vrot.slane %v5544_v13, 1  ;;  %s5445_s19 = smov [#allocation2]   ;;  %s133_s1 = sshll.u32 %s6404_s3, 4  ;;  %s134_s1 = int_to_ptr.hbm [resolvable:$true] %s133_s1 }
  0x24   :  { %518 = vmatpush.bf16.msra.mxu0 %v3822_v41  ;;  %575 = vmatpush.bf16.msra.mxu3 %v3834_v48  ;;  %v249_v52 = vpack.c.bf16 %v243_v50, %v245_v49  ;;  %vm208_vm3 = vcmp.ne.s32.totalorder %v176_v53, 0  ;;  %v169_v2 = vand.u32 15, %v155_v62  ;;  %vm255_vm5 = vcmp.lt.s32.totalorder %v5538_v1, 7  ;;  %s121_s20 = sshll.u32 %s5445_s19, 4  ;;  %s5446_s23 = smov [#allocation3]   ;;  %s122_s20 = int_to_ptr.vmem [resolvable:$true] %s121_s20 }
  0x25   :  { %v5585_v58 = vsel %vm208_vm3, 1.0, %v5443_v45  ;;  %v251_v5 = vrot.slane %v5540_v11, 1  ;;  %v257_v7 = vsel %vm255_vm5, %v252_v3, %v253_v4  ;;  %v157_v10 = vadd.s32 24, %v5538_v1  ;;  %124 = dma.hbm_to_vmem [thread:$0]  %s120_s18, 24576, %s122_s20, [#allocation5] }
  0x26   :  { %v247_v60 = vmul.f32 %v5585_v58, %v242_v59  ;;  %vm219_vm4 = vcmp.ne.s32.totalorder %v169_v2, 15  ;;  %v254_v11 = vrot.slane %v5548_v15, 1  ;;  %s135_s24 = sshll.u32 %s5446_s23, 4  ;;  %s147_s27 = sshll.u32 %s6405_s4, 4  ;;  %vm776_vm14 = vcmask 1040384   ;;  %s136_s24 = int_to_ptr.vmem [resolvable:$true] %s135_s24  ;;  %s148_s27 = int_to_ptr.hbm [resolvable:$true] %s147_s27 }
  0x27   :  { %v5602_v6 = vsel %vm219_vm4, 1.0, %v5443_v45  ;;  %v258_v9 = vsel %vm255_vm5, %v251_v5, %v252_v3  ;;  %v183_v13 = vand.u32 15, %v157_v10  ;;  %138 = dma.hbm_to_vmem [thread:$0]  %s134_s1, 6144, %s136_s24, [#allocation5 + $0x1]  ;;  %vm778_vm15 = vcmask 1042434  }
  0x28   :  { %v250_v63 = vpack.c.bf16 %v241_v61, %v247_v60  ;;  %v261_v8 = vmul.f32 %v5602_v6, %v257_v7  ;;  %v259_v16 = vsel %vm255_vm5, %v254_v11, %v251_v5  ;;  %v256_v18 = vsel %vm255_vm5, %v253_v4, %v254_v11  ;;  %s5447_s2 = smov [#allocation4]  }
  0x29   :  { %vm221_vm6 = vcmp.ne.s32.totalorder %v183_v13, 15  ;;  %s149_s29 = sshll.u32 %s5447_s2, 4  ;;  %s150_s29 = int_to_ptr.vmem [resolvable:$true] %s149_s29 }
  0x2a   :  { %v264_v12 = vpack.c.bf16 %v261_v8, %v258_v9  ;;  %152 = dma.hbm_to_vmem [thread:$0]  %s148_s27, 3072, %s150_s29, [#allocation5 + $0x2] }
  0x2d   :  { %3789 = vmatmul.msk.bf16.vlgmr.msrb.gmra.mxu1 %vm295_vm0, %v234_v14  ;;  %3811 = vmatmul.msk.bf16.vlgmr.msrb.gmra.mxu0 %vm295_vm0, %v249_v52  ;;  %v5615_v14 = vsel %vm221_vm6, 1.0, %v5443_v45 }
  0x2e   :  { %3792 = vmatmul.msk.bf16.gmra.mxu2 %vm295_vm0, %v5552_v17  ;;  %537 = vmatpush.bf16.msrb.mxu1 %v3826_v57 }
  0x2f   :  { %3794 = vmatmul.msk.bf16.gmra.mxu3 %vm295_vm0, %v5552_v17 }
  0x3d   :  { %3790 = vmatmul.msk.bf16.gmra.mxu1 %vm295_vm0, %v5552_v17  ;;  %3812 = vmatmul.msk.bf16.gmra.mxu0 %vm295_vm0, %v250_v63  ;;  %v263_v17 = vmul.f32 %v5615_v14, %v259_v16 }
  0x3e   :  { %3815 = vmatmul.msk.bf16.vlgmr.msrb.gmra.mxu2 %vm295_vm0, %v249_v52 }
  0x3f   :  { %3817 = vmatmul.msk.bf16.vlgmr.msrb.gmra.mxu3 %vm295_vm0, %v249_v52  ;;  %v265_v19 = vpack.c.bf16 %v263_v17, %v256_v18 }
  0x4d   :  { %3813 = vmatmul.msk.bf16.vlgmr.msra.gmra.mxu1 %vm295_vm0, %v249_v52  ;;  %3835 = vmatmul.msk.bf16.vlgmr.msra.gmra.mxu0 %vm295_vm0, %v264_v12 }
  0x4e   :  { %3816 = vmatmul.msk.bf16.gmra.mxu2 %vm295_vm0, %v250_v63 }
  0x4f   :  { %3818 = vmatmul.msk.bf16.gmra.mxu3 %vm295_vm0, %v250_v63 }
  0x5d   :  { %3814 = vmatmul.msk.bf16.gmra.mxu1 %vm295_vm0, %v250_v63  ;;  %3836 = vmatmul.msk.bf16.gmra.mxu0 %vm295_vm0, %v265_v19 }
  0x5e   :  { %3839 = vmatmul.msk.bf16.vlgmr.msra.gmra.mxu2 %vm295_vm0, %v264_v12 }
  0x5f   :  { %3841 = vmatmul.msk.bf16.vlgmr.msra.gmra.mxu3 %vm295_vm0, %v264_v12 }
  0x6d   :  { %3837 = vmatmul.msk.bf16.vlgmr.msrb.gmra.mxu1 %vm295_vm0, %v264_v12 }
  0x6e   :  { %3840 = vmatmul.msk.bf16.gmra.mxu2 %vm295_vm0, %v265_v19 }
  0x6f   :  { %3842 = vmatmul.msk.bf16.gmra.mxu3 %vm295_vm0, %v265_v19 }
  0x7d   :  { %3838 = vmatmul.msk.bf16.gmra.mxu1 %vm295_vm0, %v265_v19  ;;  %vm780_vm0 = vcmask 1041408  }
  0x9a   :  { %v311_v15 = vpop.f32.mrf.mxu0  ;;  %v316_v20 = vpop.f32.mrf.mxu1 }
  0xa1   :  { %v5630_v21 = vpop.f32.mrf.mxu2 }
  0xa2   :  { %v5632_v22 = vpop.f32.mrf.mxu3  ;;  %v313_v23 = vpop.f32.mrf.mxu0 }
  0xa3   :  { %v318_v24 = vpop.f32.mrf.mxu1 }
  0xa9   :  { %v5634_v25 = vpop.f32.mrf.mxu2 }
  0xaa   :  { %v370_v26 = vpop.f32.mrf.mxu3  ;;  %v413_v27 = vpop.f32.mrf.mxu0 }
  0xab   :  { %v5636_v28 = vpop.f32.mrf.mxu1  ;;  %v414_v54 = vadd.f32 %v413_v27, %v311_v15 }
  0xb1   :  { %v5638_v29 = vpop.f32.mrf.mxu2 }
  0xb2   :  { %v5640_v30 = vpop.f32.mrf.mxu3  ;;  %v415_v31 = vpop.f32.mrf.mxu0 }
  0xb3   :  { %v5642_v32 = vpop.f32.mrf.mxu1  ;;  %v416_v50 = vadd.f32 %v415_v31, %v313_v23 }
  0xb9   :  { %v5644_v33 = vpop.f32.mrf.mxu2 }
  0xba   :  { %v5646_v34 = vpop.f32.mrf.mxu3  ;;  %v418_v35 = vpop.f32.mrf.mxu0 }
  0xbb   :  { %v5648_v36 = vpop.f32.mrf.mxu1  ;;  %v419_v55 = vadd.f32 %v418_v35, %v316_v20 }
  0xc1   :  { %v5650_v37 = vpop.f32.mrf.mxu2 }
  0xc2   :  { %v470_v38 = vpop.f32.mrf.mxu3  ;;  %v420_v39 = vpop.f32.mrf.mxu0 }
  0xc3   :  { %v5652_v40 = vpop.f32.mrf.mxu1  ;;  %v421_v62 = vadd.f32 %v420_v39, %v318_v24 }
  0xc9   :  { %v453_v41 = vpop.f32.mrf.mxu2 }
  0xca   :  { %v472_v42 = vpop.f32.mrf.mxu3  ;;  %v520_v43 = vpop.f32.mrf.mxu0 }
  0xcb   :  { %v5654_v44 = vpop.f32.mrf.mxu1  ;;  %v5664_v59 = vadd.f32 %v520_v43, %v414_v54 }
  0xcd   :  { %v639_v63 = vmul.f32 %v5664_v59, %v5664_v59 }
  0xd1   :  { %v456_v45 = vpop.f32.mrf.mxu2 }
  0xd2   :  { %v475_v47 = vpop.f32.mrf.mxu3  ;;  %v522_v48 = vpop.f32.mrf.mxu0 }
  0xd3   :  { %v5656_v49 = vpop.f32.mrf.mxu1  ;;  %v5660_v56 = vadd.f32 %v522_v48, %v416_v50  ;;  %v473_v50 = vadd.f32 %v472_v42, %v370_v26  ;;  %v452_v26 = vadd.f32 %v5650_v37, %v5630_v21  ;;  %v457_v42 = vadd.f32 %v456_v45, %v5638_v29 }
  0xd4   :  { %v433_v21 = vadd.f32 %v5654_v44, %v5636_v28 }
  0xd5   :  { %v643_v61 = vmul.f32 %v5660_v56, %v5660_v56  ;;  %v603_v2 = vadd.f32 %v5660_v56, %v5664_v59 }
  0xd7   :  { %v655_v8 = vadd.f32 %v643_v61, %v639_v63  ;;  %v471_v61 = vadd.f32 %v470_v38, %v5632_v22 }
  0xd9   :  { %v458_v51 = vpop.f32.mrf.mxu2 }
  0xda   :  { %v5658_v52 = vpop.f32.mrf.mxu3  ;;  %v525_v53 = vpop.f32.mrf.mxu0  ;;  %v459_v29 = vadd.f32 %v458_v51, %v5644_v33 }
  0xdb   :  { %v5662_v57 = vpop.f32.mrf.mxu1  ;;  %v5666_v60 = vadd.f32 %v525_v53, %v419_v55 }
  0xdd   :  { %v647_v3 = vmul.f32 %v5666_v60, %v5666_v60  ;;  %v604_v9 = vadd.f32 %v603_v2, %v5666_v60 }
  0xdf   :  { %v656_v13 = vadd.f32 %v655_v8, %v647_v3  ;;  %v476_v3 = vadd.f32 %v475_v47, %v5640_v30 }
  0xe1   :  { %v558_v4 = vpop.f32.mrf.mxu2 }
  0xe2   :  { %v577_v5 = vpop.f32.mrf.mxu3  ;;  %v527_v7 = vpop.f32.mrf.mxu0  ;;  %v5706_v30 = vadd.f32 %v558_v4, %v452_v26 }
  0xe3   :  { %v5677_v10 = vpop.f32.mrf.mxu1  ;;  %v5679_v12 = vadd.f32 %v527_v7, %v421_v62  ;;  %v454_v62 = vadd.f32 %v453_v41, %v5634_v25  ;;  %v5698_v22 = vadd.f32 %v577_v5, %v471_v61  ;;  %v435_v5 = vadd.f32 %v5656_v49, %v5642_v32 }
  0xe4   :  { %v641_v51 = vmul.f32 %v5706_v30, %v5706_v30 }
  0xe5   :  { %v605_v11 = vadd.f32 %v604_v9, %v5679_v12  ;;  %v651_v16 = vmul.f32 %v5679_v12, %v5679_v12  ;;  %v642_v37 = vmul.f32 %v5698_v22, %v5698_v22  ;;  %v478_v9 = vadd.f32 %v5658_v52, %v5646_v34 }
  0xe7   :  { %v606_v17 = vrot.slane %v605_v11, 4  ;;  %v657_v18 = vadd.f32 %v656_v13, %v651_v16 }
  0xe9   :  { %v560_v19 = vpop.f32.mrf.mxu2  ;;  %v607_v15 = vadd.f32 %v606_v17, %v605_v11  ;;  %v658_v20 = vrot.slane %v657_v18, 4 }
  0xea   :  { %v579_v23 = vpop.f32.mrf.mxu3  ;;  %v5700_v25 = vadd.f32 %v560_v19, %v454_v62  ;;  %v438_v19 = vadd.f32 %v5662_v57, %v5648_v36 }
  0xeb   :  { %v539_v24 = vpop.f32.mrf.mxu1  ;;  %v608_v27 = vrot.slane %v607_v15, 2  ;;  %v659_v31 = vadd.f32 %v658_v20, %v657_v18  ;;  %v5688_v63 = vadd.f32 %v579_v23, %v473_v50 }
  0xec   :  { %v621_v45 = vadd.f32 %v5700_v25, %v5706_v30  ;;  %v645_v4 = vmul.f32 %v5700_v25, %v5700_v25  ;;  %v5743_v20 = vadd.f32 %v539_v24, %v433_v21 }
  0xed   :  { %v609_v35 = vadd.f32 %v608_v27, %v607_v15  ;;  %v660_v39 = vrot.slane %v659_v31, 2  ;;  %v646_v41 = vmul.f32 %v5688_v63, %v5688_v63  ;;  %v630_v28 = vadd.f32 %v5688_v63, %v5698_v22 }
  0xee   :  { %v673_v15 = vadd.f32 %v645_v4, %v641_v51 }
  0xef   :  { %v610_v43 = vrot.slane %v609_v35, 1  ;;  %v661_v48 = vadd.f32 %v660_v39, %v659_v31  ;;  %v682_v13 = vadd.f32 %v646_v41, %v642_v37 }
  0xf1   :  { %v563_v53 = vpop.f32.mrf.mxu2  ;;  %v5684_v54 = vadd.f32 %v610_v43, %v609_v35  ;;  %v662_v55 = vrot.slane %v661_v48, 1 }
  0xf2   :  { %v582_v2 = vpop.f32.mrf.mxu3  ;;  %v5710_v47 = vadd.f32 %v563_v53, %v457_v42 }
  0xf3   :  { %v541_v7 = vpop.f32.mrf.mxu1  ;;  %691 = vrot.lane.b32.xlu0 %v5684_v54, %s5444_s6  ;;  %v5693_v8 = vadd.f32 %v662_v55, %v661_v48  ;;  %v5702_v38 = vadd.f32 %v582_v2, %v476_v3  ;;  %v640_v55 = vmul.f32 %v5743_v20, %v5743_v20  ;;  %v440_v2 = vadd.f32 %v5677_v10, %v5652_v40 }
  0xf4   :  { %v622_v11 = vadd.f32 %v621_v45, %v5710_v47  ;;  %v649_v32 = vmul.f32 %v5710_v47, %v5710_v47  ;;  %v5737_v49 = vadd.f32 %v541_v7, %v435_v5 }
  0xf5   :  { %716 = vrot.lane.b32.xlu2 %v5693_v8, %s5444_s6  ;;  %v650_v33 = vmul.f32 %v5702_v38, %v5702_v38  ;;  %v631_v34 = vadd.f32 %v630_v28, %v5702_v38 }
  0xf6   :  { %v674_v50 = vadd.f32 %v673_v15, %v649_v32  ;;  %v644_v36 = vmul.f32 %v5737_v49, %v5737_v49  ;;  %v612_v3 = vadd.f32 %v5737_v49, %v5743_v20 }
  0xf7   :  { %v683_v27 = vadd.f32 %v682_v13, %v650_v33 }
  0xf8   :  { %v664_v42 = vadd.f32 %v644_v36, %v640_v55 }
  0xf9   :  { %v565_v44 = vpop.f32.mrf.mxu2 }
  0xfa   :  { %v5732_v16 = vadd.f32 %v565_v44, %v459_v29  ;;  %v584_v17 = vpop.f32.mrf.mxu3 }
  0xfb   :  { %v5739_v52 = vadd.f32 %v584_v17, %v478_v9  ;;  %v544_v18 = vpop.f32.mrf.mxu1 }
  0xfc   :  { %v623_v23 = vadd.f32 %v622_v11, %v5732_v16  ;;  %v653_v31 = vmul.f32 %v5732_v16, %v5732_v16  ;;  %v5751_v48 = vadd.f32 %v544_v18, %v438_v19 }
  0xfd   :  { %v632_v35 = vadd.f32 %v631_v34, %v5739_v52  ;;  %v654_v39 = vmul.f32 %v5739_v52, %v5739_v52 }
  0xfe   :  { %v624_v43 = vrot.slane %v623_v23, 4  ;;  %v675_v61 = vadd.f32 %v674_v50, %v653_v31  ;;  %v648_v7 = vmul.f32 %v5751_v48, %v5751_v48  ;;  %v613_v29 = vadd.f32 %v612_v3, %v5751_v48 }
  0xff   :  { %v633_v57 = vrot.slane %v632_v35, 4  ;;  %v684_v24 = vadd.f32 %v683_v27, %v654_v39 }
 0x100   :  { %v625_v53 = vadd.f32 %v624_v43, %v623_v23  ;;  %v676_v5 = vrot.slane %v675_v61, 4  ;;  %v665_v9 = vadd.f32 %v664_v42, %v648_v7  ;;  %v5785_v42 = vand.u32 127, %v153_v0 }
 0x101   :  { %v634_v62 = vadd.f32 %v633_v57, %v632_v35  ;;  %v685_v41 = vrot.slane %v684_v24, 4 }
 0x102   :  { %v626_v26 = vrot.slane %v625_v53, 2  ;;  %v677_v34 = vadd.f32 %v676_v5, %v675_v61  ;;  %vm701_vm7 = vcmp.lt.s32.totalorder %v5785_v42, 64 }
 0x103   :  { %v546_v21 = vpop.f32.mrf.mxu1  ;;  %v635_v4 = vrot.slane %v634_v62, 2  ;;  %v686_v33 = vadd.f32 %v685_v41, %v684_v24 }
 0x104   :  { %v5764_v37 = vadd.f32 %v546_v21, %v440_v2  ;;  %v627_v45 = vadd.f32 %v626_v26, %v625_v53  ;;  %v678_v35 = vrot.slane %v677_v34, 2 }
 0x105   :  { %v636_v11 = vadd.f32 %v635_v4, %v634_v62  ;;  %v687_v23 = vrot.slane %v686_v33, 2 }
 0x106   :  { %v614_v40 = vadd.f32 %v613_v29, %v5764_v37  ;;  %v652_v10 = vmul.f32 %v5764_v37, %v5764_v37  ;;  %v628_v28 = vrot.slane %v627_v45, 1  ;;  %v679_v53 = vadd.f32 %v678_v35, %v677_v34 }
 0x107   :  { %v637_v18 = vrot.slane %v636_v11, 1  ;;  %v688_v36 = vadd.f32 %v687_v23, %v686_v33 }
 0x108   :  { %v615_v44 = vrot.slane %v614_v40, 4  ;;  %v666_v51 = vadd.f32 %v665_v9, %v652_v10  ;;  %v629_v13 = vadd.f32 %v628_v28, %v627_v45  ;;  %v680_v62 = vrot.slane %v679_v53, 1 }
 0x109   :  { %v638_v39 = vadd.f32 %v637_v18, %v636_v11  ;;  %v689_v61 = vrot.slane %v688_v36, 1 }
 0x10a   :  { %v616_v17 = vadd.f32 %v615_v44, %v614_v40  ;;  %v667_v32 = vrot.slane %v666_v51, 4  ;;  %695 = vrot.lane.b32.xlu1 %v629_v13, %s5444_s6  ;;  %v681_v3 = vadd.f32 %v680_v62, %v679_v53 }
 0x10b   :  { %v690_v2 = vadd.f32 %v689_v61, %v688_v36 }
 0x10c   :  { %v617_v19 = vrot.slane %v616_v17, 2  ;;  %v668_v15 = vadd.f32 %v667_v32, %v666_v51 }
 0x10e   :  { %v618_v27 = vadd.f32 %v617_v19, %v616_v17  ;;  %v669_v31 = vrot.slane %v668_v15, 2 }
 0x110   :  { %v619_v43 = vrot.slane %v618_v27, 1  ;;  %v670_v50 = vadd.f32 %v669_v31, %v668_v15 }
 0x112   :  { %697 = vrot.lane.b32.xlu1 %v638_v39, %s5444_s6  ;;  %v620_v57 = vadd.f32 %v619_v43, %v618_v27  ;;  %v671_v24 = vrot.slane %v670_v50, 1 }
 0x114   :  { %693 = vrot.lane.b32.xlu0 %v620_v57, %s5444_s6  ;;  %v672_v55 = vadd.f32 %v671_v24, %v670_v50 }
 0x116   :  { %718 = vrot.lane.b32.xlu2 %v672_v55, %s5444_s6 }
 0x11a   :  { %722 = vrot.lane.b32.xlu1 %v690_v2, %s5444_s6 }
 0x11c   :  { %720 = vrot.lane.b32.xlu0 %v681_v3, %s5444_s6 }
 0x14f   :  { %v717_v41 = vpop.permute.xlu2 %716 }
 0x165   :  { %v692_v26 = vpop.permute.xlu0 %691 }
 0x170   :  { %v719_v33 = vpop.permute.xlu2 %718 }
 0x171   :  { %v726_v34 = vsel %vm701_vm7, %v717_v41, %v719_v33 }
 0x172   :  { %v729_v31 = vadd.f32 %v726_v34, %v672_v55 }
 0x17c   :  { %v696_v7 = vpop.permute.xlu1 %695 }
 0x184   :  { %v698_v21 = vpop.permute.xlu1 %697 }
 0x185   :  { %v702_v29 = vsel %vm701_vm7, %v696_v7, %v698_v21  ;;  %v705_v45 = vsel %vm701_vm7, %v698_v21, %v692_v26 }
 0x186   :  { %v694_v4 = vpop.permute.xlu0 %693  ;;  %v706_v0 = vadd.f32 %v705_v45, %v5684_v54  ;;  %v709_v40 = vadd.f32 %v702_v29, %v638_v39 }
 0x187   :  { %v703_v5 = vsel %vm701_vm7, %v694_v4, %v696_v7  ;;  %v704_v9 = vsel %vm701_vm7, %v692_v26, %v694_v4 }
 0x188   :  { %v707_v10 = vadd.f32 %v704_v9, %v620_v57  ;;  %v708_v28 = vadd.f32 %v703_v5, %v629_v13  ;;  %v710_v17 = vadd.f32 %v709_v40, %v706_v0 }
 0x18a   :  { %v712_v44 = vadd.f32 %v708_v28, %v707_v10  ;;  %v711_v51 = vadd.f32 %v707_v10, %v706_v0  ;;  %v713_v11 = vadd.f32 %v709_v40, %v708_v28 }
 0x18c   :  { %v723_v32 = vpop.permute.xlu1 %722  ;;  %v714_v19 = vadd.f32 %v712_v44, %v710_v17  ;;  %v715_v23 = vadd.f32 %v713_v11, %v711_v51 }
 0x18d   :  { %v727_v18 = vsel %vm701_vm7, %v723_v32, %v717_v41 }
 0x18e   :  { %v721_v15 = vpop.permute.xlu0 %720  ;;  %v728_v54 = vadd.f32 %v727_v18, %v5693_v8  ;;  %v738_v43 = vmul.f32 0.00390625, %v714_v19  ;;  %v739_v36 = vmul.f32 0.00390625, %v715_v23  ;;  %v748_v23 = vld [vmem:[%s6406_s5] sm:$0xf] }
 0x18f   :  { %v724_v13 = vsel %vm701_vm7, %v721_v15, %v723_v32  ;;  %v725_v27 = vsel %vm701_vm7, %v719_v33, %v721_v15 }
 0x190   :  { %v730_v35 = vadd.f32 %v725_v27, %v681_v3  ;;  %v731_v39 = vadd.f32 %v724_v13, %v690_v2  ;;  %v733_v57 = vadd.f32 %v729_v31, %v728_v54  ;;  %v742_v7 = vmul.f32 %v738_v43, %v738_v43 }
 0x191   :  { %v743_v26 = vmul.f32 %v739_v36, %v739_v36 }
 0x192   :  { %v734_v50 = vadd.f32 %v730_v35, %v729_v31  ;;  %v732_v24 = vadd.f32 %v731_v39, %v728_v54  ;;  %v735_v53 = vadd.f32 %v731_v39, %v730_v35 }
 0x194   :  { %v736_v61 = vadd.f32 %v734_v50, %v732_v24  ;;  %v737_v62 = vadd.f32 %v735_v53, %v733_v57 }
 0x196   :  { %v740_v8 = vmul.f32 0.00390625, %v736_v61  ;;  %v741_v41 = vmul.f32 0.00390625, %v737_v62 }
 0x198   :  { %v744_v21 = vsub.f32 %v740_v8, %v742_v7  ;;  %v745_v29 = vsub.f32 %v741_v41, %v743_v26  ;;  %v784_v41 = vld [vmem:[%s6410_s9] sm:$0xf] }
 0x19a   :  { %v746_v45 = vmax.f32 %v744_v21, 0.0  ;;  %v747_v4 = vmax.f32 %v745_v29, 0.0 }
 0x19c   :  { %v749_v5 = vadd.f32 1e-05, %v746_v45  ;;  %v750_v55 = vadd.f32 1e-05, %v747_v4 }
 0x19e   :  { %5194 = vrsqrt.f32 %v749_v5  ;;  %vm757_vm10 = vweird.f32 %v749_v5  ;;  %vm767_vm12 = vweird.f32 %v750_v55 }
 0x19f   :  { %5196 = vrsqrt.f32 %v750_v55 }
 0x1a4   :  { %v5195_v2 = vpop.eup %5194 }
 0x1a5   :  { %v5197_v3 = vpop.eup %5196  ;;  %v752_v9 = vmul.f32 %v5195_v2, %v749_v5  ;;  %vm758_vm8 = vweird.f32 %v5195_v2 }
 0x1a6   :  { %v762_v0 = vmul.f32 %v5197_v3, %v750_v55  ;;  %vm768_vm9 = vweird.f32 %v5197_v3  ;;  %vm759_vm11 = vmor %vm757_vm10, %vm758_vm8 }
 0x1a7   :  { %v753_v40 = vmul.f32 %v5195_v2, %v752_v9  ;;  %vm769_vm13 = vmor %vm767_vm12, %vm768_vm9 }
 0x1a8   :  { %v763_v10 = vmul.f32 %v5197_v3, %v762_v0 }
 0x1a9   :  { %v754_v28 = vmul.f32 0.5, %v753_v40 }
 0x1aa   :  { %v764_v33 = vmul.f32 0.5, %v763_v10 }
 0x1ab   :  { %v755_v44 = vsub.f32 1.5, %v754_v28 }
 0x1ac   :  { %v765_v51 = vsub.f32 1.5, %v764_v33 }
 0x1ad   :  { %v756_v11 = vmul.f32 %v5195_v2, %v755_v44 }
 0x1ae   :  { %v766_v17 = vmul.f32 %v5197_v3, %v765_v51 }
 0x1af   :  { %v760_v32 = vsel %vm759_vm11, %v5195_v2, %v756_v11 }
 0x1b0   :  { %v770_v34 = vsel %vm769_vm13, %v5197_v3, %v766_v17  ;;  %v774_v18 = vrot.slane %v760_v32, 6 }
 0x1b1   :  { %v773_v19 = vrot.slane %v770_v34, 7  ;;  %v775_v15 = vrot.slane %v770_v34, 5 }
 0x1b3   :  { %v777_v54 = vsel %vm776_vm14, %v760_v32, %v773_v19  ;;  %v779_v13 = vsel %vm778_vm15, %v774_v18, %v775_v15 }
 0x1b4   :  { %v781_v27 = vsel %vm780_vm0, %v777_v54, %v779_v13 }
 0x1b5   :  { %v783_v31 = vmul.f32 %v781_v27, %v748_v23 }
 0x1b7   :  { %v786_v35 = vperm.slane %v783_v31, 0  ;;  %v787_v39 = vperm.slane %v783_v31, 1  ;;  %v788_v50 = vperm.slane %v783_v31, 2  ;;  %v789_v57 = vperm.slane %v783_v31, 3 }
 0x1b9   :  { %v795_v24 = vmul.f32 %v787_v39, %v739_v36  ;;  %v796_v53 = vmul.f32 %v788_v50, %v738_v43  ;;  %v797_v61 = vmul.f32 %v789_v57, %v739_v36  ;;  %v794_v62 = vmul.f32 %v786_v35, %v738_v43 }
 0x1ba   :  { %v810_v45 = vmul.f32 %v786_v35, %v5664_v59  ;;  %v811_v4 = vmul.f32 %v787_v39, %v5743_v20  ;;  %v812_v36 = vmul.f32 %v788_v50, %v5706_v30  ;;  %v813_v43 = vmul.f32 %v789_v57, %v5698_v22 }
 0x1bb   :  { %v802_v7 = vrot.slane %v795_v24, 7  ;;  %v803_v26 = vrot.slane %v796_v53, 6  ;;  %v804_v8 = vrot.slane %v797_v61, 5  ;;  %v814_v55 = vmul.f32 %v786_v35, %v5660_v56 }
 0x1bc   :  { %v815_v3 = vmul.f32 %v787_v39, %v5737_v49  ;;  %v816_v9 = vmul.f32 %v788_v50, %v5700_v25  ;;  %v817_v0 = vmul.f32 %v789_v57, %v5688_v63  ;;  %v818_v40 = vmul.f32 %v786_v35, %v5666_v60 }
 0x1bd   :  { %v805_v21 = vsel %vm776_vm14, %v794_v62, %v802_v7  ;;  %v806_v29 = vsel %vm778_vm15, %v803_v26, %v804_v8  ;;  %v819_v59 = vmul.f32 %v787_v39, %v5751_v48  ;;  %v820_v20 = vmul.f32 %v788_v50, %v5710_v47 }
 0x1be   :  { %v807_v5 = vsel %vm780_vm0, %v805_v21, %v806_v29  ;;  %v821_v10 = vmul.f32 %v789_v57, %v5702_v38  ;;  %v822_v56 = vmul.f32 %v786_v35, %v5679_v12  ;;  %v823_v49 = vmul.f32 %v787_v39, %v5764_v37 }
 0x1bf   :  { %v809_v2 = vsub.f32 %v784_v41, %v807_v5  ;;  %v824_v25 = vmul.f32 %v788_v50, %v5732_v16  ;;  %v825_v63 = vmul.f32 %v789_v57, %v5739_v52 }
 0x1c1   :  { %v827_v30 = vperm.slane %v809_v2, 0  ;;  %v828_v28 = vperm.slane %v809_v2, 1  ;;  %v829_v22 = vperm.slane %v809_v2, 2  ;;  %v830_v33 = vperm.slane %v809_v2, 3 }
 0x1c3   :  { %v835_v44 = vadd.f32 %v827_v30, %v810_v45  ;;  %v836_v60 = vadd.f32 %v828_v28, %v811_v4  ;;  %v837_v51 = vadd.f32 %v829_v22, %v812_v36  ;;  %v838_v48 = vadd.f32 %v830_v33, %v813_v43 }
 0x1c4   :  { %v839_v11 = vadd.f32 %v827_v30, %v814_v55  ;;  %v840_v47 = vadd.f32 %v828_v28, %v815_v3  ;;  %v841_v17 = vadd.f32 %v829_v22, %v816_v9  ;;  %v842_v38 = vadd.f32 %v830_v33, %v817_v0 }
 0x1c5   :  { %v843_v32 = vadd.f32 %v827_v30, %v818_v40  ;;  %v844_v34 = vadd.f32 %v828_v28, %v819_v59  ;;  %v845_v18 = vadd.f32 %v829_v22, %v820_v20  ;;  %v846_v19 = vadd.f32 %v830_v33, %v821_v10 }
 0x1c6   :  { %v847_v15 = vadd.f32 %v827_v30, %v822_v56  ;;  %v848_v12 = vadd.f32 %v828_v28, %v823_v49  ;;  %v849_v23 = vadd.f32 %v829_v22, %v824_v25  ;;  %v850_v37 = vadd.f32 %v830_v33, %v825_v63 }
 0x1c7   :  { %v5834_v54 = vmax.f32 %v835_v44, 0.0  ;;  %v5836_v16 = vmax.f32 %v836_v60, 0.0  ;;  %v5838_v52 = vmax.f32 %v837_v51, 0.0  ;;  %v5840_v13 = vmax.f32 %v838_v48, 0.0 }
 0x1c8   :  { %v5842_v27 = vmax.f32 %v839_v11, 0.0  ;;  %v5844_v31 = vmax.f32 %v840_v47, 0.0  ;;  %v5846_v35 = vmax.f32 %v841_v17, 0.0  ;;  %v5848_v39 = vmax.f32 %v842_v38, 0.0 }
 0x1c9   :  { %v5850_v50 = vmax.f32 %v843_v32, 0.0  ;;  %v5852_v57 = vmax.f32 %v844_v34, 0.0  ;;  %v5854_v24 = vmax.f32 %v845_v18, 0.0  ;;  %v5856_v53 = vmax.f32 %v846_v19, 0.0 }
 0x1ca   :  { %v5858_v61 = vmax.f32 %v847_v15, 0.0  ;;  %v5860_v62 = vmax.f32 %v848_v12, 0.0  ;;  %v5862_v7 = vmax.f32 %v849_v23, 0.0  ;;  %v5864_v26 = vmax.f32 %v850_v37, 0.0 }
 0x1cb   :  { %5426 = dma.done.wait [#allocation5], 24576 }
 0x1cc   :  { %5427 = vsyncadd [#allocation5], 4294942720  ;;  %v3901_v8 = vld [vmem:[#allocation2 + $0x270] sm:$0xf]  ;;  %v4993_v41 = vld [vmem:[#allocation2 + $0x274] sm:$0xf0] }
 0x1cd   :  { %v3965_v21 = vld [vmem:[#allocation2 + $0x2f0] sm:$0xf]  ;;  %v3902_v29 = vor.u32 %v4993_v41, %v3901_v8  ;;  %v5009_v45 = vld [vmem:[#allocation2 + $0x2f4] sm:$0xf0]  ;;  %v3893_v3 = vld [vmem:[#allocation2 + $0x260] sm:$0xf] }
 0x1ce   :  { %v4029_v4 = vld [vmem:[#allocation2 + $0x370] sm:$0xf]  ;;  %v5025_v5 = vld [vmem:[#allocation2 + $0x374] sm:$0xf0]  ;;  %v3966_v36 = vor.u32 %v5009_v45, %v3965_v21  ;;  %v4991_v0 = vld [vmem:[#allocation2 + $0x264] sm:$0xf0] }
 0x1cf   :  { %v4030_v43 = vor.u32 %v5025_v5, %v4029_v4  ;;  %v4093_v55 = vld [vmem:[#allocation2 + $0x3f0] sm:$0xf]  ;;  %v5041_v2 = vld [vmem:[#allocation2 + $0x3f4] sm:$0xf0]  ;;  %1441 = vmatpush.bf16.msrb.mxu0 %v3902_v29  ;;  %v3957_v40 = vld [vmem:[#allocation2 + $0x2e0] sm:$0xf]  ;;  %v3894_v20 = vor.u32 %v4991_v0, %v3893_v3 }
 0x1d0   :  { %v4094_v9 = vor.u32 %v5041_v2, %v4093_v55  ;;  %v5007_v59 = vld [vmem:[#allocation2 + $0x2e4] sm:$0xf0]  ;;  %1460 = vmatpush.bf16.msra.mxu1 %v3966_v36  ;;  %v4021_v30 = vld [vmem:[#allocation2 + $0x360] sm:$0xf]  ;;  %v3885_v49 = vld [vmem:[#allocation2 + $0x250] sm:$0xf] }
 0x1d1   :  { %1479 = vmatpush.bf16.msrb.mxu2 %v4030_v43  ;;  %v3958_v10 = vor.u32 %v5007_v59, %v3957_v40  ;;  %v5023_v28 = vld [vmem:[#allocation2 + $0x364] sm:$0xf0]  ;;  %v4085_v22 = vld [vmem:[#allocation2 + $0x3e0] sm:$0xf]  ;;  %v4989_v25 = vld [vmem:[#allocation2 + $0x254] sm:$0xf0] }
 0x1d2   :  { %1498 = vmatpush.bf16.msrb.mxu3 %v4094_v9  ;;  %v4022_v33 = vor.u32 %v5023_v28, %v4021_v30  ;;  %v5039_v56 = vld [vmem:[#allocation2 + $0x3e4] sm:$0xf0]  ;;  %v3949_v44 = vld [vmem:[#allocation2 + $0x2d0] sm:$0xf]  ;;  %v5005_v60 = vld [vmem:[#allocation2 + $0x2d4] sm:$0xf0]  ;;  %v3886_v48 = vor.u32 %v4989_v25, %v3885_v49 }
 0x1d3   :  { %v4086_v63 = vor.u32 %v5039_v56, %v4085_v22  ;;  %v4013_v51 = vld [vmem:[#allocation2 + $0x350] sm:$0xf]  ;;  %1442 = vmatpush.bf16.msrb.mxu0 %v3894_v20  ;;  %v5021_v11 = vld [vmem:[#allocation2 + $0x354] sm:$0xf0]  ;;  %v3950_v38 = vor.u32 %v5005_v60, %v3949_v44  ;;  %v3877_v34 = vld [vmem:[#allocation2 + $0x240] sm:$0xf] }
 0x1d4   :  { %v4077_v47 = vld [vmem:[#allocation2 + $0x3d0] sm:$0xf]  ;;  %v5037_v17 = vld [vmem:[#allocation2 + $0x3d4] sm:$0xf0]  ;;  %1461 = vmatpush.bf16.msra.mxu1 %v3958_v10  ;;  %v4014_v32 = vor.u32 %v5021_v11, %v4013_v51  ;;  %v4987_v18 = vld [vmem:[#allocation2 + $0x244] sm:$0xf0] }
 0x1d5   :  { %1480 = vmatpush.bf16.msrb.mxu2 %v4022_v33  ;;  %v3941_v19 = vld [vmem:[#allocation2 + $0x2c0] sm:$0xf]  ;;  %v4078_v15 = vor.u32 %v5037_v17, %v4077_v47  ;;  %v5003_v12 = vld [vmem:[#allocation2 + $0x2c4] sm:$0xf0]  ;;  %v3878_v21 = vor.u32 %v4987_v18, %v3877_v34  ;;  %v3869_v4 = vld [vmem:[#allocation2 + $0x230] sm:$0xf] }
 0x1d6   :  { %1499 = vmatpush.bf16.msrb.mxu3 %v4086_v63  ;;  %v4005_v23 = vld [vmem:[#allocation2 + $0x340] sm:$0xf]  ;;  %v5019_v37 = vld [vmem:[#allocation2 + $0x344] sm:$0xf0]  ;;  %v3942_v29 = vor.u32 %v5003_v12, %v3941_v19  ;;  %v4985_v5 = vld [vmem:[#allocation2 + $0x234] sm:$0xf0] }
 0x1d7   :  { %v4069_v8 = vld [vmem:[#allocation2 + $0x3c0] sm:$0xf]  ;;  %v5035_v41 = vld [vmem:[#allocation2 + $0x3c4] sm:$0xf0]  ;;  %1443 = vmatpush.bf16.msrb.mxu0 %v3886_v48  ;;  %v4006_v45 = vor.u32 %v5019_v37, %v4005_v23  ;;  %v3933_v36 = vld [vmem:[#allocation2 + $0x2b0] sm:$0xf]  ;;  %v3870_v40 = vor.u32 %v4985_v5, %v3869_v4 }
 0x1d8   :  { %1462 = vmatpush.bf16.msra.mxu1 %v3950_v38  ;;  %v4070_v43 = vor.u32 %v5035_v41, %v4069_v8  ;;  %v5001_v55 = vld [vmem:[#allocation2 + $0x2b4] sm:$0xf0]  ;;  %v3997_v2 = vld [vmem:[#allocation2 + $0x330] sm:$0xf]  ;;  %v3861_v10 = vld [vmem:[#allocation2 + $0x220] sm:$0xf] }
 0x1d9   :  { %1481 = vmatpush.bf16.msrb.mxu2 %v4014_v32  ;;  %v5017_v3 = vld [vmem:[#allocation2 + $0x334] sm:$0xf0]  ;;  %v4061_v9 = vld [vmem:[#allocation2 + $0x3b0] sm:$0xf]  ;;  %v3934_v59 = vor.u32 %v5001_v55, %v3933_v36  ;;  %v4983_v30 = vld [vmem:[#allocation2 + $0x224] sm:$0xf0] }
 0x1da   :  { %1500 = vmatpush.bf16.msrb.mxu3 %v4078_v15  ;;  %v5033_v0 = vld [vmem:[#allocation2 + $0x3b4] sm:$0xf0]  ;;  %v3998_v20 = vor.u32 %v5017_v3, %v3997_v2  ;;  %v3925_v28 = vld [vmem:[#allocation2 + $0x2a0] sm:$0xf]  ;;  %v4999_v33 = vld [vmem:[#allocation2 + $0x2a4] sm:$0xf0]  ;;  %v3862_v44 = vor.u32 %v4983_v30, %v3861_v10 }
 0x1db   :  { %1444 = vmatpush.bf16.msrb.mxu0 %v3878_v21  ;;  %v4062_v22 = vor.u32 %v5033_v0, %v4061_v9  ;;  %v3989_v56 = vld [vmem:[#allocation2 + $0x320] sm:$0xf]  ;;  %v5015_v49 = vld [vmem:[#allocation2 + $0x324] sm:$0xf0]  ;;  %v3926_v60 = vor.u32 %v4999_v33, %v3925_v28  ;;  %v3853_v48 = vld [vmem:[#allocation2 + $0x210] sm:$0xf] }
 0x1dc   :  { %1463 = vmatpush.bf16.msra.mxu1 %v3942_v29  ;;  %v4053_v25 = vld [vmem:[#allocation2 + $0x3a0] sm:$0xf]  ;;  %v5031_v63 = vld [vmem:[#allocation2 + $0x3a4] sm:$0xf0]  ;;  %v3990_v51 = vor.u32 %v5015_v49, %v3989_v56  ;;  %v4981_v11 = vld [vmem:[#allocation2 + $0x214] sm:$0xf0] }
 0x1dd   :  { %1482 = vmatpush.bf16.msrb.mxu2 %v4006_v45  ;;  %v3917_v47 = vld [vmem:[#allocation2 + $0x290] sm:$0xf]  ;;  %v4054_v17 = vor.u32 %v5031_v63, %v4053_v25  ;;  %v4997_v38 = vld [vmem:[#allocation2 + $0x294] sm:$0xf0]  ;;  %v3854_v15 = vor.u32 %v4981_v11, %v3853_v48  ;;  %v3845_v12 = vld [vmem:[#allocation2 + $0x200] sm:$0xf]  ;;  %v5872_v63 = vpack.c.bf16 %v5844_v31, %v5836_v16  ;;  %v5880_v48 = vpack.c.bf16 %v5848_v39, %v5840_v13 }
 0x1de   :  { %1501 = vmatpush.bf16.msrb.mxu3 %v4070_v43  ;;  %v3981_v32 = vld [vmem:[#allocation2 + $0x310] sm:$0xf]  ;;  %v5013_v34 = vld [vmem:[#allocation2 + $0x314] sm:$0xf0]  ;;  %v3918_v23 = vor.u32 %v4997_v38, %v3917_v47  ;;  %v4979_v8 = vld [vmem:[#allocation2 + $0x204] sm:$0xf0] }
 0x1df   :  { %1445 = vmatpush.bf16.msrb.mxu0 %v3870_v40  ;;  %v4045_v18 = vld [vmem:[#allocation2 + $0x390] sm:$0xf]  ;;  %v5029_v19 = vld [vmem:[#allocation2 + $0x394] sm:$0xf0]  ;;  %v3982_v37 = vor.u32 %v5013_v34, %v3981_v32  ;;  %v3909_v41 = vld [vmem:[#allocation2 + $0x280] sm:$0xf]  ;;  %v3846_v2 = vor.u32 %v4979_v8, %v3845_v12 }
 0x1e0   :  { %1464 = vmatpush.bf16.msra.mxu1 %v3934_v59  ;;  %v4995_v21 = vld [vmem:[#allocation2 + $0x284] sm:$0xf0]  ;;  %v4046_v29 = vor.u32 %v5029_v19, %v4045_v18  ;;  %v3973_v45 = vld [vmem:[#allocation2 + $0x300] sm:$0xf]  ;;  %v5024_v43 = vld [vmem:[#allocation2 + $0x374] sm:$0xf] }
 0x1e1   :  { %1483 = vmatpush.bf16.msrb.mxu2 %v3998_v20  ;;  %v5011_v4 = vld [vmem:[#allocation2 + $0x304] sm:$0xf0]  ;;  %v4037_v5 = vld [vmem:[#allocation2 + $0x380] sm:$0xf]  ;;  %v4031_v55 = vld [vmem:[#allocation2 + $0x378] sm:$0xf0]  ;;  %v3910_v0 = vor.u32 %v4995_v21, %v3909_v41 }
 0x1e2   :  { %1502 = vmatpush.bf16.msrb.mxu3 %v4062_v22  ;;  %v5027_v36 = vld [vmem:[#allocation2 + $0x384] sm:$0xf0]  ;;  %v5008_v3 = vld [vmem:[#allocation2 + $0x2f4] sm:$0xf]  ;;  %v3967_v9 = vld [vmem:[#allocation2 + $0x2f8] sm:$0xf0]  ;;  %v3974_v40 = vor.u32 %v5011_v4, %v3973_v45  ;;  %v4034_v20 = vor.u32 %v5024_v43, %v4031_v55  ;;  %v5868_v22 = vpack.c.bf16 %v5842_v27, %v5834_v54 }
 0x1e3   :  { %1446 = vmatpush.bf16.msrb.mxu0 %v3862_v44  ;;  %v4038_v59 = vor.u32 %v5027_v36, %v4037_v5  ;;  %v4992_v10 = vld [vmem:[#allocation2 + $0x274] sm:$0xf]  ;;  %v3903_v30 = vld [vmem:[#allocation2 + $0x278] sm:$0xf0]  ;;  %v3970_v33 = vor.u32 %v5008_v3, %v3967_v9  ;;  %v5022_v49 = vld [vmem:[#allocation2 + $0x364] sm:$0xf]  ;;  %v5876_v44 = vpack.c.bf16 %v5846_v35, %v5838_v52 }
 0x1e4   :  { %1465 = vmatpush.bf16.msra.mxu1 %v3926_v60  ;;  %v5040_v28 = vld [vmem:[#allocation2 + $0x3f4] sm:$0xf]  ;;  %v4095_v56 = vld [vmem:[#allocation2 + $0x3f8] sm:$0xf0]  ;;  %v4023_v25 = vld [vmem:[#allocation2 + $0x368] sm:$0xf0]  ;;  %v3906_v11 = vor.u32 %v4992_v10, %v3903_v30 }
 0x1e5   :  { %1484 = vmatpush.bf16.msrb.mxu2 %v3990_v51  ;;  %v5006_v60 = vld [vmem:[#allocation2 + $0x2e4] sm:$0xf]  ;;  %v3959_v51 = vld [vmem:[#allocation2 + $0x2e8] sm:$0xf0]  ;;  %v4098_v47 = vor.u32 %v5040_v28, %v4095_v56  ;;  %v4015_v12 = vld [vmem:[#allocation2 + $0x358] sm:$0xf0] }
 0x1e6   :  { %1503 = vmatpush.bf16.msrb.mxu3 %v4054_v17  ;;  %v4026_v17 = vor.u32 %v5022_v49, %v4023_v25  ;;  %v4990_v38 = vld [vmem:[#allocation2 + $0x264] sm:$0xf]  ;;  %v3895_v32 = vld [vmem:[#allocation2 + $0x268] sm:$0xf0]  ;;  %v3962_v18 = vor.u32 %v5006_v60, %v3959_v51  ;;  %v3887_v45 = vld [vmem:[#allocation2 + $0x258] sm:$0xf0] }
 0x1e7   :  { %1447 = vmatpush.bf16.msrb.mxu0 %v3854_v15  ;;  %v5038_v34 = vld [vmem:[#allocation2 + $0x3e4] sm:$0xf]  ;;  %v4087_v19 = vld [vmem:[#allocation2 + $0x3e8] sm:$0xf0]  ;;  %v5020_v15 = vld [vmem:[#allocation2 + $0x354] sm:$0xf]  ;;  %v3898_v8 = vor.u32 %v4990_v38, %v3895_v32  ;;  %v5888_v32 = vpack.c.bf16 %v5858_v61, %v5850_v50 }
 0x1e8   :  { %1466 = vmatpush.bf16.msra.mxu1 %v3918_v23  ;;  %v5004_v23 = vld [vmem:[#allocation2 + $0x2d4] sm:$0xf]  ;;  %v4090_v41 = vor.u32 %v5038_v34, %v4087_v19  ;;  %v4018_v21 = vor.u32 %v5020_v15, %v4015_v12  ;;  %v4079_v36 = vld [vmem:[#allocation2 + $0x3d8] sm:$0xf0]  ;;  %v5018_v43 = vld [vmem:[#allocation2 + $0x344] sm:$0xf]  ;;  %v5892_v12 = vpack.c.bf16 %v5860_v62, %v5852_v57 }
 0x1e9   :  { %1485 = vmatpush.bf16.msrb.mxu2 %v3982_v37  ;;  %v3951_v37 = vld [vmem:[#allocation2 + $0x2d8] sm:$0xf0]  ;;  %v5036_v4 = vld [vmem:[#allocation2 + $0x3d4] sm:$0xf]  ;;  %v4007_v55 = vld [vmem:[#allocation2 + $0x348] sm:$0xf0] }
 0x1ea   :  { %1504 = vmatpush.bf16.msrb.mxu3 %v4046_v29  ;;  %v4988_v29 = vld [vmem:[#allocation2 + $0x254] sm:$0xf]  ;;  %v3954_v5 = vor.u32 %v5004_v23, %v3951_v37  ;;  %v3943_v3 = vld [vmem:[#allocation2 + $0x2c8] sm:$0xf0]  ;;  %v5034_v10 = vld [vmem:[#allocation2 + $0x3c4] sm:$0xf]  ;;  %v5896_v23 = vpack.c.bf16 %v5862_v7, %v5854_v24 }
 0x1eb   :  { %1448 = vmatpush.bf16.msrb.mxu0 %v3846_v2  ;;  %v5002_v2 = vld [vmem:[#allocation2 + $0x2c4] sm:$0xf]  ;;  %v3890_v9 = vor.u32 %v4988_v29, %v3887_v45  ;;  %v4071_v28 = vld [vmem:[#allocation2 + $0x3c8] sm:$0xf0]  ;;  %v3999_v56 = vld [vmem:[#allocation2 + $0x338] sm:$0xf0] }
 0x1ec   :  { %1467 = vmatpush.bf16.msra.mxu1 %v3910_v0  ;;  %v4082_v0 = vor.u32 %v5036_v4, %v4079_v36  ;;  %v3946_v30 = vor.u32 %v5002_v2, %v3943_v3  ;;  %v5000_v49 = vld [vmem:[#allocation2 + $0x2b4] sm:$0xf]  ;;  %v3935_v25 = vld [vmem:[#allocation2 + $0x2b8] sm:$0xf0]  ;;  %v4074_v51 = vor.u32 %v5034_v10, %v4071_v28  ;;  %v5014_v19 = vld [vmem:[#allocation2 + $0x324] sm:$0xf] }
 0x1ed   :  { %1486 = vmatpush.bf16.msrb.mxu2 %v3974_v40  ;;  %v4010_v40 = vor.u32 %v5018_v43, %v4007_v55  ;;  %v5032_v38 = vld [vmem:[#allocation2 + $0x3b4] sm:$0xf]  ;;  %v3938_v34 = vor.u32 %v5000_v49, %v3935_v25  ;;  %v3991_v15 = vld [vmem:[#allocation2 + $0x328] sm:$0xf0]  ;;  %v4998_v37 = vld [vmem:[#allocation2 + $0x2a4] sm:$0xf] }
 0x1ee   :  { %1505 = vmatpush.bf16.msrb.mxu3 %v4038_v59  ;;  %1449 = vmatmul.bf16.vlgmr.msrb.gmra.mxu0 %v5868_v22  ;;  %v4986_v59 = vld [vmem:[#allocation2 + $0x244] sm:$0xf]  ;;  %v3994_v45 = vor.u32 %v5014_v19, %v3991_v15  ;;  %v4055_v55 = vld [vmem:[#allocation2 + $0x3a8] sm:$0xf0]  ;;  %v5012_v2 = vld [vmem:[#allocation2 + $0x314] sm:$0xf] }
 0x1ef   :  { %1468 = vmatmul.bf16.vlgmr.msra.gmra.mxu1 %v5872_v63  ;;  %1517 = vmatpush.bf16.msra.mxu0 %v3906_v11  ;;  %v4982_v4 = vld [vmem:[#allocation2 + $0x224] sm:$0xf]  ;;  %v3983_v3 = vld [vmem:[#allocation2 + $0x318] sm:$0xf0]  ;;  %v5028_v28 = vld [vmem:[#allocation2 + $0x394] sm:$0xf] }
 0x1f0   :  { %1536 = vmatpush.bf16.msrb.mxu1 %v3970_v33  ;;  %1487 = vmatmul.bf16.vlgmr.msrb.gmra.mxu2 %v5876_v44  ;;  %v5016_v33 = vld [vmem:[#allocation2 + $0x334] sm:$0xf]  ;;  %v5030_v36 = vld [vmem:[#allocation2 + $0x3a4] sm:$0xf]  ;;  %v3986_v10 = vor.u32 %v5012_v2, %v3983_v3  ;;  %v3975_v25 = vld [vmem:[#allocation2 + $0x308] sm:$0xf0] }
 0x1f1   :  { %1555 = vmatpush.bf16.msra.mxu2 %v4034_v20  ;;  %1506 = vmatmul.bf16.vlgmr.msrb.gmra.mxu3 %v5880_v48  ;;  %v3879_v20 = vld [vmem:[#allocation2 + $0x248] sm:$0xf0]  ;;  %v4002_v11 = vor.u32 %v5016_v33, %v3999_v56  ;;  %v4047_v33 = vld [vmem:[#allocation2 + $0x398] sm:$0xf0]  ;;  %v5010_v49 = vld [vmem:[#allocation2 + $0x304] sm:$0xf] }
 0x1f2   :  { %1574 = vmatpush.bf16.msra.mxu3 %v4098_v47  ;;  %v3882_v60 = vor.u32 %v4986_v59, %v3879_v20  ;;  %v4984_v47 = vld [vmem:[#allocation2 + $0x234] sm:$0xf]  ;;  %v4058_v20 = vor.u32 %v5030_v36, %v4055_v55  ;;  %v4050_v19 = vor.u32 %v5028_v28, %v4047_v33  ;;  %v3978_v15 = vor.u32 %v5010_v49, %v3975_v25  ;;  %v4349_v36 = vld [vmem:[#allocation2 + $0x1f0] sm:$0xf]  ;;  %v4977_v55 = vld [vmem:[#allocation2 + $0x1f4] sm:$0xf0] }
 0x1f3   :  { %1518 = vmatpush.bf16.msra.mxu0 %v3898_v8  ;;  %v3927_v8 = vld [vmem:[#allocation2 + $0x2a8] sm:$0xf0]  ;;  %v4980_v59 = vld [vmem:[#allocation2 + $0x214] sm:$0xf]  ;;  %v4277_v2 = vld [vmem:[#allocation2 + $0x160] sm:$0xf] }
 0x1f4   :  { %1537 = vmatpush.bf16.msrb.mxu1 %v3962_v18  ;;  %v4063_v18 = vld [vmem:[#allocation2 + $0x3b8] sm:$0xf0]  ;;  %v3930_v43 = vor.u32 %v4998_v37, %v3927_v8  ;;  %v3847_v37 = vld [vmem:[#allocation2 + $0x208] sm:$0xf0]  ;;  %v5026_v8 = vld [vmem:[#allocation2 + $0x384] sm:$0xf] }
 0x1f5   :  { %1556 = vmatpush.bf16.msra.mxu2 %v4026_v17  ;;  %v3871_v17 = vld [vmem:[#allocation2 + $0x238] sm:$0xf0]  ;;  %v4066_v29 = vor.u32 %v5032_v38, %v4063_v18  ;;  %v4978_v38 = vld [vmem:[#allocation2 + $0x204] sm:$0xf]  ;;  %v4945_v18 = vld [vmem:[#allocation2 + $0xf4] sm:$0xf0] }
 0x1f6   :  { %1575 = vmatpush.bf16.msra.mxu3 %v4090_v41  ;;  %v5900_v41 = vpack.c.bf16 %v5864_v26, %v5856_v53  ;;  %v4959_v3 = vld [vmem:[#allocation2 + $0x164] sm:$0xf0]  ;;  %v4213_v28 = vld [vmem:[#allocation2 + $0xe0] sm:$0xf]  ;;  %v4269_v25 = vld [vmem:[#allocation2 + $0x150] sm:$0xf] }
 0x1f7   :  { %1519 = vmatpush.bf16.msra.mxu0 %v3890_v9  ;;  %v4996_v9 = vld [vmem:[#allocation2 + $0x294] sm:$0xf]  ;;  %v4943_v33 = vld [vmem:[#allocation2 + $0xe4] sm:$0xf0] }
 0x1f8   :  { %1538 = vmatpush.bf16.msrb.mxu1 %v3954_v5  ;;  %v3863_v5 = vld [vmem:[#allocation2 + $0x228] sm:$0xf0]  ;;  %v4975_v49 = vld [vmem:[#allocation2 + $0x1e4] sm:$0xf0] }
 0x1f9   :  { %1557 = vmatpush.bf16.msra.mxu2 %v4018_v21  ;;  %v3874_v21 = vor.u32 %v4984_v47, %v3871_v17  ;;  %v4961_v47 = vld [vmem:[#allocation2 + $0x174] sm:$0xf0] }
 0x1fa   :  { %1576 = vmatpush.bf16.msra.mxu3 %v4082_v0  ;;  %v3919_v0 = vld [vmem:[#allocation2 + $0x298] sm:$0xf0] }
 0x1fb   :  { %1520 = vmatpush.bf16.msra.mxu0 %v3882_v60  ;;  %v3922_v56 = vor.u32 %v4996_v9, %v3919_v0  ;;  %v4994_v60 = vld [vmem:[#allocation2 + $0x284] sm:$0xf]  ;;  %v3850_v9 = vor.u32 %v4978_v38, %v3847_v37  ;;  %v4973_v37 = vld [vmem:[#allocation2 + $0x1d4] sm:$0xf0] }
 0x1fc   :  { %1539 = vmatpush.bf16.msrb.mxu1 %v3946_v30  ;;  %v3855_v30 = vld [vmem:[#allocation2 + $0x218] sm:$0xf0] }
 0x1fd   :  { %1558 = vmatpush.bf16.msra.mxu2 %v4010_v40  ;;  %v3866_v40 = vor.u32 %v4982_v4, %v3863_v5  ;;  %v3858_v17 = vor.u32 %v4980_v59, %v3855_v30  ;;  %v4157_v4 = vld [vmem:[#allocation2 + $0x70] sm:$0xf]  ;;  %v4929_v5 = vld [vmem:[#allocation2 + $0x74] sm:$0xf0]  ;;  %v4149_v59 = vld [vmem:[#allocation2 + $0x60] sm:$0xf]  ;;  %v4278_v30 = vor.u32 %v4959_v3, %v4277_v2 }
 0x1fe   :  { %1577 = vmatpush.bf16.msra.mxu3 %v4074_v51  ;;  %1454 = vmatmul.bf16.gmra.mxu0 %v5888_v32  ;;  %v3911_v51 = vld [vmem:[#allocation2 + $0x288] sm:$0xf0]  ;;  %v4971_v2 = vld [vmem:[#allocation2 + $0x1c4] sm:$0xf0]  ;;  %v4253_v3 = vld [vmem:[#allocation2 + $0x130] sm:$0xf] }
 0x1ff   :  { %1473 = vmatmul.bf16.gmra.mxu1 %v5892_v12  ;;  %1521 = vmatpush.bf16.msra.mxu0 %v3874_v21  ;;  %v4039_v21 = vld [vmem:[#allocation2 + $0x388] sm:$0xf0] }
 0x200   :  { %1540 = vmatpush.bf16.msrb.mxu1 %v3938_v34  ;;  %1492 = vmatmul.bf16.gmra.mxu2 %v5896_v23  ;;  %v4221_v34 = vld [vmem:[#allocation2 + $0xf0] sm:$0xf]  ;;  %v4042_v0 = vor.u32 %v5026_v8, %v4039_v21  ;;  %v4261_v8 = vld [vmem:[#allocation2 + $0x140] sm:$0xf]  ;;  %v4955_v21 = vld [vmem:[#allocation2 + $0x144] sm:$0xf0] }
 0x201   :  { %1559 = vmatpush.bf16.msra.mxu2 %v4002_v11  ;;  %1511 = vmatmul.bf16.gmra.mxu3 %v5900_v41  ;;  %v4285_v11 = vld [vmem:[#allocation2 + $0x170] sm:$0xf] }
 0x202   :  { %1578 = vmatpush.bf16.msra.mxu3 %v4066_v29  ;;  %v3914_v29 = vor.u32 %v4994_v60, %v3911_v51  ;;  %v4957_v60 = vld [vmem:[#allocation2 + $0x154] sm:$0xf0] }
 0x203   :  { %1522 = vmatpush.bf16.msra.mxu0 %v3866_v40  ;;  %v4158_v40 = vor.u32 %v4929_v5, %v4157_v4  ;;  %v4133_v4 = vld [vmem:[#allocation2 + $0x40] sm:$0xf]  ;;  %v4923_v5 = vld [vmem:[#allocation2 + $0x44] sm:$0xf0] }
 0x204   :  { %1541 = vmatpush.bf16.msrb.mxu1 %v3930_v43  ;;  %v4222_v43 = vor.u32 %v4945_v18, %v4221_v34  ;;  %v4270_v34 = vor.u32 %v4957_v60, %v4269_v25  ;;  %v4205_v18 = vld [vmem:[#allocation2 + $0xd0] sm:$0xf] }
 0x205   :  { %1560 = vmatpush.bf16.msra.mxu2 %v3994_v45  ;;  %v4286_v45 = vor.u32 %v4961_v47, %v4285_v11  ;;  %v4214_v11 = vor.u32 %v4943_v33, %v4213_v28  ;;  %v4141_v47 = vld [vmem:[#allocation2 + $0x50] sm:$0xf]  ;;  %v4969_v33 = vld [vmem:[#allocation2 + $0x1b4] sm:$0xf0] }
 0x206   :  { %1579 = vmatpush.bf16.msra.mxu3 %v4058_v20  ;;  %v4927_v20 = vld [vmem:[#allocation2 + $0x64] sm:$0xf0]  ;;  %v4317_v28 = vld [vmem:[#allocation2 + $0x1b0] sm:$0xf] }
 0x207   :  { %1523 = vmatpush.bf16.msra.mxu0 %v3858_v17  ;;  %v4150_v51 = vor.u32 %v4927_v20, %v4149_v59  ;;  %v4925_v17 = vld [vmem:[#allocation2 + $0x54] sm:$0xf0] }
 0x208   :  { %1542 = vmatpush.bf16.msrb.mxu1 %v3922_v56  ;;  %v4341_v56 = vld [vmem:[#allocation2 + $0x1e0] sm:$0xf] }
 0x209   :  { %1561 = vmatpush.bf16.msra.mxu2 %v3986_v10  ;;  %v4350_v10 = vor.u32 %v4977_v55, %v4349_v36  ;;  %v4342_v38 = vor.u32 %v4975_v49, %v4341_v56  ;;  %v4939_v55 = vld [vmem:[#allocation2 + $0xc4] sm:$0xf0]  ;;  %v4245_v56 = vld [vmem:[#allocation2 + $0x120] sm:$0xf] }
 0x20a   :  { %1580 = vmatpush.bf16.msra.mxu3 %v4050_v19  ;;  %v4941_v19 = vld [vmem:[#allocation2 + $0xd4] sm:$0xf0]  ;;  %v4951_v49 = vld [vmem:[#allocation2 + $0x124] sm:$0xf0] }
 0x20b   :  { %1524 = vmatpush.bf16.msra.mxu0 %v3850_v9  ;;  %v4953_v9 = vld [vmem:[#allocation2 + $0x134] sm:$0xf0] }
 0x20c   :  { %1543 = vmatpush.bf16.msrb.mxu1 %v3914_v29  ;;  %v4142_v29 = vor.u32 %v4925_v17, %v4141_v47  ;;  %v4254_v20 = vor.u32 %v4953_v9, %v4253_v3  ;;  %v4318_v47 = vor.u32 %v4969_v33, %v4317_v28  ;;  %v4246_v17 = vor.u32 %v4951_v49, %v4245_v56  ;;  %v5912_v3 = vld [vmem:[#allocation2] sm:$0xf]  ;;  %v4915_v9 = vld [vmem:[#allocation2 + $0x4] sm:$0xf0] }
 0x20d   :  { %1562 = vmatpush.bf16.msra.mxu2 %v3978_v15  ;;  %v4333_v15 = vld [vmem:[#allocation2 + $0x1d0] sm:$0xf]  ;;  %v882_v28 = vrot.slane %v5838_v52, 7  ;;  %v894_v33 = vrot.slane %v5862_v7, 7  ;;  %v883_v56 = vrot.slane %v5840_v13, 7 }
 0x20e   :  { %1581 = vmatpush.bf16.msra.mxu3 %v4042_v0  ;;  %1525 = vmatmul.bf16.vlgmr.msra.gmra.mxu0 %v5868_v22  ;;  %v4334_v36 = vor.u32 %v4973_v37, %v4333_v15  ;;  %v4197_v22 = vld [vmem:[#allocation2 + $0xc0] sm:$0xf]  ;;  %v4125_v0 = vld [vmem:[#allocation2 + $0x30] sm:$0xf]  ;;  %v4949_v37 = vld [vmem:[#allocation2 + $0x114] sm:$0xf0] }
 0x20f   :  { %1913 = vmatpush.bf16.msrb.mxu0 %v4158_v40  ;;  %1544 = vmatmul.bf16.vlgmr.msrb.gmra.mxu1 %v5872_v63  ;;  %v4325_v63 = vld [vmem:[#allocation2 + $0x1c0] sm:$0xf]  ;;  %v4921_v40 = vld [vmem:[#allocation2 + $0x34] sm:$0xf0]  ;;  %v4237_v15 = vld [vmem:[#allocation2 + $0x110] sm:$0xf] }
 0x210   :  { %1932 = vmatpush.bf16.msra.mxu1 %v4222_v43  ;;  %1563 = vmatmul.bf16.vlgmr.msra.gmra.mxu2 %v5876_v44  ;;  %v4262_v43 = vor.u32 %v4955_v21, %v4261_v8  ;;  %v4134_v44 = vor.u32 %v4923_v5, %v4133_v4  ;;  %v4326_v59 = vor.u32 %v4971_v2, %v4325_v63  ;;  %v4109_v8 = vld [vmem:[#allocation2 + $0x10] sm:$0xf]  ;;  %v4917_v21 = vld [vmem:[#allocation2 + $0x14] sm:$0xf0]  ;;  %v4229_v63 = vld [vmem:[#allocation2 + $0x100] sm:$0xf] }
 0x211   :  { %1951 = vmatpush.bf16.msrb.mxu2 %v4286_v45  ;;  %1582 = vmatmul.bf16.vlgmr.msra.gmra.mxu3 %v5880_v48  ;;  %v4206_v45 = vor.u32 %v4941_v19, %v4205_v18  ;;  %v4198_v48 = vor.u32 %v4939_v55, %v4197_v22  ;;  %v4126_v25 = vor.u32 %v4921_v40, %v4125_v0  ;;  %v4309_v18 = vld [vmem:[#allocation2 + $0x1a0] sm:$0xf]  ;;  %v4967_v19 = vld [vmem:[#allocation2 + $0x1a4] sm:$0xf0]  ;;  %v4173_v4 = vld [vmem:[#allocation2 + $0x90] sm:$0xf] }
 0x212   :  { %1970 = vmatpush.bf16.msrb.mxu3 %v4350_v10  ;;  %v4189_v10 = vld [vmem:[#allocation2 + $0xb0] sm:$0xf]  ;;  %v4933_v5 = vld [vmem:[#allocation2 + $0x94] sm:$0xf0]  ;;  %v4238_v22 = vor.u32 %v4949_v37, %v4237_v15  ;;  %v4947_v2 = vld [vmem:[#allocation2 + $0x104] sm:$0xf0]  ;;  %v4110_v40 = vor.u32 %v4917_v21, %v4109_v8 }
 0x213   :  { %1914 = vmatpush.bf16.msrb.mxu0 %v4150_v51  ;;  %v4117_v51 = vld [vmem:[#allocation2 + $0x20] sm:$0xf]  ;;  %v4965_v55 = vld [vmem:[#allocation2 + $0x194] sm:$0xf0]  ;;  %v892_v0 = vrot.slane %v5858_v61, 7  ;;  %v4230_v49 = vor.u32 %v4947_v2, %v4229_v63 }
 0x214   :  { %1933 = vmatpush.bf16.msra.mxu1 %v4214_v11  ;;  %v4919_v11 = vld [vmem:[#allocation2 + $0x24] sm:$0xf0]  ;;  %v4223_v8 = vld [vmem:[#allocation2 + $0xf8] sm:$0xf0]  ;;  %v4976_v21 = vld [vmem:[#allocation2 + $0x1f4] sm:$0xf] }
 0x215   :  { %1952 = vmatpush.bf16.msrb.mxu2 %v4278_v30  ;;  %v4937_v30 = vld [vmem:[#allocation2 + $0xb4] sm:$0xf0] }
 0x216   :  { %1971 = vmatpush.bf16.msrb.mxu3 %v4342_v38  ;;  %v4190_v60 = vor.u32 %v4937_v30, %v4189_v10  ;;  %v4181_v38 = vld [vmem:[#allocation2 + $0xa0] sm:$0xf]  ;;  %v4960_v10 = vld [vmem:[#allocation2 + $0x174] sm:$0xf]  ;;  %v4931_v30 = vld [vmem:[#allocation2 + $0x84] sm:$0xf0] }
 0x217   :  { %1915 = vmatpush.bf16.msrb.mxu0 %v4142_v29  ;;  %v4118_v29 = vor.u32 %v4919_v11, %v4117_v51  ;;  %v884_v51 = vrot.slane %v5842_v27, 7  ;;  %v885_v11 = vrot.slane %v5844_v31, 7 }
 0x218   :  { %1934 = vmatpush.bf16.msra.mxu1 %v4206_v45 }
 0x219   :  { %1953 = vmatpush.bf16.msrb.mxu2 %v4270_v34  ;;  %v4935_v34 = vld [vmem:[#allocation2 + $0xa4] sm:$0xf0] }
 0x21a   :  { %1972 = vmatpush.bf16.msrb.mxu3 %v4334_v36  ;;  %v4182_v45 = vor.u32 %v4935_v34, %v4181_v38  ;;  %v4301_v36 = vld [vmem:[#allocation2 + $0x190] sm:$0xf]  ;;  %v4159_v38 = vld [vmem:[#allocation2 + $0x78] sm:$0xf0]  ;;  %v4944_v34 = vld [vmem:[#allocation2 + $0xf4] sm:$0xf] }
 0x21b   :  { %1916 = vmatpush.bf16.msrb.mxu0 %v4134_v44  ;;  %v4165_v44 = vld [vmem:[#allocation2 + $0x80] sm:$0xf] }
 0x21c   :  { %1935 = vmatpush.bf16.msra.mxu1 %v4198_v48  ;;  %v880_v48 = vrot.slane %v5834_v54, 7 }
 0x21d   :  { %1954 = vmatpush.bf16.msrb.mxu2 %v4262_v43  ;;  %v4310_v43 = vor.u32 %v4967_v19, %v4309_v18  ;;  %v4102_v18 = vor.u32 %v4915_v9, %v5912_v3  ;;  %v4166_v19 = vor.u32 %v4931_v30, %v4165_v44  ;;  %v4226_v44 = vor.u32 %v4944_v34, %v4223_v8  ;;  %v4956_v34 = vld [vmem:[#allocation2 + $0x154] sm:$0xf] }
 0x21e   :  { %1973 = vmatpush.bf16.msrb.mxu3 %v4326_v59  ;;  %1530 = vmatmul.bf16.gmra.mxu0 %v5888_v32  ;;  %v4174_v59 = vor.u32 %v4933_v5, %v4173_v4  ;;  %v893_v32 = vrot.slane %v5860_v62, 7  ;;  %v908_v15 = vsel %vm240_vm2, %v892_v0, %v880_v48  ;;  %v910_v4 = vsel %vm240_vm2, %v894_v33, %v882_v28 }
 0x21f   :  { %1917 = vmatpush.bf16.msrb.mxu0 %v4126_v25  ;;  %1549 = vmatmul.bf16.gmra.mxu1 %v5892_v12  ;;  %v4287_v12 = vld [vmem:[#allocation2 + $0x178] sm:$0xf0]  ;;  %v4293_v25 = vld [vmem:[#allocation2 + $0x180] sm:$0xf]  ;;  %v887_v5 = vrot.slane %v5848_v39, 7  ;;  %v904_v63 = vsel %vm240_vm2, %v880_v48, %v884_v51  ;;  %v912_v3 = vmul.f32 %v5570_v46, %v908_v15  ;;  %v914_v30 = vmul.f32 %v5570_v46, %v910_v4 }
 0x220   :  { %1936 = vmatpush.bf16.msra.mxu1 %v4190_v60  ;;  %1568 = vmatmul.bf16.gmra.mxu2 %v5896_v23  ;;  %v895_v23 = vrot.slane %v5864_v26, 7  ;;  %v4963_v60 = vld [vmem:[#allocation2 + $0x184] sm:$0xf0]  ;;  %v4924_v15 = vld [vmem:[#allocation2 + $0x54] sm:$0xf] }
 0x221   :  { %1955 = vmatpush.bf16.msrb.mxu2 %v4254_v20  ;;  %1587 = vmatmul.bf16.gmra.mxu3 %v5900_v41  ;;  %v881_v20 = vrot.slane %v5836_v16, 7  ;;  %v4302_v41 = vor.u32 %v4965_v55, %v4301_v36  ;;  %v4294_v55 = vor.u32 %v4963_v60, %v4293_v25  ;;  %v907_v25 = vsel %vm240_vm2, %v883_v56, %v887_v5  ;;  %v4942_v60 = vld [vmem:[#allocation2 + $0xe4] sm:$0xf]  ;;  %v4940_v4 = vld [vmem:[#allocation2 + $0xd4] sm:$0xf] }
 0x222   :  { %1974 = vmatpush.bf16.msrb.mxu3 %v4318_v47  ;;  %v4290_v47 = vor.u32 %v4960_v10, %v4287_v12  ;;  %v911_v36 = vsel %vm240_vm2, %v895_v23, %v883_v56  ;;  %v4151_v10 = vld [vmem:[#allocation2 + $0x68] sm:$0xf0] }
 0x223   :  { %1918 = vmatpush.bf16.msrb.mxu0 %v4118_v29  ;;  %v909_v37 = vsel %vm240_vm2, %v893_v32, %v881_v20  ;;  %v4351_v29 = vld [vmem:[#allocation2 + $0x1f8] sm:$0xf0]  ;;  %v905_v12 = vsel %vm240_vm2, %v881_v20, %v885_v11 }
 0x224   :  { %1937 = vmatpush.bf16.msra.mxu1 %v4182_v45  ;;  %v886_v45 = vrot.slane %v5846_v35, 7  ;;  %v913_v9 = vmul.f32 %v5570_v46, %v909_v37  ;;  %v4143_v37 = vld [vmem:[#allocation2 + $0x58] sm:$0xf0] }
 0x225   :  { %1956 = vmatpush.bf16.msrb.mxu2 %v4246_v17  ;;  %v4928_v17 = vld [vmem:[#allocation2 + $0x74] sm:$0xf] }
 0x226   :  { %1975 = vmatpush.bf16.msrb.mxu3 %v4310_v43  ;;  %v4958_v43 = vld [vmem:[#allocation2 + $0x164] sm:$0xf]  ;;  %v4162_v2 = vor.u32 %v4928_v17, %v4159_v38  ;;  %v4343_v38 = vld [vmem:[#allocation2 + $0x1e8] sm:$0xf0] }
 0x227   :  { %1919 = vmatpush.bf16.msrb.mxu0 %v4110_v40  ;;  %v4354_v40 = vor.u32 %v4976_v21, %v4351_v29  ;;  %v4974_v17 = vld [vmem:[#allocation2 + $0x1e4] sm:$0xf] }
 0x228   :  { %1938 = vmatpush.bf16.msra.mxu1 %v4174_v59  ;;  %v4926_v59 = vld [vmem:[#allocation2 + $0x64] sm:$0xf]  ;;  %v4346_v29 = vor.u32 %v4974_v17, %v4343_v38  ;;  %v4952_v17 = vld [vmem:[#allocation2 + $0x134] sm:$0xf]  ;;  %v4255_v38 = vld [vmem:[#allocation2 + $0x138] sm:$0xf0] }
 0x229   :  { %1957 = vmatpush.bf16.msrb.mxu2 %v4238_v22  ;;  %v4279_v22 = vld [vmem:[#allocation2 + $0x168] sm:$0xf0]  ;;  %v4154_v20 = vor.u32 %v4926_v59, %v4151_v10  ;;  %v889_v59 = vrot.slane %v5852_v57, 7 }
 0x22a   :  { %1976 = vmatpush.bf16.msrb.mxu3 %v4302_v41  ;;  %v915_v41 = vmul.f32 %v5570_v46, %v911_v36  ;;  %v4282_v48 = vor.u32 %v4958_v43, %v4279_v22  ;;  %v4207_v36 = vld [vmem:[#allocation2 + $0xd8] sm:$0xf0]  ;;  %v4146_v22 = vor.u32 %v4924_v15, %v4143_v37 }
 0x22b   :  { %1920 = vmatpush.bf16.msrb.mxu0 %v4102_v18  ;;  %v5965_v18 = vpack.c.bf16 %v904_v63, %v912_v3  ;;  %v4335_v63 = vld [vmem:[#allocation2 + $0x1d8] sm:$0xf0]  ;;  %v4263_v3 = vld [vmem:[#allocation2 + $0x148] sm:$0xf0]  ;;  %v4210_v10 = vor.u32 %v4940_v4, %v4207_v36 }
 0x22c   :  { %1939 = vmatpush.bf16.msra.mxu1 %v4166_v19  ;;  %v5967_v19 = vpack.c.bf16 %v905_v12, %v913_v9  ;;  %v5971_v56 = vpack.c.bf16 %v907_v25, %v915_v41  ;;  %v4922_v9 = vld [vmem:[#allocation2 + $0x44] sm:$0xf]  ;;  %v4199_v41 = vld [vmem:[#allocation2 + $0xc8] sm:$0xf0] }
 0x22d   :  { %1958 = vmatpush.bf16.msrb.mxu2 %v4230_v49  ;;  %v906_v49 = vsel %vm240_vm2, %v882_v28, %v886_v45  ;;  %v4271_v28 = vld [vmem:[#allocation2 + $0x158] sm:$0xf0] }
 0x22e   :  { %1977 = vmatpush.bf16.msrb.mxu3 %v4294_v55  ;;  %v5969_v8 = vpack.c.bf16 %v906_v49, %v914_v30  ;;  %v4274_v43 = vor.u32 %v4956_v34, %v4271_v28  ;;  %v4972_v55 = vld [vmem:[#allocation2 + $0x1d4] sm:$0xf]  ;;  %1921 = vmatmul.bf16.vlgmr.msrb.gmra.mxu0 %v5965_v18  ;;  %v4938_v30 = vld [vmem:[#allocation2 + $0xc4] sm:$0xf]  ;;  %v891_v49 = vrot.slane %v5856_v53, 7 }
 0x22f   :  { %1989 = vmatpush.bf16.msra.mxu0 %v4162_v2  ;;  %v4954_v2 = vld [vmem:[#allocation2 + $0x144] sm:$0xf]  ;;  %1940 = vmatmul.bf16.vlgmr.msra.gmra.mxu1 %v5967_v19  ;;  %v4338_v12 = vor.u32 %v4972_v55, %v4335_v63  ;;  %v4920_v34 = vld [vmem:[#allocation2 + $0x34] sm:$0xf]  ;;  %v4127_v28 = vld [vmem:[#allocation2 + $0x38] sm:$0xf0]  ;;  %v4202_v15 = vor.u32 %v4938_v30, %v4199_v41 }
 0x230   :  { %2008 = vmatpush.bf16.msrb.mxu1 %v4226_v44  ;;  %v4135_v44 = vld [vmem:[#allocation2 + $0x48] sm:$0xf0]  ;;  %1959 = vmatmul.bf16.vlgmr.msrb.gmra.mxu2 %v5969_v8  ;;  %v4266_v25 = vor.u32 %v4954_v2, %v4263_v3  ;;  %v903_v36 = vsel %vm240_vm2, %v887_v5, %v891_v49  ;;  %v4130_v55 = vor.u32 %v4920_v34, %v4127_v28  ;;  %v4319_v63 = vld [vmem:[#allocation2 + $0x1b8] sm:$0xf0]  ;;  %v4950_v2 = vld [vmem:[#allocation2 + $0x124] sm:$0xf] }
 0x231   :  { %2027 = vmatpush.bf16.msra.mxu2 %v4290_v47  ;;  %v4215_v47 = vld [vmem:[#allocation2 + $0xe8] sm:$0xf0]  ;;  %1978 = vmatmul.bf16.vlgmr.msrb.gmra.mxu3 %v5971_v56  ;;  %v4918_v5 = vld [vmem:[#allocation2 + $0x24] sm:$0xf]  ;;  %v4239_v28 = vld [vmem:[#allocation2 + $0x118] sm:$0xf0] }
 0x232   :  { %2046 = vmatpush.bf16.msra.mxu3 %v4354_v40  ;;  %v4218_v21 = vor.u32 %v4942_v60, %v4215_v47  ;;  %v888_v40 = vrot.slane %v5850_v50, 7  ;;  %v4138_v60 = vor.u32 %v4922_v9, %v4135_v44  ;;  %v4970_v47 = vld [vmem:[#allocation2 + $0x1c4] sm:$0xf]  ;;  %v4247_v44 = vld [vmem:[#allocation2 + $0x128] sm:$0xf0] }
 0x233   :  { %1990 = vmatpush.bf16.msra.mxu0 %v4154_v20  ;;  %v4327_v20 = vld [vmem:[#allocation2 + $0x1c8] sm:$0xf0] }
 0x234   :  { %2009 = vmatpush.bf16.msrb.mxu1 %v4218_v21  ;;  %v900_v37 = vsel %vm240_vm2, %v884_v51, %v888_v40  ;;  %v901_v21 = vsel %vm240_vm2, %v885_v11, %v889_v59  ;;  %v4191_v51 = vld [vmem:[#allocation2 + $0xb8] sm:$0xf0]  ;;  %v4968_v11 = vld [vmem:[#allocation2 + $0x1b4] sm:$0xf]  ;;  %v896_v3 = vsel %vm240_vm2, %v888_v40, %v892_v0  ;;  %v923_v0 = vmul.f32 %v5585_v58, %v903_v36 }
 0x235   :  { %2028 = vmatpush.bf16.msra.mxu2 %v4282_v48  ;;  %v890_v48 = vrot.slane %v5854_v24, 7  ;;  %v921_v9 = vmul.f32 %v5585_v58, %v901_v21  ;;  %v899_v40 = vsel %vm240_vm2, %v891_v49, %v895_v23  ;;  %v4175_v36 = vld [vmem:[#allocation2 + $0x98] sm:$0xf0] }
 0x236   :  { %2047 = vmatpush.bf16.msra.mxu3 %v4346_v29  ;;  %v4330_v29 = vor.u32 %v4970_v47, %v4327_v20  ;;  %v4934_v47 = vld [vmem:[#allocation2 + $0xa4] sm:$0xf]  ;;  %v6023_v23 = vpack.c.bf16 %v899_v40, %v923_v0 }
 0x237   :  { %1991 = vmatpush.bf16.msra.mxu0 %v4146_v22  ;;  %v902_v4 = vsel %vm240_vm2, %v886_v45, %v890_v48  ;;  %v4258_v22 = vor.u32 %v4952_v17, %v4255_v38  ;;  %v920_v45 = vmul.f32 %v5585_v58, %v900_v37  ;;  %v898_v30 = vsel %vm240_vm2, %v890_v48, %v894_v33  ;;  %v4966_v33 = vld [vmem:[#allocation2 + $0x1a4] sm:$0xf]  ;;  %v4311_v48 = vld [vmem:[#allocation2 + $0x1a8] sm:$0xf0]  ;;  %v4948_v17 = vld [vmem:[#allocation2 + $0x114] sm:$0xf] }
 0x238   :  { %2010 = vmatpush.bf16.msrb.mxu1 %v4210_v10  ;;  %v4119_v10 = vld [vmem:[#allocation2 + $0x28] sm:$0xf0]  ;;  %v922_v41 = vmul.f32 %v5585_v58, %v902_v4  ;;  %v4111_v37 = vld [vmem:[#allocation2 + $0x18] sm:$0xf0]  ;;  %v4932_v4 = vld [vmem:[#allocation2 + $0x94] sm:$0xf] }
 0x239   :  { %2029 = vmatpush.bf16.msra.mxu2 %v4274_v43  ;;  %v4936_v43 = vld [vmem:[#allocation2 + $0xb4] sm:$0xf]  ;;  %v4122_v20 = vor.u32 %v4918_v5, %v4119_v10  ;;  %v6017_v38 = vpack.c.bf16 %v896_v3, %v920_v45  ;;  %v4103_v3 = vld [vmem:[#allocation2 + $0x8] sm:$0xf0]  ;;  %v4541_v45 = vld [vmem:[#allocation2 + $0x570] sm:$0xf]  ;;  %v4178_v10 = vor.u32 %v4932_v4, %v4175_v36 }
 0x23a   :  { %2048 = vmatpush.bf16.msra.mxu3 %v4338_v12  ;;  %v897_v12 = vsel %vm240_vm2, %v889_v59, %v893_v32  ;;  %v4183_v32 = vld [vmem:[#allocation2 + $0xa8] sm:$0xf0]  ;;  %v4250_v59 = vor.u32 %v4950_v2, %v4247_v44  ;;  %v6021_v21 = vpack.c.bf16 %v898_v30, %v922_v41  ;;  %v4914_v2 = vld [vmem:[#allocation2 + $0x4] sm:$0xf]  ;;  %v4413_v44 = vld [vmem:[#allocation2 + $0x470] sm:$0xf] }
 0x23b   :  { %1992 = vmatpush.bf16.msra.mxu0 %v4138_v60  ;;  %v4322_v60 = vor.u32 %v4968_v11, %v4319_v63  ;;  %v6019_v34 = vpack.c.bf16 %v897_v12, %v921_v9  ;;  %v4186_v49 = vor.u32 %v4934_v47, %v4183_v32  ;;  %v4946_v11 = vld [vmem:[#allocation2 + $0x104] sm:$0xf]  ;;  %v4231_v63 = vld [vmem:[#allocation2 + $0x108] sm:$0xf0]  ;;  %v5089_v9 = vld [vmem:[#allocation2 + $0x574] sm:$0xf0] }
 0x23c   :  { %2011 = vmatpush.bf16.msrb.mxu1 %v4202_v15  ;;  %v4916_v15 = vld [vmem:[#allocation2 + $0x14] sm:$0xf]  ;;  %v5057_v5 = vld [vmem:[#allocation2 + $0x474] sm:$0xf0]  ;;  %v4930_v30 = vld [vmem:[#allocation2 + $0x84] sm:$0xf]  ;;  %v4234_v40 = vor.u32 %v4946_v11, %v4231_v63 }
 0x23d   :  { %2030 = vmatpush.bf16.msra.mxu2 %v4266_v25  ;;  %v4194_v25 = vor.u32 %v4936_v43, %v4191_v51  ;;  %v4964_v43 = vld [vmem:[#allocation2 + $0x194] sm:$0xf]  ;;  %v4242_v51 = vor.u32 %v4948_v17, %v4239_v28  ;;  %v4167_v41 = vld [vmem:[#allocation2 + $0x88] sm:$0xf0]  ;;  %v4962_v0 = vld [vmem:[#allocation2 + $0x184] sm:$0xf] }
 0x23e   :  { %2049 = vmatpush.bf16.msra.mxu3 %v4330_v29  ;;  %v4314_v29 = vor.u32 %v4966_v33, %v4311_v48  ;;  %1926 = vmatmul.bf16.gmra.mxu0 %v6017_v38  ;;  %v4477_v47 = vld [vmem:[#allocation2 + $0x4f0] sm:$0xf]  ;;  %v5073_v32 = vld [vmem:[#allocation2 + $0x4f4] sm:$0xf0]  ;;  %v4533_v17 = vld [vmem:[#allocation2 + $0x560] sm:$0xf] }
 0x23f   :  { %1993 = vmatpush.bf16.msra.mxu0 %v4130_v55  ;;  %v4303_v55 = vld [vmem:[#allocation2 + $0x198] sm:$0xf0]  ;;  %1945 = vmatmul.bf16.gmra.mxu1 %v6019_v34  ;;  %v4605_v33 = vld [vmem:[#allocation2 + $0x5f0] sm:$0xf]  ;;  %v5105_v48 = vld [vmem:[#allocation2 + $0x5f4] sm:$0xf0]  ;;  %v4478_v4 = vor.u32 %v5073_v32, %v4477_v47 }
 0x240   :  { %2012 = vmatpush.bf16.msrb.mxu1 %v4194_v25  ;;  %1964 = vmatmul.bf16.gmra.mxu2 %v6021_v21  ;;  %v4306_v12 = vor.u32 %v4964_v43, %v4303_v55  ;;  %v4106_v25 = vor.u32 %v4914_v2, %v4103_v3  ;;  %v5087_v28 = vld [vmem:[#allocation2 + $0x564] sm:$0xf0]  ;;  %v4606_v36 = vor.u32 %v5105_v48, %v4605_v33  ;;  %v4469_v43 = vld [vmem:[#allocation2 + $0x4e0] sm:$0xf]  ;;  %v4525_v2 = vld [vmem:[#allocation2 + $0x550] sm:$0xf] }
 0x241   :  { %2031 = vmatpush.bf16.msra.mxu2 %v4258_v22  ;;  %v4114_v22 = vor.u32 %v4916_v15, %v4111_v37  ;;  %1983 = vmatmul.bf16.gmra.mxu3 %v6023_v23  ;;  %v4405_v15 = vld [vmem:[#allocation2 + $0x460] sm:$0xf]  ;;  %v5055_v37 = vld [vmem:[#allocation2 + $0x464] sm:$0xf0]  ;;  %v5085_v3 = vld [vmem:[#allocation2 + $0x554] sm:$0xf0] }
 0x242   :  { %2050 = vmatpush.bf16.msra.mxu3 %v4322_v60  ;;  %v4295_v60 = vld [vmem:[#allocation2 + $0x188] sm:$0xf0]  ;;  %v5071_v55 = vld [vmem:[#allocation2 + $0x4e4] sm:$0xf0]  ;;  %v4597_v11 = vld [vmem:[#allocation2 + $0x5e0] sm:$0xf] }
 0x243   :  { %1994 = vmatpush.bf16.msra.mxu0 %v4122_v20  ;;  %v4414_v20 = vor.u32 %v5057_v5, %v4413_v44  ;;  %v5103_v63 = vld [vmem:[#allocation2 + $0x5e4] sm:$0xf0]  ;;  %v4397_v44 = vld [vmem:[#allocation2 + $0x450] sm:$0xf]  ;;  %v5053_v5 = vld [vmem:[#allocation2 + $0x454] sm:$0xf0] }
 0x244   :  { %2013 = vmatpush.bf16.msrb.mxu1 %v4186_v49  ;;  %v4170_v49 = vor.u32 %v4930_v30, %v4167_v41  ;;  %v4589_v30 = vld [vmem:[#allocation2 + $0x5d0] sm:$0xf]  ;;  %v5101_v41 = vld [vmem:[#allocation2 + $0x5d4] sm:$0xf0]  ;;  %v4453_v33 = vld [vmem:[#allocation2 + $0x4c0] sm:$0xf] }
 0x245   :  { %2032 = vmatpush.bf16.msra.mxu2 %v4250_v59  ;;  %v4542_v59 = vor.u32 %v5089_v9, %v4541_v45  ;;  %v4470_v45 = vor.u32 %v5071_v55, %v4469_v43  ;;  %v4598_v9 = vor.u32 %v5103_v63, %v4597_v11  ;;  %v4590_v32 = vor.u32 %v5101_v41, %v4589_v30  ;;  %v5067_v48 = vld [vmem:[#allocation2 + $0x4c4] sm:$0xf0]  ;;  %v5049_v43 = vld [vmem:[#allocation2 + $0x434] sm:$0xf0]  ;;  %v4501_v11 = vld [vmem:[#allocation2 + $0x520] sm:$0xf] }
 0x246   :  { %2051 = vmatpush.bf16.msra.mxu3 %v4314_v29  ;;  %v4298_v29 = vor.u32 %v4962_v0, %v4295_v60  ;;  %v4526_v0 = vor.u32 %v5085_v3, %v4525_v2  ;;  %v5083_v60 = vld [vmem:[#allocation2 + $0x544] sm:$0xf0]  ;;  %v5097_v55 = vld [vmem:[#allocation2 + $0x5b4] sm:$0xf0]  ;;  %v4493_v30 = vld [vmem:[#allocation2 + $0x510] sm:$0xf] }
 0x247   :  { %1995 = vmatpush.bf16.msra.mxu0 %v4114_v22  ;;  %v4406_v22 = vor.u32 %v5055_v37, %v4405_v15  ;;  %v5079_v63 = vld [vmem:[#allocation2 + $0x524] sm:$0xf0] }
 0x248   :  { %2014 = vmatpush.bf16.msrb.mxu1 %v4178_v10  ;;  %v4461_v10 = vld [vmem:[#allocation2 + $0x4d0] sm:$0xf]  ;;  %v4502_v41 = vor.u32 %v5079_v63, %v4501_v11  ;;  %v942_v11 = vrot.slane %v5846_v35, 1  ;;  %v946_v63 = vrot.slane %v5854_v24, 1  ;;  %v4463_v35 = vld [vmem:[#allocation2 + $0x4d8] sm:$0xf0] }
 0x249   :  { %2033 = vmatpush.bf16.msra.mxu2 %v4242_v51  ;;  %v4534_v51 = vor.u32 %v5087_v28, %v4533_v17  ;;  %v4581_v17 = vld [vmem:[#allocation2 + $0x5c0] sm:$0xf]  ;;  %v5099_v28 = vld [vmem:[#allocation2 + $0x5c4] sm:$0xf0] }
 0x24a   :  { %2052 = vmatpush.bf16.msra.mxu3 %v4306_v12  ;;  %v5069_v12 = vld [vmem:[#allocation2 + $0x4d4] sm:$0xf0] }
 0x24b   :  { %1996 = vmatpush.bf16.msra.mxu0 %v4106_v25  ;;  %v4517_v25 = vld [vmem:[#allocation2 + $0x540] sm:$0xf]  ;;  %v4462_v47 = vor.u32 %v5069_v12, %v4461_v10  ;;  %v5095_v12 = vld [vmem:[#allocation2 + $0x5a4] sm:$0xf0] }
 0x24c   :  { %2015 = vmatpush.bf16.msrb.mxu1 %v4170_v49  ;;  %v4518_v15 = vor.u32 %v5083_v60, %v4517_v25  ;;  %v4509_v49 = vld [vmem:[#allocation2 + $0x530] sm:$0xf]  ;;  %v4565_v10 = vld [vmem:[#allocation2 + $0x5a0] sm:$0xf]  ;;  %v5045_v60 = vld [vmem:[#allocation2 + $0x414] sm:$0xf0] }
 0x24d   :  { %2034 = vmatpush.bf16.msra.mxu2 %v4234_v40  ;;  %v4398_v40 = vor.u32 %v5053_v5, %v4397_v44  ;;  %v4437_v44 = vld [vmem:[#allocation2 + $0x4a0] sm:$0xf]  ;;  %v5063_v5 = vld [vmem:[#allocation2 + $0x4a4] sm:$0xf0]  ;;  %v4365_v25 = vld [vmem:[#allocation2 + $0x410] sm:$0xf] }
 0x24e   :  { %2053 = vmatpush.bf16.msra.mxu3 %v4298_v29  ;;  %1997 = vmatmul.bf16.vlgmr.msra.gmra.mxu0 %v5965_v18  ;;  %v5081_v29 = vld [vmem:[#allocation2 + $0x534] sm:$0xf0]  ;;  %v4381_v18 = vld [vmem:[#allocation2 + $0x430] sm:$0xf] }
 0x24f   :  { %2450 = vmatpush.bf16.msrb.mxu0 %v4414_v20  ;;  %v5051_v20 = vld [vmem:[#allocation2 + $0x444] sm:$0xf0]  ;;  %2016 = vmatmul.bf16.vlgmr.msrb.gmra.mxu1 %v5967_v19  ;;  %v4445_v19 = vld [vmem:[#allocation2 + $0x4b0] sm:$0xf] }
 0x250   :  { %2469 = vmatpush.bf16.msra.mxu1 %v4478_v4  ;;  %2035 = vmatmul.bf16.vlgmr.msra.gmra.mxu2 %v5969_v8  ;;  %v4454_v4 = vor.u32 %v5067_v48, %v4453_v33  ;;  %v4510_v8 = vor.u32 %v5081_v29, %v4509_v49  ;;  %v4557_v33 = vld [vmem:[#allocation2 + $0x590] sm:$0xf]  ;;  %v5093_v48 = vld [vmem:[#allocation2 + $0x594] sm:$0xf0]  ;;  %v944_v49 = vrot.slane %v5850_v50, 1  ;;  %v941_v29 = vrot.slane %v5844_v31, 1 }
 0x251   :  { %2488 = vmatpush.bf16.msrb.mxu2 %v4542_v59  ;;  %v4389_v59 = vld [vmem:[#allocation2 + $0x440] sm:$0xf]  ;;  %2054 = vmatmul.bf16.vlgmr.msra.gmra.mxu3 %v5971_v56  ;;  %v4382_v56 = vor.u32 %v5049_v43, %v4381_v18  ;;  %v4366_v18 = vor.u32 %v5045_v60, %v4365_v25  ;;  %v5043_v43 = vld [vmem:[#allocation2 + $0x404] sm:$0xf0]  ;;  %v937_v25 = vrot.slane %v5836_v16, 1  ;;  %v938_v60 = vrot.slane %v5838_v52, 1 }
 0x252   :  { %2507 = vmatpush.bf16.msrb.mxu3 %v4606_v36  ;;  %v4390_v37 = vor.u32 %v5051_v20, %v4389_v59  ;;  %v4582_v36 = vor.u32 %v5099_v28, %v4581_v17  ;;  %v4429_v59 = vld [vmem:[#allocation2 + $0x490] sm:$0xf]  ;;  %v5061_v20 = vld [vmem:[#allocation2 + $0x494] sm:$0xf0]  ;;  %v4485_v17 = vld [vmem:[#allocation2 + $0x500] sm:$0xf] }
 0x253   :  { %2451 = vmatpush.bf16.msrb.mxu0 %v4406_v22  ;;  %v4573_v22 = vld [vmem:[#allocation2 + $0x5b0] sm:$0xf]  ;;  %v5075_v28 = vld [vmem:[#allocation2 + $0x504] sm:$0xf0]  ;;  %v962_v31 = vsel %vm255_vm5, %v938_v60, %v942_v11 }
 0x254   :  { %2470 = vmatpush.bf16.msra.mxu1 %v4470_v45  ;;  %v4574_v3 = vor.u32 %v5097_v55, %v4573_v22  ;;  %v4373_v45 = vld [vmem:[#allocation2 + $0x420] sm:$0xf]  ;;  %v4430_v22 = vor.u32 %v5061_v20, %v4429_v59  ;;  %v4558_v55 = vor.u32 %v5093_v48, %v4557_v33  ;;  %v5086_v20 = vld [vmem:[#allocation2 + $0x564] sm:$0xf]  ;;  %v4535_v33 = vld [vmem:[#allocation2 + $0x568] sm:$0xf0]  ;;  %v958_v48 = vsel %vm255_vm5, %v942_v11, %v946_v63 }
 0x255   :  { %2489 = vmatpush.bf16.msrb.mxu2 %v4534_v51  ;;  %v5065_v51 = vld [vmem:[#allocation2 + $0x4b4] sm:$0xf0]  ;;  %v4591_v11 = vld [vmem:[#allocation2 + $0x5d8] sm:$0xf0] }
 0x256   :  { %2508 = vmatpush.bf16.msrb.mxu3 %v4598_v9  ;;  %v4446_v2 = vor.u32 %v5065_v51, %v4445_v19  ;;  %v5047_v9 = vld [vmem:[#allocation2 + $0x424] sm:$0xf0]  ;;  %v4421_v19 = vld [vmem:[#allocation2 + $0x480] sm:$0xf] }
 0x257   :  { %2452 = vmatpush.bf16.msrb.mxu0 %v4398_v40  ;;  %v5077_v40 = vld [vmem:[#allocation2 + $0x514] sm:$0xf0]  ;;  %v5059_v51 = vld [vmem:[#allocation2 + $0x484] sm:$0xf0] }
 0x258   :  { %2471 = vmatpush.bf16.msra.mxu1 %v4462_v47  ;;  %v4438_v47 = vor.u32 %v5063_v5, %v4437_v44  ;;  %v4486_v44 = vor.u32 %v5075_v28, %v4485_v17  ;;  %v5056_v5 = vld [vmem:[#allocation2 + $0x474] sm:$0xf] }
 0x259   :  { %2490 = vmatpush.bf16.msrb.mxu2 %v4526_v0  ;;  %v4374_v0 = vor.u32 %v5047_v9, %v4373_v45  ;;  %v5088_v45 = vld [vmem:[#allocation2 + $0x574] sm:$0xf]  ;;  %v4543_v9 = vld [vmem:[#allocation2 + $0x578] sm:$0xf0] }
 0x25a   :  { %2509 = vmatpush.bf16.msrb.mxu3 %v4590_v32  ;;  %v4566_v32 = vor.u32 %v5095_v12, %v4565_v10  ;;  %v4415_v10 = vld [vmem:[#allocation2 + $0x478] sm:$0xf0]  ;;  %v5072_v12 = vld [vmem:[#allocation2 + $0x4f4] sm:$0xf] }
 0x25b   :  { %2453 = vmatpush.bf16.msrb.mxu0 %v4390_v37  ;;  %v940_v37 = vrot.slane %v5842_v27, 1  ;;  %v4418_v59 = vor.u32 %v5056_v5, %v4415_v10 }
 0x25c   :  { %2472 = vmatpush.bf16.msra.mxu1 %v4454_v4  ;;  %v945_v4 = vrot.slane %v5852_v57, 1 }
 0x25d   :  { %2491 = vmatpush.bf16.msrb.mxu2 %v4518_v15  ;;  %v4357_v15 = vld [vmem:[#allocation2 + $0x400] sm:$0xf] }
 0x25e   :  { %2510 = vmatpush.bf16.msrb.mxu3 %v4582_v36  ;;  %v4494_v36 = vor.u32 %v5077_v40, %v4493_v30  ;;  %2002 = vmatmul.bf16.gmra.mxu0 %v6017_v38  ;;  %v4358_v30 = vor.u32 %v5043_v43, %v4357_v15  ;;  %v957_v38 = vsel %vm255_vm5, %v941_v29, %v945_v4  ;;  %v936_v40 = vrot.slane %v5834_v54, 1  ;;  %v5054_v15 = vld [vmem:[#allocation2 + $0x464] sm:$0xf] }
 0x25f   :  { %2454 = vmatpush.bf16.msrb.mxu0 %v4382_v56  ;;  %v5091_v56 = vld [vmem:[#allocation2 + $0x584] sm:$0xf0]  ;;  %2021 = vmatmul.bf16.gmra.mxu1 %v6019_v34  ;;  %v4479_v34 = vld [vmem:[#allocation2 + $0x4f8] sm:$0xf0] }
 0x260   :  { %2473 = vmatpush.bf16.msra.mxu1 %v4446_v2  ;;  %v943_v2 = vrot.slane %v5848_v39, 1  ;;  %2040 = vmatmul.bf16.gmra.mxu2 %v6021_v21  ;;  %v956_v39 = vsel %vm255_vm5, %v940_v37, %v944_v49  ;;  %v5104_v21 = vld [vmem:[#allocation2 + $0x5f4] sm:$0xf]  ;;  %v4482_v17 = vor.u32 %v5072_v12, %v4479_v34 }
 0x261   :  { %2492 = vmatpush.bf16.msrb.mxu2 %v4510_v8  ;;  %v4549_v8 = vld [vmem:[#allocation2 + $0x580] sm:$0xf]  ;;  %2059 = vmatmul.bf16.gmra.mxu3 %v6023_v23  ;;  %v4607_v23 = vld [vmem:[#allocation2 + $0x5f8] sm:$0xf0]  ;;  %v972_v43 = vmul.f32 %v5602_v6, %v956_v39  ;;  %v5084_v12 = vld [vmem:[#allocation2 + $0x554] sm:$0xf] }
 0x262   :  { %2511 = vmatpush.bf16.msrb.mxu3 %v4574_v3  ;;  %v947_v3 = vrot.slane %v5856_v53, 1  ;;  %v4610_v28 = vor.u32 %v5104_v21, %v4607_v23  ;;  %v5052_v39 = vld [vmem:[#allocation2 + $0x454] sm:$0xf] }
 0x263   :  { %2455 = vmatpush.bf16.msrb.mxu0 %v4374_v0  ;;  %v4550_v0 = vor.u32 %v5091_v56, %v4549_v8  ;;  %v960_v8 = vsel %vm255_vm5, %v936_v40, %v940_v37  ;;  %v961_v56 = vsel %vm255_vm5, %v937_v25, %v941_v29  ;;  %v5068_v34 = vld [vmem:[#allocation2 + $0x4d4] sm:$0xf] }
 0x264   :  { %2474 = vmatpush.bf16.msra.mxu1 %v4438_v47  ;;  %v939_v47 = vrot.slane %v5840_v13, 1  ;;  %v6097_v23 = vpack.c.bf16 %v972_v43, %v960_v8  ;;  %v5050_v43 = vld [vmem:[#allocation2 + $0x444] sm:$0xf]  ;;  %v4583_v8 = vld [vmem:[#allocation2 + $0x5c8] sm:$0xf0] }
 0x265   :  { %2493 = vmatpush.bf16.msrb.mxu2 %v4502_v41  ;;  %v4422_v41 = vor.u32 %v5059_v51, %v4421_v19  ;;  %v959_v19 = vsel %vm255_vm5, %v943_v2, %v947_v3  ;;  %v4471_v51 = vld [vmem:[#allocation2 + $0x4e8] sm:$0xf0] }
 0x266   :  { %2512 = vmatpush.bf16.msrb.mxu3 %v4566_v32  ;;  %v4546_v32 = vor.u32 %v5088_v45, %v4543_v9  ;;  %v973_v45 = vmul.f32 %v5602_v6, %v957_v38  ;;  %v974_v9 = vmul.f32 %v5602_v6, %v958_v48  ;;  %v975_v5 = vmul.f32 %v5602_v6, %v959_v19  ;;  %v4399_v38 = vld [vmem:[#allocation2 + $0x458] sm:$0xf0]  ;;  %v4391_v19 = vld [vmem:[#allocation2 + $0x448] sm:$0xf0] }
 0x267   :  { %2456 = vmatpush.bf16.msrb.mxu0 %v4366_v18  ;;  %v5070_v18 = vld [vmem:[#allocation2 + $0x4e4] sm:$0xf]  ;;  %v963_v29 = vsel %vm255_vm5, %v939_v47, %v943_v2  ;;  %v4402_v48 = vor.u32 %v5052_v39, %v4399_v38 }
 0x268   :  { %2475 = vmatpush.bf16.msra.mxu1 %v4430_v22  ;;  %v5102_v22 = vld [vmem:[#allocation2 + $0x5e4] sm:$0xf]  ;;  %v4474_v37 = vor.u32 %v5070_v18, %v4471_v51 }
 0x269   :  { %2494 = vmatpush.bf16.msrb.mxu2 %v4494_v36  ;;  %v4407_v36 = vld [vmem:[#allocation2 + $0x468] sm:$0xf0]  ;;  %v5066_v51 = vld [vmem:[#allocation2 + $0x4c4] sm:$0xf] }
 0x26a   :  { %2513 = vmatpush.bf16.msrb.mxu3 %v4558_v55  ;;  %v4599_v55 = vld [vmem:[#allocation2 + $0x5e8] sm:$0xf0]  ;;  %v4410_v27 = vor.u32 %v5054_v15, %v4407_v36  ;;  %v948_v15 = vrot.slane %v5858_v61, 1  ;;  %v4466_v36 = vor.u32 %v5068_v34, %v4463_v35  ;;  %v950_v61 = vrot.slane %v5862_v7, 1  ;;  %v5096_v34 = vld [vmem:[#allocation2 + $0x5b4] sm:$0xf] }
 0x26b   :  { %2457 = vmatpush.bf16.msrb.mxu0 %v4358_v30  ;;  %v4602_v10 = vor.u32 %v5102_v22, %v4599_v55  ;;  %v4527_v30 = vld [vmem:[#allocation2 + $0x558] sm:$0xf0]  ;;  %v1450_v21 = vpop.f32.mrf.mxu0  ;;  %v4455_v22 = vld [vmem:[#allocation2 + $0x4c8] sm:$0xf0]  ;;  %v5098_v55 = vld [vmem:[#allocation2 + $0x5c4] sm:$0xf] }
 0x26c   :  { %2476 = vmatpush.bf16.msra.mxu1 %v4422_v41  ;;  %v6099_v41 = vpack.c.bf16 %v973_v45, %v961_v56  ;;  %v949_v56 = vrot.slane %v5860_v62, 1  ;;  %v951_v45 = vrot.slane %v5864_v26, 1  ;;  %v964_v7 = vsel %vm255_vm5, %v948_v15, %v936_v40  ;;  %v4447_v26 = vld [vmem:[#allocation2 + $0x4b8] sm:$0xf0] }
 0x26d   :  { %2495 = vmatpush.bf16.msrb.mxu2 %v4486_v44  ;;  %v4538_v44 = vor.u32 %v5086_v20, %v4535_v33  ;;  %v6103_v20 = vpack.c.bf16 %v975_v5, %v963_v29  ;;  %v4530_v33 = vor.u32 %v5084_v12, %v4527_v30  ;;  %v4511_v5 = vld [vmem:[#allocation2 + $0x538] sm:$0xf0]  ;;  %v5048_v29 = vld [vmem:[#allocation2 + $0x434] sm:$0xf]  ;;  %v952_v13 = vsel %vm255_vm5, %v944_v49, %v948_v15 }
 0x26e   :  { %2514 = vmatpush.bf16.msrb.mxu3 %v4550_v0  ;;  %v5100_v0 = vld [vmem:[#allocation2 + $0x5d4] sm:$0xf]  ;;  %2458 = vmatmul.bf16.vlgmr.msrb.gmra.mxu0 %v6097_v23  ;;  %v4383_v12 = vld [vmem:[#allocation2 + $0x438] sm:$0xf0]  ;;  %v967_v54 = vsel %vm255_vm5, %v951_v45, %v939_v47  ;;  %v980_v47 = vmul.f32 %v5615_v14, %v964_v7  ;;  %v954_v50 = vsel %vm255_vm5, %v946_v63, %v950_v61 }
 0x26f   :  { %2526 = vmatpush.bf16.msra.mxu0 %v4418_v59  ;;  %v6101_v59 = vpack.c.bf16 %v974_v9, %v962_v31  ;;  %v4594_v18 = vor.u32 %v5100_v0, %v4591_v11  ;;  %2477 = vmatmul.bf16.vlgmr.msra.gmra.mxu1 %v6099_v41  ;;  %v4586_v31 = vor.u32 %v5098_v55, %v4583_v8  ;;  %v5064_v30 = vld [vmem:[#allocation2 + $0x4b4] sm:$0xf] }
 0x270   :  { %2545 = vmatpush.bf16.msrb.mxu1 %v4482_v17  ;;  %v5082_v17 = vld [vmem:[#allocation2 + $0x544] sm:$0xf]  ;;  %v965_v0 = vsel %vm255_vm5, %v949_v56, %v937_v25  ;;  %v966_v11 = vsel %vm255_vm5, %v950_v61, %v938_v60  ;;  %v4386_v16 = vor.u32 %v5048_v29, %v4383_v12  ;;  %v4450_v52 = vor.u32 %v5064_v30, %v4447_v26  ;;  %v4375_v60 = vld [vmem:[#allocation2 + $0x428] sm:$0xf0]  ;;  %v5076_v8 = vld [vmem:[#allocation2 + $0x514] sm:$0xf] }
 0x271   :  { %2564 = vmatpush.bf16.msra.mxu2 %v4546_v32  ;;  %v1469_v32 = vpop.f32.mrf.mxu1  ;;  %2515 = vmatmul.bf16.vlgmr.msrb.gmra.mxu3 %v6103_v20  ;;  %v983_v49 = vmul.f32 %v5615_v14, %v967_v54  ;;  %v955_v15 = vsel %vm255_vm5, %v947_v3, %v951_v45  ;;  %v5044_v61 = vld [vmem:[#allocation2 + $0x414] sm:$0xf]  ;;  %v4431_v45 = vld [vmem:[#allocation2 + $0x498] sm:$0xf0]  ;;  %v5074_v26 = vld [vmem:[#allocation2 + $0x504] sm:$0xf] }
 0x272   :  { %2583 = vmatpush.bf16.msra.mxu3 %v4610_v28  ;;  %v1470_v2 = vadd.f32 %v1469_v32, %v1450_v21  ;;  %v4519_v28 = vld [vmem:[#allocation2 + $0x548] sm:$0xf0]  ;;  %2496 = vmatmul.bf16.vlgmr.msrb.gmra.mxu2 %v6101_v59  ;;  %v4575_v21 = vld [vmem:[#allocation2 + $0x5b8] sm:$0xf0]  ;;  %v5058_v54 = vld [vmem:[#allocation2 + $0x484] sm:$0xf] }
 0x273   :  { %2527 = vmatpush.bf16.msra.mxu0 %v4410_v27  ;;  %v4522_v9 = vor.u32 %v5082_v17, %v4519_v28  ;;  %v5080_v27 = vld [vmem:[#allocation2 + $0x534] sm:$0xf]  ;;  %v1452_v38 = vpop.f32.mrf.mxu0  ;;  %v4578_v25 = vor.u32 %v5096_v34, %v4575_v21  ;;  %v5046_v17 = vld [vmem:[#allocation2 + $0x424] sm:$0xf]  ;;  %v6157_v30 = vpack.c.bf16 %v983_v49, %v955_v15  ;;  %v4487_v34 = vld [vmem:[#allocation2 + $0x508] sm:$0xf0] }
 0x274   :  { %2546 = vmatpush.bf16.msrb.mxu1 %v4474_v37  ;;  %v1488_v37 = vpop.f32.mrf.mxu2  ;;  %v1507_v62 = vpop.f32.mrf.mxu3  ;;  %v4514_v40 = vor.u32 %v5080_v27, %v4511_v5  ;;  %v5062_v28 = vld [vmem:[#allocation2 + $0x4a4] sm:$0xf]  ;;  %v4378_v55 = vor.u32 %v5046_v17, %v4375_v60 }
 0x275   :  { %2565 = vmatpush.bf16.msra.mxu2 %v4538_v44  ;;  %v4394_v44 = vor.u32 %v5050_v43, %v4391_v19  ;;  %v1489_v39 = vadd.f32 %v1488_v37, %v1470_v2  ;;  %v5094_v43 = vld [vmem:[#allocation2 + $0x5a4] sm:$0xf]  ;;  %v4567_v19 = vld [vmem:[#allocation2 + $0x5a8] sm:$0xf0]  ;;  %v6151_v37 = vpack.c.bf16 %v980_v47, %v952_v13 }
 0x276   :  { %2584 = vmatpush.bf16.msra.mxu3 %v4602_v10  ;;  %v4458_v10 = vor.u32 %v5066_v51, %v4455_v22  ;;  %v953_v51 = vsel %vm255_vm5, %v945_v4, %v949_v56  ;;  %v982_v22 = vmul.f32 %v5615_v14, %v966_v11  ;;  %v4495_v4 = vld [vmem:[#allocation2 + $0x518] sm:$0xf0]  ;;  %v4570_v63 = vor.u32 %v5094_v43, %v4567_v19  ;;  %v4359_v11 = vld [vmem:[#allocation2 + $0x408] sm:$0xf0] }
 0x277   :  { %2528 = vmatpush.bf16.msra.mxu0 %v4402_v48  ;;  %v6129_v32 = vadd.f32 %v1507_v62, %v1489_v39  ;;  %v4503_v48 = vld [vmem:[#allocation2 + $0x528] sm:$0xf0]  ;;  %v4498_v39 = vor.u32 %v5076_v8, %v4495_v4 }
 0x278   :  { %2547 = vmatpush.bf16.msrb.mxu1 %v4466_v36  ;;  %v981_v36 = vmul.f32 %v5615_v14, %v965_v0  ;;  %v6155_v12 = vpack.c.bf16 %v982_v22, %v954_v50  ;;  %v5042_v0 = vld [vmem:[#allocation2 + $0x404] sm:$0xf] }
 0x279   :  { %2566 = vmatpush.bf16.msra.mxu2 %v4530_v33  ;;  %v1471_v35 = vpop.f32.mrf.mxu1  ;;  %v5078_v33 = vld [vmem:[#allocation2 + $0x524] sm:$0xf] }
 0x27a   :  { %2585 = vmatpush.bf16.msra.mxu3 %v4594_v18  ;;  %v1472_v2 = vadd.f32 %v1471_v35, %v1452_v38  ;;  %v4439_v18 = vld [vmem:[#allocation2 + $0x4a8] sm:$0xf0]  ;;  %v4506_v57 = vor.u32 %v5078_v33, %v4503_v48  ;;  %v6153_v3 = vpack.c.bf16 %v981_v36, %v953_v51  ;;  %v4490_v33 = vor.u32 %v5074_v26, %v4487_v34 }
 0x27b   :  { %2529 = vmatpush.bf16.msra.mxu0 %v4394_v44  ;;  %v4442_v24 = vor.u32 %v5062_v28, %v4439_v18  ;;  %v5060_v44 = vld [vmem:[#allocation2 + $0x494] sm:$0xf]  ;;  %v1455_v53 = vpop.f32.mrf.mxu0  ;;  %v4362_v48 = vor.u32 %v5042_v0, %v4359_v11 }
 0x27c   :  { %2548 = vmatpush.bf16.msrb.mxu1 %v4458_v10  ;;  %v1490_v56 = vpop.f32.mrf.mxu2  ;;  %v1509_v5 = vpop.f32.mrf.mxu3  ;;  %v5092_v10 = vld [vmem:[#allocation2 + $0x594] sm:$0xf]  ;;  %v4434_v21 = vor.u32 %v5060_v44, %v4431_v45 }
 0x27d   :  { %2567 = vmatpush.bf16.msra.mxu2 %v4522_v9  ;;  %v4367_v9 = vld [vmem:[#allocation2 + $0x418] sm:$0xf0]  ;;  %v1491_v27 = vadd.f32 %v1490_v56, %v1472_v2  ;;  %v5090_v2 = vld [vmem:[#allocation2 + $0x584] sm:$0xf] }
 0x27e   :  { %2586 = vmatpush.bf16.msra.mxu3 %v4586_v31  ;;  %v4559_v31 = vld [vmem:[#allocation2 + $0x598] sm:$0xf0]  ;;  %v4370_v7 = vor.u32 %v5044_v61, %v4367_v9  ;;  %2463 = vmatmul.bf16.gmra.mxu0 %v6151_v37 }
 0x27f   :  { %2530 = vmatpush.bf16.msra.mxu0 %v4386_v16  ;;  %v6159_v62 = vadd.f32 %v1509_v5, %v1491_v27  ;;  %v4562_v35 = vor.u32 %v5092_v10, %v4559_v31  ;;  %2482 = vmatmul.bf16.gmra.mxu1 %v6153_v3  ;;  %v4551_v16 = vld [vmem:[#allocation2 + $0x588] sm:$0xf0] }
 0x280   :  { %2549 = vmatpush.bf16.msrb.mxu1 %v4450_v52  ;;  %v4554_v17 = vor.u32 %v5090_v2, %v4551_v16 }
 0x281   :  { %2568 = vmatpush.bf16.msra.mxu2 %v4514_v40  ;;  %v1474_v29 = vpop.f32.mrf.mxu1  ;;  %v4423_v40 = vld [vmem:[#allocation2 + $0x488] sm:$0xf0]  ;;  %2520 = vmatmul.bf16.gmra.mxu3 %v6157_v30 }
 0x282   :  { %2587 = vmatpush.bf16.msra.mxu3 %v4578_v25  ;;  %v1475_v38 = vadd.f32 %v1474_v29, %v1455_v53  ;;  %2501 = vmatmul.bf16.gmra.mxu2 %v6155_v12  ;;  %v4426_v25 = vor.u32 %v5058_v54, %v4423_v40 }
 0x283   :  { %2531 = vmatpush.bf16.msra.mxu0 %v4378_v55  ;;  %v1457_v13 = vpop.f32.mrf.mxu0 }
 0x284   :  { %2550 = vmatpush.bf16.msrb.mxu1 %v4442_v24  ;;  %v1493_v52 = vpop.f32.mrf.mxu2  ;;  %v1512_v28 = vpop.f32.mrf.mxu3 }
 0x285   :  { %2569 = vmatpush.bf16.msra.mxu2 %v4506_v57  ;;  %v1494_v60 = vadd.f32 %v1493_v52, %v1475_v38 }
 0x286   :  { %2588 = vmatpush.bf16.msra.mxu3 %v4570_v63 }
 0x287   :  { %2532 = vmatpush.bf16.msra.mxu0 %v4370_v7  ;;  %v6165_v36 = vadd.f32 %v1512_v28, %v1494_v60 }
 0x288   :  { %2551 = vmatpush.bf16.msrb.mxu1 %v4434_v21 }
 0x289   :  { %2570 = vmatpush.bf16.msra.mxu2 %v4498_v39  ;;  %v1476_v47 = vpop.f32.mrf.mxu1 }
 0x28a   :  { %2589 = vmatpush.bf16.msra.mxu3 %v4562_v35  ;;  %v1477_v18 = vadd.f32 %v1476_v47, %v1457_v13 }
 0x28b   :  { %2533 = vmatpush.bf16.msra.mxu0 %v4362_v48  ;;  %v1526_v50 = vpop.f32.mrf.mxu0 }
 0x28c   :  { %2552 = vmatpush.bf16.msrb.mxu1 %v4426_v25  ;;  %v1495_v43 = vpop.f32.mrf.mxu2  ;;  %v1514_v51 = vpop.f32.mrf.mxu3 }
 0x28d   :  { %2571 = vmatpush.bf16.msra.mxu2 %v4490_v33  ;;  %v1496_v19 = vadd.f32 %v1495_v43, %v1477_v18 }
 0x28e   :  { %2590 = vmatpush.bf16.msra.mxu3 %v4554_v17  ;;  %2534 = vmatmul.bf16.vlgmr.msra.gmra.mxu0 %v6097_v23 }
 0x28f   :  { %v1515_v49 = vadd.f32 %v1514_v51, %v1496_v19  ;;  %2553 = vmatmul.bf16.vlgmr.msrb.gmra.mxu1 %v6099_v41 }
 0x291   :  { %v1545_v22 = vpop.f32.mrf.mxu1  ;;  %2591 = vmatmul.bf16.vlgmr.msra.gmra.mxu3 %v6103_v20 }
 0x292   :  { %v1546_v15 = vadd.f32 %v1545_v22, %v1526_v50  ;;  %2572 = vmatmul.bf16.vlgmr.msra.gmra.mxu2 %v6101_v59 }
 0x293   :  { %v1528_v4 = vpop.f32.mrf.mxu0 }
 0x294   :  { %v1564_v57 = vpop.f32.mrf.mxu2  ;;  %v1583_v55 = vpop.f32.mrf.mxu3 }
 0x295   :  { %v1565_v8 = vadd.f32 %v1564_v57, %v1546_v15 }
 0x297   :  { %v1584_v63 = vadd.f32 %v1583_v55, %v1565_v8 }
 0x299   :  { %v1547_v56 = vpop.f32.mrf.mxu1 }
 0x29a   :  { %v1548_v24 = vadd.f32 %v1547_v56, %v1528_v4 }
 0x29b   :  { %v1531_v27 = vpop.f32.mrf.mxu0 }
 0x29c   :  { %v1566_v61 = vpop.f32.mrf.mxu2  ;;  %v1585_v9 = vpop.f32.mrf.mxu3 }
 0x29d   :  { %v1567_v44 = vadd.f32 %v1566_v61, %v1548_v24 }
 0x29e   :  { %2539 = vmatmul.bf16.gmra.mxu0 %v6151_v37 }
 0x29f   :  { %v1586_v23 = vadd.f32 %v1585_v9, %v1567_v44  ;;  %2558 = vmatmul.bf16.gmra.mxu1 %v6153_v3 }
 0x2a1   :  { %v1550_v5 = vpop.f32.mrf.mxu1  ;;  %2596 = vmatmul.bf16.gmra.mxu3 %v6157_v30 }
 0x2a2   :  { %v1551_v53 = vadd.f32 %v1550_v5, %v1531_v27  ;;  %2577 = vmatmul.bf16.gmra.mxu2 %v6155_v12 }
 0x2a3   :  { %v1533_v45 = vpop.f32.mrf.mxu0 }
 0x2a4   :  { %v1569_v41 = vpop.f32.mrf.mxu2  ;;  %v1588_v59 = vpop.f32.mrf.mxu3 }
 0x2a5   :  { %v1570_v20 = vadd.f32 %v1569_v41, %v1551_v53 }
 0x2a7   :  { %v1589_v29 = vadd.f32 %v1588_v59, %v1570_v20 }
 0x2a9   :  { %v1552_v10 = vpop.f32.mrf.mxu1 }
 0x2aa   :  { %v1553_v31 = vadd.f32 %v1552_v10, %v1533_v45 }
 0x2ab   :  { %v1922_v26 = vpop.f32.mrf.mxu0 }
 0x2ac   :  { %v1571_v39 = vpop.f32.mrf.mxu2  ;;  %v1590_v38 = vpop.f32.mrf.mxu3  ;;  %v1923_v37 = vadd.f32 %v1922_v26, %v6129_v32 }
 0x2ad   :  { %v1572_v7 = vadd.f32 %v1571_v39, %v1553_v31 }
 0x2af   :  { %v1591_v21 = vadd.f32 %v1590_v38, %v1572_v7 }
 0x2b1   :  { %v1941_v34 = vpop.f32.mrf.mxu1 }
 0x2b2   :  { %v1942_v3 = vadd.f32 %v1941_v34, %v1923_v37 }
 0x2b3   :  { %v1924_v30 = vpop.f32.mrf.mxu0 }
 0x2b4   :  { %v1960_v35 = vpop.f32.mrf.mxu2  ;;  %v1979_v12 = vpop.f32.mrf.mxu3  ;;  %v1925_v54 = vadd.f32 %v1924_v30, %v6159_v62 }
 0x2b5   :  { %v1961_v0 = vadd.f32 %v1960_v35, %v1942_v3 }
 0x2b7   :  { %v6177_v40 = vadd.f32 %v1979_v12, %v1961_v0 }
 0x2b9   :  { %v1943_v11 = vpop.f32.mrf.mxu1 }
 0x2ba   :  { %v1944_v2 = vadd.f32 %v1943_v11, %v1925_v54 }
 0x2bb   :  { %v1927_v52 = vpop.f32.mrf.mxu0 }
 0x2bc   :  { %v1962_v16 = vpop.f32.mrf.mxu2  ;;  %v1981_v33 = vpop.f32.mrf.mxu3  ;;  %v1928_v17 = vadd.f32 %v1927_v52, %v6165_v36 }
 0x2bd   :  { %v1963_v48 = vadd.f32 %v1962_v16, %v1944_v2 }
 0x2bf   :  { %v6180_v32 = vadd.f32 %v1981_v33, %v1963_v48 }
 0x2c1   :  { %v1946_v25 = vpop.f32.mrf.mxu1 }
 0x2c2   :  { %v1947_v60 = vadd.f32 %v1946_v25, %v1928_v17 }
 0x2c3   :  { %v1929_v18 = vpop.f32.mrf.mxu0 }
 0x2c4   :  { %v1965_v28 = vpop.f32.mrf.mxu2  ;;  %v1984_v13 = vpop.f32.mrf.mxu3  ;;  %v1930_v19 = vadd.f32 %v1929_v18, %v1515_v49 }
 0x2c5   :  { %v1966_v47 = vadd.f32 %v1965_v28, %v1947_v60 }
 0x2c7   :  { %v6182_v62 = vadd.f32 %v1984_v13, %v1966_v47 }
 0x2c9   :  { %v1948_v43 = vpop.f32.mrf.mxu1 }
 0x2ca   :  { %v1949_v51 = vadd.f32 %v1948_v43, %v1930_v19 }
 0x2cb   :  { %v1998_v57 = vpop.f32.mrf.mxu0 }
 0x2cc   :  { %v1967_v50 = vpop.f32.mrf.mxu2  ;;  %v1986_v22 = vpop.f32.mrf.mxu3  ;;  %v1999_v8 = vadd.f32 %v1998_v57, %v1584_v63 }
 0x2cd   :  { %v1968_v15 = vadd.f32 %v1967_v50, %v1949_v51 }
 0x2cf   :  { %v6184_v4 = vadd.f32 %v1986_v22, %v1968_v15 }
 0x2d1   :  { %v2017_v55 = vpop.f32.mrf.mxu1 }
 0x2d2   :  { %v2018_v36 = vadd.f32 %v2017_v55, %v1999_v8 }
 0x2d3   :  { %v2000_v9 = vpop.f32.mrf.mxu0 }
 0x2d4   :  { %v2036_v56 = vpop.f32.mrf.mxu2  ;;  %v2055_v24 = vpop.f32.mrf.mxu3  ;;  %v2001_v27 = vadd.f32 %v2000_v9, %v1586_v23 }
 0x2d5   :  { %v2037_v61 = vadd.f32 %v2036_v56, %v2018_v36 }
 0x2d7   :  { %v6186_v5 = vadd.f32 %v2055_v24, %v2037_v61 }
 0x2d9   :  { %v2019_v44 = vpop.f32.mrf.mxu1 }
 0x2da   :  { %v2020_v49 = vadd.f32 %v2019_v44, %v2001_v27 }
 0x2db   :  { %v2003_v20 = vpop.f32.mrf.mxu0 }
 0x2dc   :  { %v2038_v53 = vpop.f32.mrf.mxu2  ;;  %v2057_v41 = vpop.f32.mrf.mxu3  ;;  %v2004_v10 = vadd.f32 %v2003_v20, %v1589_v29 }
 0x2dd   :  { %v2039_v59 = vadd.f32 %v2038_v53, %v2020_v49 }
 0x2df   :  { %v6188_v31 = vadd.f32 %v2057_v41, %v2039_v59 }
 0x2e1   :  { %v2022_v45 = vpop.f32.mrf.mxu1 }
 0x2e2   :  { %v2023_v63 = vadd.f32 %v2022_v45, %v2004_v10 }
 0x2e3   :  { %v2005_v26 = vpop.f32.mrf.mxu0 }
 0x2e4   :  { %v2041_v39 = vpop.f32.mrf.mxu2  ;;  %v2060_v38 = vpop.f32.mrf.mxu3  ;;  %v2006_v37 = vadd.f32 %v2005_v26, %v1591_v21 }
 0x2e5   :  { %v2042_v7 = vadd.f32 %v2041_v39, %v2023_v63 }
 0x2e7   :  { %v6190_v3 = vadd.f32 %v2060_v38, %v2042_v7 }
 0x2e9   :  { %v2024_v34 = vpop.f32.mrf.mxu1 }
 0x2ea   :  { %v2025_v23 = vadd.f32 %v2024_v34, %v2006_v37 }
 0x2eb   :  { %v2459_v30 = vpop.f32.mrf.mxu0 }
 0x2ec   :  { %v2043_v35 = vpop.f32.mrf.mxu2  ;;  %v2062_v12 = vpop.f32.mrf.mxu3 }
 0x2ed   :  { %v2044_v0 = vadd.f32 %v2043_v35, %v2025_v23 }
 0x2ef   :  { %v6192_v54 = vadd.f32 %v2062_v12, %v2044_v0 }
 0x2f1   :  { %v2478_v11 = vpop.f32.mrf.mxu1 }
 0x2f2   :  { %v2479_v60 = vadd.f32 %v2478_v11, %v2459_v30 }
 0x2f3   :  { %v2461_v16 = vpop.f32.mrf.mxu0 }
 0x2f4   :  { %v2516_v2 = vpop.f32.mrf.mxu3 }
 0x2f5   :  { %v2497_v29 = vpop.f32.mrf.mxu2 }
 0x2f6   :  { %v2498_v47 = vadd.f32 %v2497_v29, %v2479_v60 }
 0x2f8   :  { %v2517_v15 = vadd.f32 %v2516_v2, %v2498_v47 }
 0x2f9   :  { %v2480_v33 = vpop.f32.mrf.mxu1 }
 0x2fa   :  { %v2481_v21 = vadd.f32 %v2480_v33, %v2461_v16  ;;  %v6198_v8 = vadd.f32 %v2517_v15, %v6177_v40 }
 0x2fb   :  { %v2464_v25 = vpop.f32.mrf.mxu0 }
 0x2fc   :  { %v2518_v52 = vpop.f32.mrf.mxu3  ;;  %v2628_v53 = vmul.f32 %v6198_v8, %v6198_v8 }
 0x2fd   :  { %v2499_v48 = vpop.f32.mrf.mxu2 }
 0x2fe   :  { %v2500_v28 = vadd.f32 %v2499_v48, %v2481_v21 }
 0x300   :  { %v2519_v19 = vadd.f32 %v2518_v52, %v2500_v28 }
 0x301   :  { %v2483_v17 = vpop.f32.mrf.mxu1 }
 0x302   :  { %v2484_v13 = vadd.f32 %v2483_v17, %v2464_v25  ;;  %v6195_v55 = vadd.f32 %v2519_v19, %v6180_v32 }
 0x303   :  { %v2466_v50 = vpop.f32.mrf.mxu0 }
 0x304   :  { %v2521_v43 = vpop.f32.mrf.mxu3  ;;  %v2630_v9 = vmul.f32 %v6195_v55, %v6195_v55  ;;  %v2610_v32 = vadd.f32 %v6195_v55, %v6198_v8 }
 0x305   :  { %v2502_v18 = vpop.f32.mrf.mxu2 }
 0x306   :  { %v2503_v51 = vadd.f32 %v2502_v18, %v2484_v13  ;;  %v2636_v41 = vadd.f32 %v2630_v9, %v2628_v53 }
 0x308   :  { %v2522_v57 = vadd.f32 %v2521_v43, %v2503_v51 }
 0x309   :  { %v2485_v22 = vpop.f32.mrf.mxu1 }
 0x30a   :  { %v6201_v36 = vadd.f32 %v2522_v57, %v6182_v62  ;;  %v2486_v56 = vadd.f32 %v2485_v22, %v2466_v50 }
 0x30b   :  { %v2535_v27 = vpop.f32.mrf.mxu0 }
 0x30c   :  { %v2523_v61 = vpop.f32.mrf.mxu3  ;;  %v2632_v40 = vmul.f32 %v6201_v36, %v6201_v36  ;;  %v2611_v59 = vadd.f32 %v2610_v32, %v6201_v36 }
 0x30d   :  { %v2504_v24 = vpop.f32.mrf.mxu2 }
 0x30e   :  { %v2505_v44 = vadd.f32 %v2504_v24, %v2486_v56  ;;  %v2637_v45 = vadd.f32 %v2636_v41, %v2632_v40 }
 0x310   :  { %v2524_v62 = vadd.f32 %v2523_v61, %v2505_v44 }
 0x311   :  { %v2554_v49 = vpop.f32.mrf.mxu1 }
 0x312   :  { %v6213_v20 = vadd.f32 %v2524_v62, %v6184_v4  ;;  %v2555_v52 = vadd.f32 %v2554_v49, %v2535_v27 }
 0x313   :  { %v2537_v7 = vpop.f32.mrf.mxu0 }
 0x314   :  { %v2612_v10 = vadd.f32 %v2611_v59, %v6213_v20  ;;  %v2634_v63 = vmul.f32 %v6213_v20, %v6213_v20  ;;  %v2592_v38 = vpop.f32.mrf.mxu3 }
 0x315   :  { %v2573_v39 = vpop.f32.mrf.mxu2 }
 0x316   :  { %v2613_v34 = vrot.slane %v2612_v10, 4  ;;  %v2638_v37 = vadd.f32 %v2637_v45, %v2634_v63  ;;  %v2574_v47 = vadd.f32 %v2573_v39, %v2555_v52 }
 0x318   :  { %v2614_v23 = vadd.f32 %v2613_v34, %v2612_v10  ;;  %v2639_v35 = vrot.slane %v2638_v37, 4  ;;  %v2593_v50 = vadd.f32 %v2592_v38, %v2574_v47 }
 0x319   :  { %v2556_v26 = vpop.f32.mrf.mxu1 }
 0x31a   :  { %v2615_v12 = vrot.slane %v2614_v23, 2  ;;  %v2640_v0 = vadd.f32 %v2639_v35, %v2638_v37  ;;  %v2557_v25 = vadd.f32 %v2556_v26, %v2537_v7  ;;  %v6224_v24 = vadd.f32 %v2593_v50, %v6186_v5 }
 0x31b   :  { %v2540_v33 = vpop.f32.mrf.mxu0 }
 0x31c   :  { %v2616_v30 = vadd.f32 %v2615_v12, %v2614_v23  ;;  %v2641_v11 = vrot.slane %v2640_v0, 2  ;;  %v2594_v29 = vpop.f32.mrf.mxu3  ;;  %v2629_v32 = vmul.f32 %v6224_v24, %v6224_v24 }
 0x31d   :  { %v2575_v4 = vpop.f32.mrf.mxu2 }
 0x31e   :  { %v2617_v2 = vrot.slane %v2616_v30, 1  ;;  %v2642_v16 = vadd.f32 %v2641_v11, %v2640_v0  ;;  %v2576_v21 = vadd.f32 %v2575_v4, %v2557_v25 }
 0x320   :  { %v2618_v17 = vadd.f32 %v2617_v2, %v2616_v30  ;;  %v2643_v60 = vrot.slane %v2642_v16, 1  ;;  %v2595_v19 = vadd.f32 %v2594_v29, %v2576_v21 }
 0x321   :  { %v2559_v48 = vpop.f32.mrf.mxu1 }
 0x322   :  { %v2560_v28 = vadd.f32 %v2559_v48, %v2540_v33  ;;  %2654 = vrot.lane.b32.xlu0 %v2618_v17, %s5444_s6  ;;  %v2644_v13 = vadd.f32 %v2643_v60, %v2642_v16  ;;  %v6221_v56 = vadd.f32 %v2595_v19, %v6188_v31 }
 0x323   :  { %v2542_v15 = vpop.f32.mrf.mxu0 }
 0x324   :  { %2663 = vrot.lane.b32.xlu1 %v2644_v13, %s5444_s6  ;;  %v2597_v43 = vpop.f32.mrf.mxu3  ;;  %v2631_v27 = vmul.f32 %v6221_v56, %v6221_v56  ;;  %v2619_v31 = vadd.f32 %v6221_v56, %v6224_v24 }
 0x325   :  { %v2578_v18 = vpop.f32.mrf.mxu2 }
 0x326   :  { %v2579_v51 = vadd.f32 %v2578_v18, %v2560_v28  ;;  %v2645_v62 = vadd.f32 %v2631_v27, %v2629_v32 }
 0x328   :  { %v2598_v22 = vadd.f32 %v2597_v43, %v2579_v51 }
 0x329   :  { %v2561_v57 = vpop.f32.mrf.mxu1 }
 0x32a   :  { %v6227_v61 = vadd.f32 %v2598_v22, %v6190_v3  ;;  %v2562_v9 = vadd.f32 %v2561_v57, %v2542_v15 }
 0x32c   :  { %v2599_v53 = vpop.f32.mrf.mxu3  ;;  %v2633_v5 = vmul.f32 %v6227_v61, %v6227_v61  ;;  %v2620_v3 = vadd.f32 %v2619_v31, %v6227_v61 }
 0x32d   :  { %v2580_v44 = vpop.f32.mrf.mxu2 }
 0x32e   :  { %v2581_v49 = vadd.f32 %v2580_v44, %v2562_v9  ;;  %v2646_v59 = vadd.f32 %v2645_v62, %v2633_v5 }
 0x330   :  { %v2600_v40 = vadd.f32 %v2599_v53, %v2581_v49 }
 0x332   :  { %v6239_v41 = vadd.f32 %v2600_v40, %v6192_v54 }
 0x334   :  { %v2621_v45 = vadd.f32 %v2620_v3, %v6239_v41  ;;  %v2635_v10 = vmul.f32 %v6239_v41, %v6239_v41  ;;  %v2694_v3 = vld [vmem:[%s6411_s10] sm:$0x3] }
 0x336   :  { %v2622_v63 = vrot.slane %v2621_v45, 4  ;;  %v2647_v39 = vadd.f32 %v2646_v59, %v2635_v10 }
 0x338   :  { %v2623_v38 = vadd.f32 %v2622_v63, %v2621_v45  ;;  %v2648_v7 = vrot.slane %v2647_v39, 4 }
 0x33a   :  { %v2624_v26 = vrot.slane %v2623_v38, 2  ;;  %v2649_v34 = vadd.f32 %v2648_v7, %v2647_v39 }
 0x33c   :  { %v2625_v37 = vadd.f32 %v2624_v26, %v2623_v38  ;;  %v2650_v23 = vrot.slane %v2649_v34, 2 }
 0x33e   :  { %v2626_v35 = vrot.slane %v2625_v37, 1  ;;  %v2651_v12 = vadd.f32 %v2650_v23, %v2649_v34 }
 0x340   :  { %v2627_v0 = vadd.f32 %v2626_v35, %v2625_v37  ;;  %v2652_v30 = vrot.slane %v2651_v12, 1 }
 0x342   :  { %2656 = vrot.lane.b32.xlu0 %v2627_v0, %s5444_s6  ;;  %v2653_v54 = vadd.f32 %v2652_v30, %v2651_v12 }
 0x344   :  { %2665 = vrot.lane.b32.xlu1 %v2653_v54, %s5444_s6 }
 0x394   :  { %v2655_v11 = vpop.permute.xlu0 %2654 }
 0x396   :  { %v2664_v4 = vpop.permute.xlu1 %2663 }
 0x3b4   :  { %v2657_v29 = vpop.permute.xlu0 %2656 }
 0x3b5   :  { %v2658_v2 = vsel %vm701_vm7, %v2655_v11, %v2657_v29  ;;  %v2659_v16 = vsel %vm701_vm7, %v2657_v29, %v2655_v11 }
 0x3b6   :  { %v2660_v33 = vadd.f32 %v2659_v16, %v2618_v17  ;;  %v2661_v48 = vadd.f32 %v2658_v2, %v2627_v0  ;;  %v2666_v52 = vpop.permute.xlu1 %2665 }
 0x3b7   :  { %v2667_v25 = vsel %vm701_vm7, %v2664_v4, %v2666_v52  ;;  %v2668_v60 = vsel %vm701_vm7, %v2666_v52, %v2664_v4 }
 0x3b8   :  { %v2662_v21 = vadd.f32 %v2661_v48, %v2660_v33  ;;  %v2669_v28 = vadd.f32 %v2668_v60, %v2644_v13  ;;  %v2670_v47 = vadd.f32 %v2667_v25, %v2653_v54  ;;  %v2677_v13 = vld [vmem:[#allocation11] sm:$0x3] }
 0x3ba   :  { %v2672_v18 = vmul.f32 0.0078125, %v2662_v21  ;;  %v2671_v43 = vadd.f32 %v2670_v47, %v2669_v28 }
 0x3bc   :  { %v2673_v19 = vmul.f32 0.0078125, %v2671_v43  ;;  %v2674_v51 = vmul.f32 %v2672_v18, %v2672_v18 }
 0x3be   :  { %v2675_v50 = vsub.f32 %v2673_v19, %v2674_v51 }
 0x3c0   :  { %v2676_v22 = vmax.f32 %v2675_v50, 0.0 }
 0x3c2   :  { %v2678_v15 = vadd.f32 1e-05, %v2676_v22 }
 0x3c4   :  { %5198 = vrsqrt.f32 %v2678_v15  ;;  %vm2685_vm3 = vweird.f32 %v2678_v15 }
 0x3ca   :  { %v5199_v17 = vpop.eup %5198 }
 0x3cb   :  { %v2680_v57 = vmul.f32 %v5199_v17, %v2678_v15  ;;  %vm2686_vm1 = vweird.f32 %v5199_v17 }
 0x3cc   :  { %vm2687_vm4 = vmor %vm2685_vm3, %vm2686_vm1 }
 0x3cd   :  { %v2681_v9 = vmul.f32 %v5199_v17, %v2680_v57 }
 0x3cf   :  { %v2682_v44 = vmul.f32 0.5, %v2681_v9 }
 0x3d1   :  { %v2683_v27 = vsub.f32 1.5, %v2682_v44 }
 0x3d3   :  { %v2684_v49 = vmul.f32 %v5199_v17, %v2683_v27 }
 0x3d5   :  { %v2688_v42 = vsel %vm2687_vm4, %v5199_v17, %v2684_v49 }
 0x3d6   :  { %v2690_v53 = vrot.slane %v2688_v42, 7 }
 0x3d8   :  { %v2691_v32 = vsel %vm776_vm14, %v2688_v42, %v2690_v53 }
 0x3d9   :  { %v2693_v31 = vmul.f32 %v2691_v32, %v2677_v13 }
 0x3db   :  { %v2696_v5 = vperm.slane %v2693_v31, 0  ;;  %v2697_v40 = vperm.slane %v2693_v31, 1 }
 0x3dd   :  { %v2701_v62 = vmul.f32 %v2697_v40, %v2672_v18  ;;  %v2700_v59 = vmul.f32 %v2696_v5, %v2672_v18  ;;  %v2708_v39 = vmul.f32 %v2696_v5, %v6198_v8  ;;  %v2709_v38 = vmul.f32 %v2697_v40, %v6224_v24 }
 0x3de   :  { %v2710_v7 = vmul.f32 %v2696_v5, %v6195_v55  ;;  %v2711_v26 = vmul.f32 %v2697_v40, %v6221_v56  ;;  %v2712_v23 = vmul.f32 %v2696_v5, %v6201_v36  ;;  %v2713_v35 = vmul.f32 %v2697_v40, %v6227_v61 }
 0x3df   :  { %v2704_v45 = vrot.slane %v2701_v62, 7  ;;  %v2714_v12 = vmul.f32 %v2696_v5, %v6213_v20  ;;  %v2715_v0 = vmul.f32 %v2697_v40, %v6239_v41 }
 0x3e1   :  { %v2705_v10 = vsel %vm776_vm14, %v2700_v59, %v2704_v45 }
 0x3e2   :  { %v2707_v63 = vsub.f32 %v2694_v3, %v2705_v10 }
 0x3e4   :  { %v2717_v34 = vperm.slane %v2707_v63, 0  ;;  %v2718_v37 = vperm.slane %v2707_v63, 1 }
 0x3e6   :  { %v2721_v30 = vadd.f32 %v2717_v34, %v2708_v39  ;;  %v2722_v54 = vadd.f32 %v2718_v37, %v2709_v38  ;;  %v2723_v11 = vadd.f32 %v2717_v34, %v2710_v7  ;;  %v2724_v8 = vadd.f32 %v2718_v37, %v2711_v26 }
 0x3e7   :  { %v2725_v4 = vadd.f32 %v2717_v34, %v2712_v23  ;;  %v2726_v24 = vadd.f32 %v2718_v37, %v2713_v35  ;;  %v2727_v29 = vadd.f32 %v2717_v34, %v2714_v12  ;;  %v2728_v55 = vadd.f32 %v2718_v37, %v2715_v0 }
 0x3e8   :  { %v6267_v2 = vmax.f32 %v2721_v30, 0.0  ;;  %v6269_v56 = vmax.f32 %v2722_v54, 0.0  ;;  %v6271_v16 = vmax.f32 %v2723_v11, 0.0  ;;  %v6273_v36 = vmax.f32 %v2724_v8, 0.0 }
 0x3e9   :  { %v6275_v61 = vmax.f32 %v2725_v4, 0.0  ;;  %v6277_v20 = vmax.f32 %v2726_v24, 0.0  ;;  %v6279_v41 = vmax.f32 %v2727_v29, 0.0  ;;  %v6281_v33 = vmax.f32 %v2728_v55, 0.0 }
 0x3ea   :  { %5428 = dma.done.wait [#allocation5 + $0x1], 6144 }
 0x3eb   :  { %5429 = vsyncadd [#allocation5 + $0x1], 4294961152  ;;  %v5129_v48 = vld [vmem:[#allocation3 + $0xb8] sm:$0xff]  ;;  %v5128_v21 = vld [vmem:[#allocation3 + $0xb0] sm:$0xff]  ;;  %v2745_v31 = vrot.slane %v6267_v2, 7  ;;  %v2751_v5 = vrot.slane %v6279_v41, 7  ;;  %v2741_v8 = vpack.c.bf16 %v6271_v16, %v6267_v2  ;;  %v2742_v4 = vpack.c.bf16 %v6273_v36, %v6269_v56 }
 0x3ec   :  { %v5137_v52 = vld [vmem:[#allocation3 + $0xf8] sm:$0xff]  ;;  %2962 = vmatpush.bf16.msrb.mxu0 %v5129_v48  ;;  %v5136_v28 = vld [vmem:[#allocation3 + $0xf0] sm:$0xff]  ;;  %v5127_v43 = vld [vmem:[#allocation3 + $0xa8] sm:$0xff]  ;;  %v2746_v40 = vrot.slane %v6269_v56, 7  ;;  %v2752_v62 = vrot.slane %v6281_v33, 7  ;;  %v2747_v63 = vrot.slane %v6271_v16, 7 }
 0x3ed   :  { %v5113_v25 = vld [vmem:[#allocation3 + $0x38] sm:$0xff]  ;;  %2981 = vmatpush.bf16.msra.mxu1 %v5137_v52  ;;  %v5112_v47 = vld [vmem:[#allocation3 + $0x30] sm:$0xff]  ;;  %v5135_v19 = vld [vmem:[#allocation3 + $0xe8] sm:$0xff]  ;;  %v2759_v39 = vsel %vm240_vm2, %v2751_v5, %v2745_v31  ;;  %v2748_v38 = vrot.slane %v6273_v36, 7  ;;  %v2749_v52 = vrot.slane %v6275_v61, 7 }
 0x3ee   :  { %v5121_v60 = vld [vmem:[#allocation3 + $0x78] sm:$0xff]  ;;  %3096 = vmatpush.bf16.msrb.mxu2 %v5113_v25  ;;  %v5120_v18 = vld [vmem:[#allocation3 + $0x70] sm:$0xff]  ;;  %v5111_v51 = vld [vmem:[#allocation3 + $0x28] sm:$0xff]  ;;  %v2760_v7 = vsel %vm240_vm2, %v2752_v62, %v2746_v40  ;;  %v2761_v37 = vmul.f32 %v5570_v46, %v2759_v39  ;;  %v2757_v0 = vsel %vm240_vm2, %v2745_v31, %v2747_v63  ;;  %v2750_v25 = vrot.slane %v6277_v20, 7 }
 0x3ef   :  { %3115 = vmatpush.bf16.msrb.mxu3 %v5121_v60  ;;  %v5119_v50 = vld [vmem:[#allocation3 + $0x68] sm:$0xff]  ;;  %v5126_v22 = vld [vmem:[#allocation3 + $0xa0] sm:$0xff]  ;;  %v5125_v9 = vld [vmem:[#allocation3 + $0x98] sm:$0xff]  ;;  %v2762_v23 = vmul.f32 %v5570_v46, %v2760_v7  ;;  %v2758_v30 = vsel %vm240_vm2, %v2746_v40, %v2748_v38  ;;  %v2778_v31 = vrot.slane %v6277_v20, 1  ;;  %v2779_v39 = vrot.slane %v6279_v41, 1 }
 0x3f0   :  { %2963 = vmatpush.bf16.msrb.mxu0 %v5128_v21  ;;  %v5134_v15 = vld [vmem:[#allocation3 + $0xe0] sm:$0xff]  ;;  %v5133_v44 = vld [vmem:[#allocation3 + $0xd8] sm:$0xff]  ;;  %v5124_v42 = vld [vmem:[#allocation3 + $0x90] sm:$0xff]  ;;  %v2769_v24 = vpack.c.bf16 %v2757_v0, %v2761_v37 }
 0x3f1   :  { %2982 = vmatpush.bf16.msra.mxu1 %v5136_v28  ;;  %v5110_v17 = vld [vmem:[#allocation3 + $0x20] sm:$0xff]  ;;  %v5109_v27 = vld [vmem:[#allocation3 + $0x18] sm:$0xff]  ;;  %v5132_v13 = vld [vmem:[#allocation3 + $0xd0] sm:$0xff]  ;;  %v2770_v29 = vpack.c.bf16 %v2758_v30, %v2762_v23  ;;  %v2755_v28 = vsel %vm240_vm2, %v2747_v63, %v2749_v52 }
 0x3f2   :  { %3097 = vmatpush.bf16.msrb.mxu2 %v5112_v47  ;;  %v5118_v57 = vld [vmem:[#allocation3 + $0x60] sm:$0xff]  ;;  %v5117_v49 = vld [vmem:[#allocation3 + $0x58] sm:$0xff]  ;;  %v5108_v53 = vld [vmem:[#allocation3 + $0x10] sm:$0xff]  ;;  %v2756_v47 = vsel %vm240_vm2, %v2748_v38, %v2750_v25  ;;  %v2780_v38 = vrot.slane %v6281_v33, 1 }
 0x3f3   :  { %3116 = vmatpush.bf16.msrb.mxu3 %v5120_v18  ;;  %v5116_v32 = vld [vmem:[#allocation3 + $0x50] sm:$0xff]  ;;  %v5123_v3 = vld [vmem:[#allocation3 + $0x88] sm:$0xff]  ;;  %v5122_v26 = vld [vmem:[#allocation3 + $0x80] sm:$0xff] }
 0x3f4   :  { %2964 = vmatpush.bf16.msrb.mxu0 %v5127_v43  ;;  %v5131_v59 = vld [vmem:[#allocation3 + $0xc8] sm:$0xff]  ;;  %v5130_v34 = vld [vmem:[#allocation3 + $0xc0] sm:$0xff]  ;;  %v5145_v54 = vld [vmem:[#allocation3 + $0x138] sm:$0xff] }
 0x3f5   :  { %2983 = vmatpush.bf16.msra.mxu1 %v5135_v19  ;;  %v5107_v45 = vld [vmem:[#allocation3 + $0x8] sm:$0xff]  ;;  %v5106_v35 = vld [vmem:[#allocation3] sm:$0xff]  ;;  %v5153_v11 = vld [vmem:[#allocation3 + $0x178] sm:$0xff]  ;;  %v2765_v19 = vmul.f32 %v5585_v58, %v2755_v28 }
 0x3f6   :  { %3098 = vmatpush.bf16.msrb.mxu2 %v5111_v51  ;;  %v5115_v10 = vld [vmem:[#allocation3 + $0x48] sm:$0xff]  ;;  %v5114_v12 = vld [vmem:[#allocation3 + $0x40] sm:$0xff]  ;;  %v5144_v55 = vld [vmem:[#allocation3 + $0x130] sm:$0xff]  ;;  %v2766_v51 = vmul.f32 %v5585_v58, %v2756_v47 }
 0x3f7   :  { %3117 = vmatpush.bf16.msrb.mxu3 %v5119_v50  ;;  %v5152_v48 = vld [vmem:[#allocation3 + $0x170] sm:$0xff]  ;;  %v5143_v60 = vld [vmem:[#allocation3 + $0x128] sm:$0xff]  ;;  %v5142_v18 = vld [vmem:[#allocation3 + $0x120] sm:$0xff]  ;;  %v2753_v50 = vsel %vm240_vm2, %v2749_v52, %v2751_v5 }
 0x3f8   :  { %2965 = vmatpush.bf16.msrb.mxu0 %v5126_v22  ;;  %v5151_v21 = vld [vmem:[#allocation3 + $0x168] sm:$0xff]  ;;  %v5150_v43 = vld [vmem:[#allocation3 + $0x160] sm:$0xff]  ;;  %v2754_v22 = vsel %vm240_vm2, %v2750_v25, %v2752_v62  ;;  %v2773_v62 = vrot.slane %v6267_v2, 1 }
 0x3f9   :  { %2984 = vmatpush.bf16.msra.mxu1 %v5134_v15  ;;  %v5141_v15 = vld [vmem:[#allocation3 + $0x118] sm:$0xff]  ;;  %v5139_v5 = vld [vmem:[#allocation3 + $0x108] sm:$0xff] }
 0x3fa   :  { %3099 = vmatpush.bf16.msrb.mxu2 %v5110_v17  ;;  %v5149_v17 = vld [vmem:[#allocation3 + $0x158] sm:$0xff]  ;;  %v5147_v40 = vld [vmem:[#allocation3 + $0x148] sm:$0xff]  ;;  %v2787_v7 = vsel %vm255_vm5, %v2779_v39, %v2773_v62 }
 0x3fb   :  { %3118 = vmatpush.bf16.msrb.mxu3 %v5118_v57  ;;  %v2743_v57 = vpack.c.bf16 %v6279_v41, %v6275_v61 }
 0x3fc   :  { %2966 = vmatpush.bf16.msrb.mxu0 %v5125_v9  ;;  %v2744_v9 = vpack.c.bf16 %v6281_v33, %v6277_v20 }
 0x3fd   :  { %2985 = vmatpush.bf16.msra.mxu1 %v5133_v44  ;;  %v2771_v44 = vpack.c.bf16 %v2753_v50, %v2765_v19 }
 0x3fe   :  { %3100 = vmatpush.bf16.msrb.mxu2 %v5109_v27  ;;  %v2772_v27 = vpack.c.bf16 %v2754_v22, %v2766_v51 }
 0x3ff   :  { %3119 = vmatpush.bf16.msrb.mxu3 %v5117_v49  ;;  %v5140_v49 = vld [vmem:[#allocation3 + $0x110] sm:$0xff] }
 0x400   :  { %2967 = vmatpush.bf16.msrb.mxu0 %v5124_v42  ;;  %v5148_v42 = vld [vmem:[#allocation3 + $0x150] sm:$0xff] }
 0x401   :  { %2986 = vmatpush.bf16.msra.mxu1 %v5132_v13  ;;  %v2775_v13 = vrot.slane %v6271_v16, 1 }
 0x402   :  { %3101 = vmatpush.bf16.msrb.mxu2 %v5108_v53  ;;  %v2777_v53 = vrot.slane %v6275_v61, 1  ;;  %v5138_v61 = vld [vmem:[#allocation3 + $0x100] sm:$0xff] }
 0x403   :  { %3120 = vmatpush.bf16.msrb.mxu3 %v5116_v32  ;;  %v2776_v32 = vrot.slane %v6273_v36, 1  ;;  %v5146_v36 = vld [vmem:[#allocation3 + $0x140] sm:$0xff] }
 0x404   :  { %2968 = vmatpush.bf16.msrb.mxu0 %v5123_v3  ;;  %v2783_v3 = vsel %vm255_vm5, %v2775_v13, %v2777_v53  ;;  %v2781_v23 = vsel %vm255_vm5, %v2777_v53, %v2779_v39 }
 0x405   :  { %2987 = vmatpush.bf16.msra.mxu1 %v5131_v59  ;;  %v2774_v59 = vrot.slane %v6269_v56, 1  ;;  %v2784_v16 = vsel %vm255_vm5, %v2776_v32, %v2778_v31  ;;  %v2791_v20 = vmul.f32 %v5602_v6, %v2783_v3 }
 0x406   :  { %3102 = vmatpush.bf16.msrb.mxu2 %v5107_v45  ;;  %v2792_v45 = vmul.f32 %v5602_v6, %v2784_v16 }
 0x407   :  { %3121 = vmatpush.bf16.msrb.mxu3 %v5115_v10  ;;  %v2785_v10 = vsel %vm255_vm5, %v2773_v62, %v2775_v13  ;;  %v2786_v2 = vsel %vm255_vm5, %v2774_v59, %v2776_v32 }
 0x408   :  { %2969 = vmatpush.bf16.msrb.mxu0 %v5122_v26  ;;  %v2797_v56 = vpack.c.bf16 %v2791_v20, %v2785_v10  ;;  %v2798_v63 = vpack.c.bf16 %v2792_v45, %v2786_v2  ;;  %v2788_v26 = vsel %vm255_vm5, %v2780_v38, %v2774_v59 }
 0x409   :  { %2988 = vmatpush.bf16.msra.mxu1 %v5130_v34  ;;  %v2795_v34 = vmul.f32 %v5615_v14, %v2787_v7  ;;  %v2796_v37 = vmul.f32 %v5615_v14, %v2788_v26 }
 0x40a   :  { %3103 = vmatpush.bf16.msrb.mxu2 %v5106_v35  ;;  %v2782_v35 = vsel %vm255_vm5, %v2778_v31, %v2780_v38 }
 0x40b   :  { %3122 = vmatpush.bf16.msrb.mxu3 %v5114_v12  ;;  %2970 = vmatmul.bf16.vlgmr.msrb.gmra.mxu0 %v2741_v8  ;;  %v2799_v12 = vpack.c.bf16 %v2795_v34, %v2781_v23  ;;  %v2800_v41 = vpack.c.bf16 %v2796_v37, %v2782_v35 }
 0x40c   :  { %3263 = vmatpush.bf16.msra.mxu0 %v5145_v54  ;;  %2989 = vmatmul.bf16.vlgmr.msra.gmra.mxu1 %v2742_v4 }
 0x40d   :  { %3282 = vmatpush.bf16.msrb.mxu1 %v5153_v11  ;;  %3104 = vmatmul.bf16.vlgmr.msrb.gmra.mxu2 %v2769_v24 }
 0x40e   :  { %3123 = vmatmul.bf16.vlgmr.msrb.gmra.mxu3 %v2770_v29 }
 0x410   :  { %3264 = vmatpush.bf16.msra.mxu0 %v5144_v55 }
 0x411   :  { %3283 = vmatpush.bf16.msrb.mxu1 %v5152_v48 }
 0x414   :  { %3265 = vmatpush.bf16.msra.mxu0 %v5143_v60 }
 0x415   :  { %3284 = vmatpush.bf16.msrb.mxu1 %v5151_v21 }
 0x418   :  { %3266 = vmatpush.bf16.msra.mxu0 %v5142_v18 }
 0x419   :  { %3285 = vmatpush.bf16.msrb.mxu1 %v5150_v43 }
 0x41b   :  { %2975 = vmatmul.bf16.gmra.mxu0 %v2743_v57 }
 0x41c   :  { %3267 = vmatpush.bf16.msra.mxu0 %v5141_v15  ;;  %2994 = vmatmul.bf16.gmra.mxu1 %v2744_v9 }
 0x41d   :  { %3286 = vmatpush.bf16.msrb.mxu1 %v5149_v17  ;;  %3109 = vmatmul.bf16.gmra.mxu2 %v2771_v44 }
 0x41e   :  { %3128 = vmatmul.bf16.gmra.mxu3 %v2772_v27 }
 0x420   :  { %3268 = vmatpush.bf16.msra.mxu0 %v5140_v49 }
 0x421   :  { %3287 = vmatpush.bf16.msrb.mxu1 %v5148_v42 }
 0x424   :  { %3269 = vmatpush.bf16.msra.mxu0 %v5139_v5 }
 0x425   :  { %3288 = vmatpush.bf16.msrb.mxu1 %v5147_v40 }
 0x428   :  { %3270 = vmatpush.bf16.msra.mxu0 %v5138_v61 }
 0x429   :  { %3289 = vmatpush.bf16.msrb.mxu1 %v5146_v36 }
 0x42b   :  { %3271 = vmatmul.bf16.vlgmr.msra.gmra.mxu0 %v2797_v56 }
 0x42c   :  { %3290 = vmatmul.bf16.vlgmr.msrb.gmra.mxu1 %v2798_v63 }
 0x43b   :  { %3276 = vmatmul.bf16.gmra.mxu0 %v2799_v12 }
 0x43c   :  { %3295 = vmatmul.bf16.gmra.mxu1 %v2800_v41 }
 0x488   :  { %v2971_v33 = vpop.f32.mrf.mxu0 }
 0x489   :  { %v2990_v0 = vpop.f32.mrf.mxu1 }
 0x48a   :  { %v2991_v19 = vadd.f32 %v2990_v0, %v2971_v33 }
 0x490   :  { %v2973_v30 = vpop.f32.mrf.mxu0  ;;  %v3105_v4 = vpop.f32.mrf.mxu2 }
 0x491   :  { %v2992_v54 = vpop.f32.mrf.mxu1  ;;  %v3124_v24 = vpop.f32.mrf.mxu3  ;;  %v3106_v22 = vadd.f32 %v3105_v4, %v2991_v19 }
 0x492   :  { %v2993_v18 = vadd.f32 %v2992_v54, %v2973_v30 }
 0x493   :  { %v3125_v53 = vadd.f32 %v3124_v24, %v3106_v22  ;;  %v3338_v22 = vld [vmem:[#allocation12] sm:$0x1] }
 0x498   :  { %v2976_v11 = vpop.f32.mrf.mxu0  ;;  %v3107_v48 = vpop.f32.mrf.mxu2 }
 0x499   :  { %v2995_v8 = vpop.f32.mrf.mxu1  ;;  %v3126_v60 = vpop.f32.mrf.mxu3  ;;  %v3108_v51 = vadd.f32 %v3107_v48, %v2993_v18 }
 0x49a   :  { %v2996_v50 = vadd.f32 %v2995_v8, %v2976_v11 }
 0x49b   :  { %v3127_v44 = vadd.f32 %v3126_v60, %v3108_v51 }
 0x4a0   :  { %v2978_v29 = vpop.f32.mrf.mxu0  ;;  %v3110_v21 = vpop.f32.mrf.mxu2 }
 0x4a1   :  { %v2997_v55 = vpop.f32.mrf.mxu1  ;;  %v3129_v43 = vpop.f32.mrf.mxu3  ;;  %v3111_v15 = vadd.f32 %v3110_v21, %v2996_v50 }
 0x4a2   :  { %v2998_v13 = vadd.f32 %v2997_v55, %v2978_v29 }
 0x4a3   :  { %v3130_v32 = vadd.f32 %v3129_v43, %v3111_v15 }
 0x4a8   :  { %v3272_v52 = vpop.f32.mrf.mxu0  ;;  %v3112_v27 = vpop.f32.mrf.mxu2 }
 0x4a9   :  { %v3291_v25 = vpop.f32.mrf.mxu1  ;;  %v3113_v5 = vadd.f32 %v3112_v27, %v2998_v13  ;;  %v3131_v40 = vpop.f32.mrf.mxu3 }
 0x4aa   :  { %v3292_v49 = vadd.f32 %v3291_v25, %v3272_v52 }
 0x4ab   :  { %v3132_v16 = vadd.f32 %v3131_v40, %v3113_v5 }
 0x4ac   :  { %v3301_v62 = vadd.f32 %v3292_v49, %v3125_v53 }
 0x4ae   :  { %v3314_v20 = vmul.f32 %v3301_v62, %v3301_v62 }
 0x4b0   :  { %v3274_v28 = vpop.f32.mrf.mxu0 }
 0x4b1   :  { %v3293_v47 = vpop.f32.mrf.mxu1 }
 0x4b2   :  { %v3294_v17 = vadd.f32 %v3293_v47, %v3274_v28 }
 0x4b4   :  { %v3302_v31 = vadd.f32 %v3294_v17, %v3127_v44 }
 0x4b6   :  { %v3315_v59 = vmul.f32 %v3302_v31, %v3302_v31  ;;  %v3305_v45 = vadd.f32 %v3302_v31, %v3301_v62 }
 0x4b8   :  { %v3277_v57 = vpop.f32.mrf.mxu0  ;;  %v3318_v56 = vadd.f32 %v3315_v59, %v3314_v20 }
 0x4b9   :  { %v3296_v9 = vpop.f32.mrf.mxu1 }
 0x4ba   :  { %v3297_v42 = vadd.f32 %v3296_v9, %v3277_v57  ;;  %v3351_v9 = vld [vmem:[%s6412_s11] sm:$0x1] }
 0x4bc   :  { %v3303_v3 = vadd.f32 %v3297_v42, %v3130_v32 }
 0x4be   :  { %v3316_v10 = vmul.f32 %v3303_v3, %v3303_v3  ;;  %v3306_v63 = vadd.f32 %v3305_v45, %v3303_v3 }
 0x4c0   :  { %v3279_v61 = vpop.f32.mrf.mxu0  ;;  %v3319_v38 = vadd.f32 %v3318_v56, %v3316_v10 }
 0x4c1   :  { %v3298_v36 = vpop.f32.mrf.mxu1 }
 0x4c2   :  { %v3299_v2 = vadd.f32 %v3298_v36, %v3279_v61 }
 0x4c4   :  { %v3304_v39 = vadd.f32 %v3299_v2, %v3132_v16 }
 0x4c6   :  { %v3307_v7 = vadd.f32 %v3306_v63, %v3304_v39  ;;  %v3317_v26 = vmul.f32 %v3304_v39, %v3304_v39 }
 0x4c8   :  { %v3308_v34 = vrot.slane %v3307_v7, 4  ;;  %v3320_v37 = vadd.f32 %v3319_v38, %v3317_v26 }
 0x4ca   :  { %v3309_v23 = vadd.f32 %v3308_v34, %v3307_v7  ;;  %v3321_v35 = vrot.slane %v3320_v37, 4 }
 0x4cc   :  { %v3310_v12 = vrot.slane %v3309_v23, 2  ;;  %v3322_v41 = vadd.f32 %v3321_v35, %v3320_v37 }
 0x4ce   :  { %v3311_v33 = vadd.f32 %v3310_v12, %v3309_v23  ;;  %v3323_v0 = vrot.slane %v3322_v41, 2 }
 0x4d0   :  { %v3312_v30 = vrot.slane %v3311_v33, 1  ;;  %v3324_v11 = vadd.f32 %v3323_v0, %v3322_v41 }
 0x4d2   :  { %v3313_v54 = vadd.f32 %v3312_v30, %v3311_v33  ;;  %v3325_v8 = vrot.slane %v3324_v11, 1 }
 0x4d4   :  { %3327 = vrot.lane.b32.xlu0 %v3313_v54, %s5444_s6  ;;  %v3326_v4 = vadd.f32 %v3325_v8, %v3324_v11 }
 0x4dc   :  { %3330 = vrot.lane.b32.xlu0 %v3326_v4, %s5444_s6 }
 0x546   :  { %v3328_v24 = vpop.permute.xlu0 %3327 }
 0x547   :  { %v3329_v29 = vadd.f32 %v3328_v24, %v3313_v54 }
 0x549   :  { %v3333_v55 = vmul.f32 0.015625, %v3329_v29 }
 0x54b   :  { %v3335_v25 = vmul.f32 %v3333_v55, %v3333_v55 }
 0x54e   :  { %v3331_v48 = vpop.permute.xlu0 %3330 }
 0x54f   :  { %v3332_v52 = vadd.f32 %v3331_v48, %v3326_v4 }
 0x551   :  { %v3334_v60 = vmul.f32 0.015625, %v3332_v52 }
 0x553   :  { %v3336_v21 = vsub.f32 %v3334_v60, %v3335_v25 }
 0x555   :  { %v3337_v28 = vmax.f32 %v3336_v21, 0.0 }
 0x557   :  { %v3339_v47 = vadd.f32 1e-05, %v3337_v28 }
 0x559   :  { %5200 = vrsqrt.f32 %v3339_v47  ;;  %vm3346_vm7 = vweird.f32 %v3339_v47 }
 0x55f   :  { %v5201_v18 = vpop.eup %5200 }
 0x560   :  { %v3341_v43 = vmul.f32 %v5201_v18, %v3339_v47  ;;  %vm3347_vm6 = vweird.f32 %v5201_v18 }
 0x561   :  { %vm3348_vm8 = vmor %vm3346_vm7, %vm3347_vm6 }
 0x562   :  { %v3342_v19 = vmul.f32 %v5201_v18, %v3341_v43 }
 0x564   :  { %v3343_v51 = vmul.f32 0.5, %v3342_v19 }
 0x566   :  { %v3344_v50 = vsub.f32 1.5, %v3343_v51 }
 0x568   :  { %v3345_v15 = vmul.f32 %v5201_v18, %v3344_v50 }
 0x56a   :  { %v3349_v17 = vsel %vm3348_vm8, %v5201_v18, %v3345_v15 }
 0x56b   :  { %v3350_v57 = vmul.f32 %v3349_v17, %v3338_v22 }
 0x56d   :  { %v3352_v44 = vmul.f32 %v3350_v57, %v3333_v55  ;;  %v3355_v27 = vperm.slane %v3350_v57, 0 }
 0x56f   :  { %v3353_v49 = vsub.f32 %v3351_v9, %v3352_v44  ;;  %v3357_v42 = vmul.f32 %v3355_v27, %v3301_v62  ;;  %v3358_v13 = vmul.f32 %v3355_v27, %v3302_v31  ;;  %v3359_v53 = vmul.f32 %v3355_v27, %v3303_v3 }
 0x570   :  { %v3360_v32 = vmul.f32 %v3355_v27, %v3304_v39 }
 0x571   :  { %v3362_v5 = vperm.slane %v3353_v49, 0 }
 0x573   :  { %v3364_v40 = vadd.f32 %v3362_v5, %v3357_v42  ;;  %v3365_v59 = vadd.f32 %v3362_v5, %v3358_v13  ;;  %v3366_v16 = vadd.f32 %v3362_v5, %v3359_v53  ;;  %v3367_v61 = vadd.f32 %v3362_v5, %v3360_v32 }
 0x575   :  { %v6352_v36 = vmax.f32 %v3364_v40, 0.0  ;;  %v6354_v20 = vmax.f32 %v3365_v59, 0.0  ;;  %v6356_v45 = vmax.f32 %v3366_v16, 0.0  ;;  %v6358_v10 = vmax.f32 %v3367_v61, 0.0 }
 0x576   :  { %5430 = dma.done.wait [#allocation5 + $0x2], 3072 }
 0x577   :  { %5431 = vsyncadd [#allocation5 + $0x2], 4294964224  ;;  %v5169_v2 = vld [vmem:[#allocation4 + $0x78] sm:$0xff]  ;;  %v5168_v3 = vld [vmem:[#allocation4 + $0x70] sm:$0xff]  ;;  %v3378_v0 = vrot.slane %v6352_v36, 7  ;;  %v3381_v30 = vrot.slane %v6358_v10, 7  ;;  %v3376_v51 = vpack.c.bf16 %v6354_v20, %v6352_v36  ;;  %v3377_v49 = vpack.c.bf16 %v6358_v10, %v6356_v45 }
 0x578   :  { %v5161_v62 = vld [vmem:[#allocation4 + $0x38] sm:$0xff]  ;;  %3487 = vmatpush.bf16.msra.mxu2 %v5169_v2  ;;  %v5160_v56 = vld [vmem:[#allocation4 + $0x30] sm:$0xff]  ;;  %v5167_v39 = vld [vmem:[#allocation4 + $0x68] sm:$0xff]  ;;  %v3393_v11 = vrot.slane %v6354_v20, 1  ;;  %v3394_v8 = vrot.slane %v6356_v45, 1  ;;  %v3379_v29 = vrot.slane %v6354_v20, 7 }
 0x579   :  { %v5177_v31 = vld [vmem:[#allocation4 + $0xb8] sm:$0xff]  ;;  %3554 = vmatpush.bf16.msra.mxu3 %v5161_v62  ;;  %v5176_v63 = vld [vmem:[#allocation4 + $0xb0] sm:$0xff]  ;;  %v5159_v38 = vld [vmem:[#allocation4 + $0x28] sm:$0xff]  ;;  %v3385_v55 = vsel %vm240_vm2, %v3381_v30, %v3378_v0  ;;  %v3392_v52 = vrot.slane %v6352_v36, 1  ;;  %v3380_v22 = vrot.slane %v6356_v45, 7  ;;  %s5448_s16 = smov [#allocation15]  }
 0x57a   :  { %3638 = vmatpush.bf16.msrb.mxu0 %v5177_v31  ;;  %v5175_v7 = vld [vmem:[#allocation4 + $0xa8] sm:$0xff]  ;;  %v5166_v26 = vld [vmem:[#allocation4 + $0x60] sm:$0xff]  ;;  %v5165_v23 = vld [vmem:[#allocation4 + $0x58] sm:$0xff]  ;;  %v3397_v25 = vsel %vm255_vm5, %v3393_v11, %v3394_v8  ;;  %v3386_v60 = vmul.f32 %v5570_v46, %v3385_v55  ;;  %v3384_v47 = vsel %vm240_vm2, %v3378_v0, %v3379_v29  ;;  %s3730_s6 = sshll.u32 %s5448_s16, 4  ;;  %s3731_s6 = int_to_ptr.vmem [resolvable:$true] %s3730_s6 }
 0x57b   :  { %v5158_v34 = vld [vmem:[#allocation4 + $0x20] sm:$0xff]  ;;  %v5157_v35 = vld [vmem:[#allocation4 + $0x18] sm:$0xff]  ;;  %v5164_v41 = vld [vmem:[#allocation4 + $0x50] sm:$0xff]  ;;  %v3401_v18 = vmul.f32 %v5602_v6, %v3397_v25  ;;  %v3398_v19 = vsel %vm255_vm5, %v3392_v52, %v3393_v11  ;;  %v3395_v6 = vrot.slane %v6358_v10, 1  ;;  %v3383_v15 = vsel %vm240_vm2, %v3379_v29, %v3380_v22 }
 0x57c   :  { %3488 = vmatpush.bf16.msra.mxu2 %v5168_v3  ;;  %v5174_v37 = vld [vmem:[#allocation4 + $0xa0] sm:$0xff]  ;;  %v5173_v12 = vld [vmem:[#allocation4 + $0x98] sm:$0xff]  ;;  %v5156_v33 = vld [vmem:[#allocation4 + $0x10] sm:$0xff]  ;;  %v3390_v50 = vpack.c.bf16 %v3384_v47, %v3386_v60  ;;  %v3388_v57 = vmul.f32 %v5585_v58, %v3383_v15  ;;  %v3382_v9 = vsel %vm240_vm2, %v3380_v22, %v3381_v30 }
 0x57d   :  { %3555 = vmatpush.bf16.msra.mxu3 %v5160_v56  ;;  %v5172_v54 = vld [vmem:[#allocation4 + $0x90] sm:$0xff]  ;;  %v5163_v4 = vld [vmem:[#allocation4 + $0x48] sm:$0xff]  ;;  %v5162_v21 = vld [vmem:[#allocation4 + $0x40] sm:$0xff]  ;;  %v3404_v46 = vpack.c.bf16 %v3401_v18, %v3398_v19  ;;  %v3399_v17 = vsel %vm255_vm5, %v3395_v6, %v3392_v52  ;;  %v3396_v27 = vsel %vm255_vm5, %v3394_v8, %v3395_v6 }
 0x57e   :  { %3639 = vmatpush.bf16.msrb.mxu0 %v5176_v63  ;;  %v5155_v24 = vld [vmem:[#allocation4 + $0x8] sm:$0xff]  ;;  %v5154_v28 = vld [vmem:[#allocation4] sm:$0xff]  ;;  %v3403_v44 = vmul.f32 %v5615_v14, %v3399_v17  ;;  %v3391_v42 = vpack.c.bf16 %v3382_v9, %v3388_v57 }
 0x57f   :  { %v5171_v48 = vld [vmem:[#allocation4 + $0x88] sm:$0xff]  ;;  %v5170_v43 = vld [vmem:[#allocation4 + $0x80] sm:$0xff] }
 0x580   :  { %3489 = vmatpush.bf16.msra.mxu2 %v5167_v39  ;;  %v3405_v13 = vpack.c.bf16 %v3403_v44, %v3396_v27  ;;  %v3688_v22 = vld [vmem:[#allocation14] sm:$0x1]  ;;  %v3701_v57 = vld [vmem:[%s6413_s12] sm:$0x1]  ;;  %s3732_s12 = sshll.u32 %s6414_s13, 4  ;;  %s3733_s12 = int_to_ptr.hbm [resolvable:$true] %s3732_s12 }
 0x581   :  { %3556 = vmatpush.bf16.msra.mxu3 %v5159_v38 }
 0x582   :  { %3640 = vmatpush.bf16.msrb.mxu0 %v5175_v7 }
 0x584   :  { %3490 = vmatpush.bf16.msra.mxu2 %v5166_v26 }
 0x585   :  { %3557 = vmatpush.bf16.msra.mxu3 %v5158_v34 }
 0x586   :  { %3641 = vmatpush.bf16.msrb.mxu0 %v5174_v37 }
 0x588   :  { %3491 = vmatpush.bf16.msra.mxu2 %v5165_v23 }
 0x589   :  { %3558 = vmatpush.bf16.msra.mxu3 %v5157_v35 }
 0x58a   :  { %3642 = vmatpush.bf16.msrb.mxu0 %v5173_v12 }
 0x58c   :  { %3492 = vmatpush.bf16.msra.mxu2 %v5164_v41 }
 0x58d   :  { %3559 = vmatpush.bf16.msra.mxu3 %v5156_v33 }
 0x58e   :  { %3643 = vmatpush.bf16.msrb.mxu0 %v5172_v54 }
 0x590   :  { %3493 = vmatpush.bf16.msra.mxu2 %v5163_v4 }
 0x591   :  { %3560 = vmatpush.bf16.msra.mxu3 %v5155_v24 }
 0x592   :  { %3644 = vmatpush.bf16.msrb.mxu0 %v5171_v48 }
 0x594   :  { %3494 = vmatpush.bf16.msra.mxu2 %v5162_v21 }
 0x595   :  { %3561 = vmatpush.bf16.msra.mxu3 %v5154_v28 }
 0x596   :  { %3645 = vmatpush.bf16.msrb.mxu0 %v5170_v43 }
 0x597   :  { %3495 = vmatmul.bf16.vlgmr.msra.gmra.mxu2 %v3376_v51 }
 0x598   :  { %3562 = vmatmul.bf16.vlgmr.msra.gmra.mxu3 %v3390_v50 }
 0x599   :  { %3646 = vmatmul.bf16.vlgmr.msrb.gmra.mxu0 %v3404_v46 }
 0x5a7   :  { %3500 = vmatmul.bf16.gmra.mxu2 %v3377_v49 }
 0x5a8   :  { %3567 = vmatmul.bf16.gmra.mxu3 %v3391_v42 }
 0x5a9   :  { %3651 = vmatmul.bf16.gmra.mxu0 %v3405_v13 }
 0x616   :  { %v3647_v53 = vpop.f32.mrf.mxu0 }
 0x61a   :  { %v3496_v32 = vpop.f32.mrf.mxu2 }
 0x61b   :  { %v3563_v5 = vpop.f32.mrf.mxu3 }
 0x61c   :  { %v3564_v1 = vadd.f32 %v3563_v5, %v3496_v32 }
 0x61e   :  { %v3649_v58 = vpop.f32.mrf.mxu0  ;;  %v3657_v62 = vadd.f32 %v3647_v53, %v3564_v1 }
 0x620   :  { %v3670_v56 = vmul.f32 %v3657_v62, %v3657_v62 }
 0x622   :  { %v3498_v40 = vpop.f32.mrf.mxu2 }
 0x623   :  { %v3565_v59 = vpop.f32.mrf.mxu3 }
 0x624   :  { %v3566_v16 = vadd.f32 %v3565_v59, %v3498_v40 }
 0x626   :  { %v3652_v61 = vpop.f32.mrf.mxu0  ;;  %v3658_v2 = vadd.f32 %v3649_v58, %v3566_v16 }
 0x628   :  { %v3671_v10 = vmul.f32 %v3658_v2, %v3658_v2  ;;  %v3661_v63 = vadd.f32 %v3658_v2, %v3657_v62 }
 0x62a   :  { %v3501_v14 = vpop.f32.mrf.mxu2  ;;  %v3674_v26 = vadd.f32 %v3671_v10, %v3670_v56 }
 0x62b   :  { %v3568_v36 = vpop.f32.mrf.mxu3 }
 0x62c   :  { %v3569_v20 = vadd.f32 %v3568_v36, %v3501_v14 }
 0x62e   :  { %v3659_v45 = vadd.f32 %v3652_v61, %v3569_v20  ;;  %v3654_v7 = vpop.f32.mrf.mxu0 }
 0x630   :  { %v3672_v39 = vmul.f32 %v3659_v45, %v3659_v45  ;;  %v3662_v34 = vadd.f32 %v3661_v63, %v3659_v45 }
 0x632   :  { %v3503_v31 = vpop.f32.mrf.mxu2  ;;  %v3675_v23 = vadd.f32 %v3674_v26, %v3672_v39 }
 0x633   :  { %v3570_v3 = vpop.f32.mrf.mxu3 }
 0x634   :  { %v3571_v38 = vadd.f32 %v3570_v3, %v3503_v31 }
 0x636   :  { %v3660_v37 = vadd.f32 %v3654_v7, %v3571_v38 }
 0x638   :  { %v3663_v35 = vadd.f32 %v3662_v34, %v3660_v37  ;;  %v3673_v12 = vmul.f32 %v3660_v37, %v3660_v37 }
 0x63a   :  { %v3664_v41 = vrot.slane %v3663_v35, 4  ;;  %v3676_v33 = vadd.f32 %v3675_v23, %v3673_v12 }
 0x63c   :  { %v3665_v0 = vadd.f32 %v3664_v41, %v3663_v35  ;;  %v3677_v30 = vrot.slane %v3676_v33, 4 }
 0x63e   :  { %v3666_v54 = vrot.slane %v3665_v0, 2  ;;  %v3678_v11 = vadd.f32 %v3677_v30, %v3676_v33 }
 0x640   :  { %v3667_v8 = vadd.f32 %v3666_v54, %v3665_v0  ;;  %v3679_v4 = vrot.slane %v3678_v11, 2 }
 0x642   :  { %v3668_v24 = vrot.slane %v3667_v8, 1  ;;  %v3680_v29 = vadd.f32 %v3679_v4, %v3678_v11 }
 0x644   :  { %v3669_v55 = vadd.f32 %v3668_v24, %v3667_v8  ;;  %v3681_v48 = vrot.slane %v3680_v29, 1 }
 0x646   :  { %v3682_v52 = vadd.f32 %v3681_v48, %v3680_v29  ;;  %v3683_v25 = vmul.f32 0.03125, %v3669_v55 }
 0x648   :  { %v3684_v60 = vmul.f32 0.03125, %v3682_v52  ;;  %v3685_v21 = vmul.f32 %v3683_v25, %v3683_v25 }
 0x64a   :  { %v3686_v28 = vsub.f32 %v3684_v60, %v3685_v21 }
 0x64c   :  { %v3687_v47 = vmax.f32 %v3686_v28, 0.0 }
 0x64e   :  { %v3689_v18 = vadd.f32 1e-05, %v3687_v47 }
 0x650   :  { %5202 = vrsqrt.f32 %v3689_v18  ;;  %vm3696_vm5 = vweird.f32 %v3689_v18 }
 0x656   :  { %v5203_v43 = vpop.eup %5202 }
 0x657   :  { %v3691_v19 = vmul.f32 %v5203_v43, %v3689_v18  ;;  %vm3697_vm2 = vweird.f32 %v5203_v43 }
 0x658   :  { %vm3698_vm9 = vmor %vm3696_vm5, %vm3697_vm2 }
 0x659   :  { %v3692_v51 = vmul.f32 %v5203_v43, %v3691_v19 }
 0x65b   :  { %v3693_v50 = vmul.f32 0.5, %v3692_v51 }
 0x65d   :  { %v3694_v46 = vsub.f32 1.5, %v3693_v50 }
 0x65f   :  { %v3695_v6 = vmul.f32 %v5203_v43, %v3694_v46 }
 0x661   :  { %v3699_v15 = vsel %vm3698_vm9, %v5203_v43, %v3695_v6 }
 0x662   :  { %v3700_v17 = vmul.f32 %v3699_v15, %v3688_v22 }
 0x664   :  { %v3702_v9 = vmul.f32 %v3700_v17, %v3683_v25  ;;  %v3705_v44 = vperm.slane %v3700_v17, 0 }
 0x666   :  { %v3703_v27 = vsub.f32 %v3701_v57, %v3702_v9  ;;  %v3710_v49 = vmul.f32 %v3705_v44, %v3660_v37  ;;  %v3707_v13 = vmul.f32 %v3705_v44, %v3657_v62  ;;  %v3708_v53 = vmul.f32 %v3705_v44, %v3658_v2 }
 0x667   :  { %v3709_v32 = vmul.f32 %v3705_v44, %v3659_v45 }
 0x668   :  { %v3712_v42 = vperm.slane %v3703_v27, 0 }
 0x66a   :  { %v3717_v5 = vadd.f32 %v3712_v42, %v3710_v49  ;;  %v3714_v58 = vadd.f32 %v3712_v42, %v3707_v13  ;;  %v3715_v40 = vadd.f32 %v3712_v42, %v3708_v53  ;;  %v3716_v59 = vadd.f32 %v3712_v42, %v3709_v32 }
 0x66c   :  { %v3721_v16 = vmax.f32 %v3717_v5, 0.0  ;;  %v3718_v61 = vmax.f32 %v3714_v58, 0.0  ;;  %v3719_v14 = vmax.f32 %v3715_v40, 0.0  ;;  %v3720_v36 = vmax.f32 %v3716_v59, 0.0 }
 0x66e   :  { %3725 = vst [vmem:[#allocation15 + $0x18] sm:$0xff] %v3721_v16 }
 0x66f   :  { %3722 = vst [vmem:[#allocation15] sm:$0xff] %v3718_v61 }
 0x670   :  { %3723 = vst [vmem:[#allocation15 + $0x8] sm:$0xff] %v3719_v14 }
 0x671   :  { %3724 = vst [vmem:[#allocation15 + $0x10] sm:$0xff] %v3720_v36 }
 0x672   :  { %3738 = dma.vmem_to_hbm [thread:$0]  %s3731_s6, 512, %s3733_s12, [#allocation8], %s5439_s26, %s5439_s26, %s5440_s28  }
 0x673   :  { %5432 = dma.done.wait [#allocation8], 512  }
 0x674   :  { %5433 = vsyncadd [#allocation8], 4294966784 }
 0x675   :  { %3743 = vsyncpa [#allocation7], 1 }
 0x676   :  { %3744 = vsyncpa [#allocation10], 1 }
 0x677   :  { %3745 = vsyncpa [#allocation13], 1 }
 0x678   :  { %3746 = vsyncpa [#allocation8], 1 }
 0x679   :  { %3747 = vsyncmov [#allocation5] }
 0x67c   :  { %s3748_s18 = vpop.sfrf %3747 }
 0x67d   :  { %p4899_p0 = scmp.ne.s32.totalorder %s3748_s18, 0 }
 0x67f   :  { %3752 = shalt.err (%p4899_p0)  }
 0x680   :  { %3754 = vsyncmov [#allocation5 + $0x1] }
 0x683   :  { %s3755_s13 = vpop.sfrf %3754 }
 0x684   :  { %p4900_p1 = scmp.ne.s32.totalorder %s3755_s13, 0 }
 0x686   :  { %3759 = shalt.err (%p4900_p1)  }
 0x687   :  { %3761 = vsyncmov [#allocation5 + $0x2] }
 0x68a   :  { %s3762_s19 = vpop.sfrf %3761 }
 0x68b   :  { %p4901_p2 = scmp.ne.s32.totalorder %s3762_s19, 0 }
 0x68d   :  { %3766 = shalt.err (%p4901_p2)  }

</bundles_post_ra>
